<compile_context>
chip_gen: v5e
topology: v5e:2x2
jax: 0.10.0
libtpu: 0.0.40
codegen_flags: <defaults>
</compile_context>

<pallas_src>
import functools

import jax
import jax.numpy as jnp
from jax.experimental import pallas as pl
from jax.experimental.pallas import tpu as pltpu

BN_EPS = 1e-5


# ----------------------------- helpers ---------------------------------------

def _round_up(x, m):
    return ((x + m - 1) // m) * m


def _choose_bm(m, cap=1024):
    """M block: big (up to 1024 rows) but >= 2 blocks when m allows (megacore)."""
    half = _round_up((m + 1) // 2, 8)
    return max(8, min(cap, half))


def _choose_bn(np_):
    """N block: fill the 256-wide MXU when cout allows, else 128."""
    return 256 if np_ % 256 == 0 else 128


# ----------------------------- Pallas kernels --------------------------------

def _mm_bn_act_kernel(x_ref, w_ref, sb_ref, o_ref, *, act):
    """o = act((x @ w) * scale + bias); whole K in one dot, f32 epilogue."""
    acc = jnp.dot(x_ref[...], w_ref[...], preferred_element_type=jnp.float32)
    y = acc * sb_ref[0:1, :] + sb_ref[1:2, :]
    if act == "relu":
        y = jnp.maximum(y, 0.0)
    elif act == "leaky_relu":
        y = jnp.where(y > 0, y, 0.01 * y)
    elif act == "elu":
        y = jnp.where(y > 0, y, jnp.expm1(y))
    o_ref[...] = y.astype(o_ref.dtype)


def _pool_kernel(x_ref, o_ref, *, c):
    """2x2/stride-2 max pool on an (rows, 2, wo, 2*c) view of the activation."""
    x = x_ref[...]                                  # (br, 2, wo, 2c)
    mh = jnp.maximum(x[:, 0], x[:, 1])              # max over the two h rows
    o_ref[...] = jnp.maximum(mh[:, :, :c], mh[:, :, c:])   # max over the two w cols


# --------------------------- pallas_call builders -----------------------------

@functools.lru_cache(maxsize=None)
def _conv_call(mp, kp, np_, bm, bn, act):
    grid = (mp // bm, np_ // bn)
    return pl.pallas_call(
        functools.partial(_mm_bn_act_kernel, act=act),
        out_shape=jax.ShapeDtypeStruct((mp, np_), jnp.bfloat16),
        grid=grid,
        in_specs=[
            pl.BlockSpec((bm, kp), lambda i, j: (i, 0)),   # im2col tile (whole K)
            pl.BlockSpec((kp, bn), lambda i, j: (0, j)),   # weight tile (whole K)
            pl.BlockSpec((2, bn), lambda i, j: (0, j)),    # packed BN scale/bias
        ],
        out_specs=pl.BlockSpec((bm, bn), lambda i, j: (i, j)),
        compiler_params=pltpu.CompilerParams(
            dimension_semantics=("parallel", "parallel")),
    )


@functools.lru_cache(maxsize=None)
def _pool_call(rows, wo, c, br):
    return pl.pallas_call(
        functools.partial(_pool_kernel, c=c),
        out_shape=jax.ShapeDtypeStruct((rows, wo, c), jnp.bfloat16),
        grid=(rows // br,),
        in_specs=[pl.BlockSpec((br, 2, wo, 2 * c), lambda i: (i, 0, 0, 0))],
        out_specs=pl.BlockSpec((br, wo, c), lambda i: (i, 0, 0)),
        compiler_params=pltpu.CompilerParams(dimension_semantics=("parallel",)),
    )


# ------------------------------ layer wrappers --------------------------------

def conv_bn_act(x, p, *, ksize, cin, act):
    """Conv2d(stride=1, pad=(k-1)//2, no bias) + folded BN + activation.

    x: (n, h, w, c_stored) bf16 with the first `cin` channels real.
    p["w"]: (kp, cout_pad) bf16 weight matrix, zero rows beyond k*k*cin.
    p["sb"]: (2, cout_pad) f32 packed BN scale / bias.
    """
    n, h, w, _ = x.shape
    pad = (ksize - 1) // 2
    ho = h + 2 * pad - ksize + 1
    wo = w + 2 * pad - ksize + 1

    xr = x[..., :cin]                                   # real channels only
    if ksize == 1:
        a = xr.reshape(n * ho * wo, cin)
    else:
        xp = jnp.pad(xr, ((0, 0), (pad, pad), (pad, pad), (0, 0)))
        cols = [xp[:, i:i + ho, j:j + wo, :]
                for i in range(ksize) for j in range(ksize)]
        a = jnp.stack(cols, axis=3).reshape(n * ho * wo, ksize * ksize * cin)

    wmat = p["w"]
    kp, cout_pad = wmat.shape
    m, k = a.shape
    bm = _choose_bm(m)
    mp = _round_up(m, bm)
    bn = _choose_bn(cout_pad)
    a = jnp.pad(a, ((0, mp - m), (0, kp - k))).astype(jnp.bfloat16)

    out = _conv_call(mp, kp, cout_pad, bm, bn, act)(a, wmat, p["sb"])
    return out[:m].reshape(n, ho, wo, cout_pad)


def maxpool2x2(x):
    """nn.MaxPool2d(kernel_size=2): 2x2 window, stride 2, no padding."""
    n, h, w, c = x.shape
    ho, wo = h // 2, w // 2
    # Contiguous (free) reshape: (n, 2*ho, 2*wo, c) -> (n*ho, 2, wo, 2*c).
    xr = x[:, :2 * ho, :2 * wo, :].reshape(n * ho, 2, wo, 2 * c)
    rows = n * ho
    br = rows // 2 if (rows % 2 == 0 and rows >= 2) else rows  # 2 parallel blocks
    out = _pool_call(rows, wo, c, br)(xr)
    return out.reshape(n, ho, wo, c)


# --------------------------- parameter construction ---------------------------

def build_params(key, conv_layers_spec, num_channels=3, use_batchnorm=True):
    """Synthetic Conv2d + BatchNorm2d(eval) params.  Only cout is padded to 128."""
    params = []
    cin = num_channels
    for cout, ksize in conv_layers_spec:
        cout_pad = _round_up(cout, 128)
        k = ksize * ksize * cin
        kp = _round_up(k, 128)
        key, k1, k2, k3, k4, k5 = jax.random.split(key, 6)
        w = jax.random.normal(k1, (ksize, ksize, cin, cout), jnp.float32)
        w = w * (2.0 / k) ** 0.5
        if use_batchnorm:
            gamma = 1.0 + 0.1 * jax.random.normal(k2, (cout,), jnp.float32)
            beta = 0.1 * jax.random.normal(k3, (cout,), jnp.float32)
            mean = 0.1 * jax.random.normal(k4, (cout,), jnp.float32)
            var = jnp.abs(jax.random.normal(k5, (cout,), jnp.float32)) + 1.0
            scale = gamma / jnp.sqrt(var + BN_EPS)
            bias = beta - mean * scale
        else:
            scale = jnp.ones((cout,), jnp.float32)
            bias = jnp.zeros((cout,), jnp.float32)

        wmat = jnp.zeros((kp, cout_pad), jnp.float32)
        wmat = wmat.at[:k, :cout].set(w.reshape(k, cout))
        sb = jnp.zeros((2, cout_pad), jnp.float32)
        sb = sb.at[0, :cout].set(scale).at[1, :cout].set(bias)

        params.append({"w": wmat.astype(jnp.bfloat16), "sb": sb})
        cin = cout
    return params


# ------------------------------- forward --------------------------------------

def make_forward(conv_layers_spec, activation="relu", pool_locations=(0, 3),
                 num_channels=3):
    """Returns jitted forward(x_nchw, params) equivalent to SimpleCNNBuilder.forward."""
    pool_set = set(pool_locations)
    final_cout = conv_layers_spec[-1][0]

    @jax.jit
    def forward(x_nchw, params):
        x = jnp.transpose(x_nchw, (0, 2, 3, 1)).astype(jnp.bfloat16)  # NCHW -> NHWC
        cin = num_channels
        for layer_num, (p, (cout, ksize)) in enumerate(zip(params, conv_layers_spec)):
            x = conv_bn_act(x, p, ksize=ksize, cin=cin, act=activation)
            if layer_num in pool_set:
                x = maxpool2x2(x)
            cin = cout
        x = x[..., :final_cout].astype(jnp.float32)                   # drop channel pad
        return jnp.transpose(x, (0, 3, 1, 2))                          # NHWC -> NCHW
    return forward


# --------------------------------- main ----------------------------------------

if __name__ == "__main__":
    key = jax.random.PRNGKey(0)
    kx, kw = jax.random.split(key)

    # SimpleCNNBuilder(conv_layers_spec=[[16,3],[32,3],[32,3],[64,3]],
    #                  activation_fun='relu', use_batchnorm=True,
    #                  pool_locations=(0,3), num_channels=3)
    conv_layers_spec = ((16, 3), (32, 3), (32, 3), (64, 3))
    num_channels = 3

    x = jax.random.normal(kx, (2, num_channels, 32, 32), jnp.float32)
    params = build_params(kw, conv_layers_spec, num_channels=num_channels,
                          use_batchnorm=True)
    forward = make_forward(conv_layers_spec, activation="relu",
                           pool_locations=(0, 3), num_channels=num_channels)

    out = forward(x, params)
    out = jax.block_until_ready(out)

    # 32x32 -> pool after layer0 -> 16x16 -> ... -> pool after layer3 -> 8x8
    assert out.shape == (2, 64, 8, 8), out.shape
    assert bool(jnp.all(jnp.isfinite(out)))

    print("KERNEL_OK")
</pallas_src>

<mosaic_0001>
module attributes {stable_mosaic.version = 11 : i64} {
  func.func @_mm_bn_act_kernel(%arg0: i32, %arg1: i32, %arg2: memref<1024x128xbf16, #tpu.memory_space<vmem>>, %arg3: memref<128x128xbf16, #tpu.memory_space<vmem>>, %arg4: memref<2x128xf32, #tpu.memory_space<vmem>>, %arg5: memref<1024x128xbf16, #tpu.memory_space<vmem>>) attributes {dimension_semantics = [#tpu.dimension_semantics<parallel>, #tpu.dimension_semantics<parallel>], iteration_bounds = array<i64: 2, 1>, scalar_prefetch = 0 : i64, scratch_operands = 0 : i64, tpu.core_type = #tpu.core_type<tc>, window_params = [{transform_indices = @transform_0, window_bounds = array<i64: 1024, 128>}, {transform_indices = @transform_1, window_bounds = array<i64: 128, 128>}, {transform_indices = @transform_2, window_bounds = array<i64: 2, 128>}, {transform_indices = @transform_3, window_bounds = array<i64: 1024, 128>}]} {
    %c0 = arith.constant 0 : index
    %c0_0 = arith.constant 0 : index
    %0 = vector.load %arg2[%c0, %c0_0] : memref<1024x128xbf16, #tpu.memory_space<vmem>>, vector<1024x128xbf16>
    %c0_1 = arith.constant 0 : index
    %c0_2 = arith.constant 0 : index
    %1 = vector.load %arg3[%c0_1, %c0_2] : memref<128x128xbf16, #tpu.memory_space<vmem>>, vector<128x128xbf16>
    %cst = arith.constant dense<0.000000e+00> : vector<1024x128xf32>
    %2 = tpu.matmul %0, %1, %cst {dimension_numbers = #tpu.dot_dimension_numbers<[1], [0], [0], [1], [0, 0, 1, 1], [], []>} : vector<1024x128xbf16>, vector<128x128xbf16>, vector<1024x128xf32> -> vector<1024x128xf32>
    %c0_3 = arith.constant 0 : index
    %c0_4 = arith.constant 0 : index
    %3 = vector.load %arg4[%c0_3, %c0_4] : memref<2x128xf32, #tpu.memory_space<vmem>>, vector<1x128xf32>
    %4 = vector.broadcast %3 : vector<1x128xf32> to vector<1024x128xf32>
    %5 = arith.mulf %2, %4 : vector<1024x128xf32>
    %c1 = arith.constant 1 : index
    %c0_5 = arith.constant 0 : index
    %6 = vector.load %arg4[%c1, %c0_5] : memref<2x128xf32, #tpu.memory_space<vmem>>, vector<1x128xf32>
    %7 = vector.broadcast %6 : vector<1x128xf32> to vector<1024x128xf32>
    %8 = arith.addf %5, %7 : vector<1024x128xf32>
    %cst_6 = arith.constant 0.000000e+00 : f32
    %9 = vector.broadcast %cst_6 : f32 to vector<1024x128xf32>
    %10 = arith.maximumf %8, %9 : vector<1024x128xf32>
    %11 = arith.truncf %10 : vector<1024x128xf32> to vector<1024x128xbf16>
    %c0_7 = arith.constant 0 : index
    %c0_8 = arith.constant 0 : index
    %12 = vector.load %arg5[%c0_7, %c0_8] : memref<1024x128xbf16, #tpu.memory_space<vmem>>, vector<1024x128xbf16>
    tpu.vector_store %arg5[%c0_7, %c0_8], %11 {strides = array<i32>} : memref<1024x128xbf16, #tpu.memory_space<vmem>>, vector<1024x128xbf16>,
    return
  }
  func.func @transform_0(%arg0: i32, %arg1: i32) -> (i32, i32) {
    %c0_i32 = arith.constant 0 : i32
    %c0_i32_0 = arith.constant 0 : i32
    return %arg0, %c0_i32 : i32, i32
  }
  func.func @transform_1(%arg0: i32, %arg1: i32) -> (i32, i32) {
    %c0_i32 = arith.constant 0 : i32
    %c0_i32_0 = arith.constant 0 : i32
    return %c0_i32, %arg1 : i32, i32
  }
  func.func @transform_2(%arg0: i32, %arg1: i32) -> (i32, i32) {
    %c0_i32 = arith.constant 0 : i32
    %c0_i32_0 = arith.constant 0 : i32
    return %c0_i32, %arg1 : i32, i32
  }
  func.func @transform_3(%arg0: i32, %arg1: i32) -> (i32, i32) {
    %c0_i32 = arith.constant 0 : i32
    return %arg0, %arg1 : i32, i32
  }
}

module attributes {stable_mosaic.version = 11 : i64} {
  func.func @_pool_kernel(%arg0: i32, %arg1: memref<16x2x16x256xbf16, #tpu.memory_space<vmem>>, %arg2: memref<16x16x128xbf16, #tpu.memory_space<vmem>>) attributes {dimension_semantics = [#tpu.dimension_semantics<parallel>], iteration_bounds = array<i64: 2>, scalar_prefetch = 0 : i64, scratch_operands = 0 : i64, tpu.core_type = #tpu.core_type<tc>, window_params = [{transform_indices = @transform_0, window_bounds = array<i64: 16, 2, 16, 256>}, {transform_indices = @transform_1, window_bounds = array<i64: 16, 16, 128>}]} {
    %c0 = arith.constant 0 : index
    %c0_0 = arith.constant 0 : index
    %c0_1 = arith.constant 0 : index
    %c0_2 = arith.constant 0 : index
    %0 = vector.load %arg1[%c0, %c0_0, %c0_1, %c0_2] : memref<16x2x16x256xbf16, #tpu.memory_space<vmem>>, vector<16x2x16x256xbf16>
    %1 = vector.extract_strided_slice %0 {offsets = [0, 0, 0, 0], sizes = [16, 1, 16, 256], strides = [1, 1, 1, 1]} : vector<16x2x16x256xbf16> to vector<16x1x16x256xbf16>
    %2 = vector.shape_cast %1 : vector<16x1x16x256xbf16> to vector<16x16x256xbf16>
    %3 = vector.extract_strided_slice %0 {offsets = [0, 1, 0, 0], sizes = [16, 1, 16, 256], strides = [1, 1, 1, 1]} : vector<16x2x16x256xbf16> to vector<16x1x16x256xbf16>
    %4 = vector.shape_cast %3 : vector<16x1x16x256xbf16> to vector<16x16x256xbf16>
    %5 = arith.maximumf %2, %4 : vector<16x16x256xbf16>
    %6 = vector.extract_strided_slice %5 {offsets = [0, 0, 0], sizes = [16, 16, 128], strides = [1, 1, 1]} : vector<16x16x256xbf16> to vector<16x16x128xbf16>
    %7 = vector.extract_strided_slice %5 {offsets = [0, 0, 128], sizes = [16, 16, 128], strides = [1, 1, 1]} : vector<16x16x256xbf16> to vector<16x16x128xbf16>
    %8 = arith.maximumf %6, %7 : vector<16x16x128xbf16>
    %c0_3 = arith.constant 0 : index
    %c0_4 = arith.constant 0 : index
    %c0_5 = arith.constant 0 : index
    %9 = vector.load %arg2[%c0_3, %c0_4, %c0_5] : memref<16x16x128xbf16, #tpu.memory_space<vmem>>, vector<16x16x128xbf16>
    tpu.vector_store %arg2[%c0_3, %c0_4, %c0_5], %8 {strides = array<i32>} : memref<16x16x128xbf16, #tpu.memory_space<vmem>>, vector<16x16x128xbf16>,
    return
  }
  func.func @transform_0(%arg0: i32) -> (i32, i32, i32, i32) {
    %c0_i32 = arith.constant 0 : i32
    %c0_i32_0 = arith.constant 0 : i32
    %c0_i32_1 = arith.constant 0 : i32
    %c0_i32_2 = arith.constant 0 : i32
    return %arg0, %c0_i32, %c0_i32_0, %c0_i32_1 : i32, i32, i32, i32
  }
  func.func @transform_1(%arg0: i32) -> (i32, i32, i32) {
    %c0_i32 = arith.constant 0 : i32
    %c0_i32_0 = arith.constant 0 : i32
    %c0_i32_1 = arith.constant 0 : i32
    return %arg0, %c0_i32, %c0_i32_0 : i32, i32, i32
  }
}

module attributes {stable_mosaic.version = 11 : i64} {
  func.func @_mm_bn_act_kernel(%arg0: i32, %arg1: i32, %arg2: memref<256x256xbf16, #tpu.memory_space<vmem>>, %arg3: memref<256x128xbf16, #tpu.memory_space<vmem>>, %arg4: memref<2x128xf32, #tpu.memory_space<vmem>>, %arg5: memref<256x128xbf16, #tpu.memory_space<vmem>>) attributes {dimension_semantics = [#tpu.dimension_semantics<parallel>, #tpu.dimension_semantics<parallel>], iteration_bounds = array<i64: 2, 1>, scalar_prefetch = 0 : i64, scratch_operands = 0 : i64, tpu.core_type = #tpu.core_type<tc>, window_params = [{transform_indices = @transform_0, window_bounds = array<i64: 256, 256>}, {transform_indices = @transform_1, window_bounds = array<i64: 256, 128>}, {transform_indices = @transform_2, window_bounds = array<i64: 2, 128>}, {transform_indices = @transform_3, window_bounds = array<i64: 256, 128>}]} {
    %c0 = arith.constant 0 : index
    %c0_0 = arith.constant 0 : index
    %0 = vector.load %arg2[%c0, %c0_0] : memref<256x256xbf16, #tpu.memory_space<vmem>>, vector<256x256xbf16>
    %c0_1 = arith.constant 0 : index
    %c0_2 = arith.constant 0 : index
    %1 = vector.load %arg3[%c0_1, %c0_2] : memref<256x128xbf16, #tpu.memory_space<vmem>>, vector<256x128xbf16>
    %cst = arith.constant dense<0.000000e+00> : vector<256x128xf32>
    %2 = tpu.matmul %0, %1, %cst {dimension_numbers = #tpu.dot_dimension_numbers<[1], [0], [0], [1], [0, 0, 1, 1], [], []>} : vector<256x256xbf16>, vector<256x128xbf16>, vector<256x128xf32> -> vector<256x128xf32>
    %c0_3 = arith.constant 0 : index
    %c0_4 = arith.constant 0 : index
    %3 = vector.load %arg4[%c0_3, %c0_4] : memref<2x128xf32, #tpu.memory_space<vmem>>, vector<1x128xf32>
    %4 = vector.broadcast %3 : vector<1x128xf32> to vector<256x128xf32>
    %5 = arith.mulf %2, %4 : vector<256x128xf32>
    %c1 = arith.constant 1 : index
    %c0_5 = arith.constant 0 : index
    %6 = vector.load %arg4[%c1, %c0_5] : memref<2x128xf32, #tpu.memory_space<vmem>>, vector<1x128xf32>
    %7 = vector.broadcast %6 : vector<1x128xf32> to vector<256x128xf32>
    %8 = arith.addf %5, %7 : vector<256x128xf32>
    %cst_6 = arith.constant 0.000000e+00 : f32
    %9 = vector.broadcast %cst_6 : f32 to vector<256x128xf32>
    %10 = arith.maximumf %8, %9 : vector<256x128xf32>
    %11 = arith.truncf %10 : vector<256x128xf32> to vector<256x128xbf16>
    %c0_7 = arith.constant 0 : index
    %c0_8 = arith.constant 0 : index
    %12 = vector.load %arg5[%c0_7, %c0_8] : memref<256x128xbf16, #tpu.memory_space<vmem>>, vector<256x128xbf16>
    tpu.vector_store %arg5[%c0_7, %c0_8], %11 {strides = array<i32>} : memref<256x128xbf16, #tpu.memory_space<vmem>>, vector<256x128xbf16>,
    return
  }
  func.func @transform_0(%arg0: i32, %arg1: i32) -> (i32, i32) {
    %c0_i32 = arith.constant 0 : i32
    %c0_i32_0 = arith.constant 0 : i32
    return %arg0, %c0_i32 : i32, i32
  }
  func.func @transform_1(%arg0: i32, %arg1: i32) -> (i32, i32) {
    %c0_i32 = arith.constant 0 : i32
    %c0_i32_0 = arith.constant 0 : i32
    return %c0_i32, %arg1 : i32, i32
  }
  func.func @transform_2(%arg0: i32, %arg1: i32) -> (i32, i32) {
    %c0_i32 = arith.constant 0 : i32
    %c0_i32_0 = arith.constant 0 : i32
    return %c0_i32, %arg1 : i32, i32
  }
  func.func @transform_3(%arg0: i32, %arg1: i32) -> (i32, i32) {
    %c0_i32 = arith.constant 0 : i32
    return %arg0, %arg1 : i32, i32
  }
}

module attributes {stable_mosaic.version = 11 : i64} {
  func.func @_mm_bn_act_kernel(%arg0: i32, %arg1: i32, %arg2: memref<256x384xbf16, #tpu.memory_space<vmem>>, %arg3: memref<384x128xbf16, #tpu.memory_space<vmem>>, %arg4: memref<2x128xf32, #tpu.memory_space<vmem>>, %arg5: memref<256x128xbf16, #tpu.memory_space<vmem>>) attributes {dimension_semantics = [#tpu.dimension_semantics<parallel>, #tpu.dimension_semantics<parallel>], iteration_bounds = array<i64: 2, 1>, scalar_prefetch = 0 : i64, scratch_operands = 0 : i64, tpu.core_type = #tpu.core_type<tc>, window_params = [{transform_indices = @transform_0, window_bounds = array<i64: 256, 384>}, {transform_indices = @transform_1, window_bounds = array<i64: 384, 128>}, {transform_indices = @transform_2, window_bounds = array<i64: 2, 128>}, {transform_indices = @transform_3, window_bounds = array<i64: 256, 128>}]} {
    %c0 = arith.constant 0 : index
    %c0_0 = arith.constant 0 : index
    %0 = vector.load %arg2[%c0, %c0_0] : memref<256x384xbf16, #tpu.memory_space<vmem>>, vector<256x384xbf16>
    %c0_1 = arith.constant 0 : index
    %c0_2 = arith.constant 0 : index
    %1 = vector.load %arg3[%c0_1, %c0_2] : memref<384x128xbf16, #tpu.memory_space<vmem>>, vector<384x128xbf16>
    %cst = arith.constant dense<0.000000e+00> : vector<256x128xf32>
    %2 = tpu.matmul %0, %1, %cst {dimension_numbers = #tpu.dot_dimension_numbers<[1], [0], [0], [1], [0, 0, 1, 1], [], []>} : vector<256x384xbf16>, vector<384x128xbf16>, vector<256x128xf32> -> vector<256x128xf32>
    %c0_3 = arith.constant 0 : index
    %c0_4 = arith.constant 0 : index
    %3 = vector.load %arg4[%c0_3, %c0_4] : memref<2x128xf32, #tpu.memory_space<vmem>>, vector<1x128xf32>
    %4 = vector.broadcast %3 : vector<1x128xf32> to vector<256x128xf32>
    %5 = arith.mulf %2, %4 : vector<256x128xf32>
    %c1 = arith.constant 1 : index
    %c0_5 = arith.constant 0 : index
    %6 = vector.load %arg4[%c1, %c0_5] : memref<2x128xf32, #tpu.memory_space<vmem>>, vector<1x128xf32>
    %7 = vector.broadcast %6 : vector<1x128xf32> to vector<256x128xf32>
    %8 = arith.addf %5, %7 : vector<256x128xf32>
    %cst_6 = arith.constant 0.000000e+00 : f32
    %9 = vector.broadcast %cst_6 : f32 to vector<256x128xf32>
    %10 = arith.maximumf %8, %9 : vector<256x128xf32>
    %11 = arith.truncf %10 : vector<256x128xf32> to vector<256x128xbf16>
    %c0_7 = arith.constant 0 : index
    %c0_8 = arith.constant 0 : index
    %12 = vector.load %arg5[%c0_7, %c0_8] : memref<256x128xbf16, #tpu.memory_space<vmem>>, vector<256x128xbf16>
    tpu.vector_store %arg5[%c0_7, %c0_8], %11 {strides = array<i32>} : memref<256x128xbf16, #tpu.memory_space<vmem>>, vector<256x128xbf16>,
    return
  }
  func.func @transform_0(%arg0: i32, %arg1: i32) -> (i32, i32) {
    %c0_i32 = arith.constant 0 : i32
    %c0_i32_0 = arith.constant 0 : i32
    return %arg0, %c0_i32 : i32, i32
  }
  func.func @transform_1(%arg0: i32, %arg1: i32) -> (i32, i32) {
    %c0_i32 = arith.constant 0 : i32
    %c0_i32_0 = arith.constant 0 : i32
    return %c0_i32, %arg1 : i32, i32
  }
  func.func @transform_2(%arg0: i32, %arg1: i32) -> (i32, i32) {
    %c0_i32 = arith.constant 0 : i32
    %c0_i32_0 = arith.constant 0 : i32
    return %c0_i32, %arg1 : i32, i32
  }
  func.func @transform_3(%arg0: i32, %arg1: i32) -> (i32, i32) {
    %c0_i32 = arith.constant 0 : i32
    return %arg0, %arg1 : i32, i32
  }
}

module attributes {stable_mosaic.version = 11 : i64} {
  func.func @_pool_kernel(%arg0: i32, %arg1: memref<8x2x8x256xbf16, #tpu.memory_space<vmem>>, %arg2: memref<8x8x128xbf16, #tpu.memory_space<vmem>>) attributes {dimension_semantics = [#tpu.dimension_semantics<parallel>], iteration_bounds = array<i64: 2>, scalar_prefetch = 0 : i64, scratch_operands = 0 : i64, tpu.core_type = #tpu.core_type<tc>, window_params = [{transform_indices = @transform_0, window_bounds = array<i64: 8, 2, 8, 256>}, {transform_indices = @transform_1, window_bounds = array<i64: 8, 8, 128>}]} {
    %c0 = arith.constant 0 : index
    %c0_0 = arith.constant 0 : index
    %c0_1 = arith.constant 0 : index
    %c0_2 = arith.constant 0 : index
    %0 = vector.load %arg1[%c0, %c0_0, %c0_1, %c0_2] : memref<8x2x8x256xbf16, #tpu.memory_space<vmem>>, vector<8x2x8x256xbf16>
    %1 = vector.extract_strided_slice %0 {offsets = [0, 0, 0, 0], sizes = [8, 1, 8, 256], strides = [1, 1, 1, 1]} : vector<8x2x8x256xbf16> to vector<8x1x8x256xbf16>
    %2 = vector.shape_cast %1 : vector<8x1x8x256xbf16> to vector<8x8x256xbf16>
    %3 = vector.extract_strided_slice %0 {offsets = [0, 1, 0, 0], sizes = [8, 1, 8, 256], strides = [1, 1, 1, 1]} : vector<8x2x8x256xbf16> to vector<8x1x8x256xbf16>
    %4 = vector.shape_cast %3 : vector<8x1x8x256xbf16> to vector<8x8x256xbf16>
    %5 = arith.maximumf %2, %4 : vector<8x8x256xbf16>
    %6 = vector.extract_strided_slice %5 {offsets = [0, 0, 0], sizes = [8, 8, 128], strides = [1, 1, 1]} : vector<8x8x256xbf16> to vector<8x8x128xbf16>
    %7 = vector.extract_strided_slice %5 {offsets = [0, 0, 128], sizes = [8, 8, 128], strides = [1, 1, 1]} : vector<8x8x256xbf16> to vector<8x8x128xbf16>
    %8 = arith.maximumf %6, %7 : vector<8x8x128xbf16>
    %c0_3 = arith.constant 0 : index
    %c0_4 = arith.constant 0 : index
    %c0_5 = arith.constant 0 : index
    %9 = vector.load %arg2[%c0_3, %c0_4, %c0_5] : memref<8x8x128xbf16, #tpu.memory_space<vmem>>, vector<8x8x128xbf16>
    tpu.vector_store %arg2[%c0_3, %c0_4, %c0_5], %8 {strides = array<i32>} : memref<8x8x128xbf16, #tpu.memory_space<vmem>>, vector<8x8x128xbf16>,
    return
  }
  func.func @transform_0(%arg0: i32) -> (i32, i32, i32, i32) {
    %c0_i32 = arith.constant 0 : i32
    %c0_i32_0 = arith.constant 0 : i32
    %c0_i32_1 = arith.constant 0 : i32
    %c0_i32_2 = arith.constant 0 : i32
    return %arg0, %c0_i32, %c0_i32_0, %c0_i32_1 : i32, i32, i32, i32
  }
  func.func @transform_1(%arg0: i32) -> (i32, i32, i32) {
    %c0_i32 = arith.constant 0 : i32
    %c0_i32_0 = arith.constant 0 : i32
    %c0_i32_1 = arith.constant 0 : i32
    return %arg0, %c0_i32, %c0_i32_0 : i32, i32, i32
  }
}

</mosaic_0001>

<bundles_post_ra>
// kernel: forward.7
= control target key start
LH: loop header
LB: loop body
LE: loop exit
PB: predicated region body
PF: predicated region fallthrough
CT: control target
= control target key end

     0   :  { %s863_s6 = smov 0   ;;  %s968_s0 = inlined_call_operand.vmem [shape: bf16[32,2,16,256], index: 0, kind: input, shape index: {}]   ;;  %s969_s1 = inlined_call_operand.vmem [shape: bf16[32,16,128], index: 1, kind: output, shape index: {}]  }
   0x1 LB: > { %s727_s7 = sadd.s32 4294967295, %s851_s6   ;;  %p731_p0 = scmp.ge.s32.totalorder %s851_s6, 1  ;;  %s851_s6 = sphi %s863_s6, %s11_s6  }
   0x2   : > { %p89_p1 = scmp.lt.s32.totalorder %s851_s6, 3 }
   0x4   : > { %p90_p2 = pnand %p731_p0, %p89_p1 }
   0x5   : > { %s732_s8 = sshll.u32 (!%p90_p2), %s727_s7, 4 }
   0x6   : > { %93 = sbr.rel (%p90_p2) target bundleno = 108 (0x6c), region = 24  ;;  %p112_p3 = scmp.lt.s32.totalorder (!%p90_p2), %s732_s8, 31 }
   0xb   : > { %s971_s8 = smov (!%p112_p3, %s732_s8), 31 }
   0xc   : > { %s740_s9 = sshll.u32 %s971_s8, 5  ;;  %s741_s13 = sshll.u32 %s971_s8, 3 }
   0xd   : > { %s877_s12 = scalar_lea.vmem %s968_s0, %s740_s9  ;;  %s897_s16 = scalar_lea.vmem %s969_s1, %s741_s13 }
   0xe   : > { %v125_v0 = vld [vmem:[%s877_s12] sm:$0xff]  ;;  %v126_v1 = vld [vmem:[%s877_s12 + $0x8] sm:$0xff]  ;;  %v127_v2 = vld [vmem:[%s877_s12 + $0x10] sm:$0xff] }
   0xf   : > { %v128_v3 = vld [vmem:[%s877_s12 + $0x18] sm:$0xff]  ;;  %v189_v4 = vunpack.c.l.bf16 %v125_v0  ;;  %v190_v5 = vunpack.c.h.bf16 %v125_v0  ;;  %v191_v6 = vunpack.c.l.bf16 %v126_v1  ;;  %v192_v7 = vunpack.c.h.bf16 %v126_v1  ;;  %v129_v8 = vld [vmem:[%s877_s12 + $0x20] sm:$0xff]  ;;  %v130_v9 = vld [vmem:[%s877_s12 + $0x28] sm:$0xff] }
  0x10   : > { %v253_v10 = vunpack.c.l.bf16 %v127_v2  ;;  %v254_v11 = vunpack.c.h.bf16 %v127_v2  ;;  %v255_v12 = vunpack.c.l.bf16 %v128_v3  ;;  %v256_v13 = vunpack.c.h.bf16 %v128_v3  ;;  %v131_v14 = vld [vmem:[%s877_s12 + $0x30] sm:$0xff]  ;;  %v132_v15 = vld [vmem:[%s877_s12 + $0x38] sm:$0xff]  ;;  %v133_v20 = vld [vmem:[%s877_s12 + $0x40] sm:$0xff] }
  0x11   : > { %v193_v16 = vunpack.c.l.bf16 %v129_v8  ;;  %v194_v17 = vunpack.c.h.bf16 %v129_v8  ;;  %v195_v18 = vunpack.c.l.bf16 %v130_v9  ;;  %v196_v19 = vunpack.c.h.bf16 %v130_v9  ;;  %v134_v29 = vld [vmem:[%s877_s12 + $0x48] sm:$0xff]  ;;  %v135_v32 = vld [vmem:[%s877_s12 + $0x50] sm:$0xff]  ;;  %v136_v39 = vld [vmem:[%s877_s12 + $0x58] sm:$0xff] }
  0x12   : > { %v317_v21 = vmax.f32 %v189_v4, %v253_v10  ;;  %v318_v22 = vmax.f32 %v190_v5, %v254_v11  ;;  %v319_v23 = vmax.f32 %v191_v6, %v255_v12  ;;  %v320_v24 = vmax.f32 %v192_v7, %v256_v13  ;;  %v137_v52 = vld [vmem:[%s877_s12 + $0x60] sm:$0xff]  ;;  %v138_v57 = vld [vmem:[%s877_s12 + $0x68] sm:$0xff]  ;;  %v139_v1 = vld [vmem:[%s877_s12 + $0x70] sm:$0xff] }
  0x13   : > { %v257_v25 = vunpack.c.l.bf16 %v131_v14  ;;  %v258_v26 = vunpack.c.h.bf16 %v131_v14  ;;  %v259_v27 = vunpack.c.l.bf16 %v132_v15  ;;  %v260_v28 = vunpack.c.h.bf16 %v132_v15  ;;  %v140_v2 = vld [vmem:[%s877_s12 + $0x78] sm:$0xff]  ;;  %v141_v8 = vld [vmem:[%s877_s12 + $0x80] sm:$0xff] }
  0x14   : > { %v381_v30 = vpack.c.bf16 %v318_v22, %v317_v21  ;;  %v382_v31 = vpack.c.bf16 %v320_v24, %v319_v23  ;;  %v197_v33 = vunpack.c.l.bf16 %v133_v20  ;;  %v198_v34 = vunpack.c.h.bf16 %v133_v20 }
  0x15   : > { %v321_v35 = vmax.f32 %v193_v16, %v257_v25  ;;  %v322_v36 = vmax.f32 %v194_v17, %v258_v26  ;;  %v323_v37 = vmax.f32 %v195_v18, %v259_v27  ;;  %v324_v38 = vmax.f32 %v196_v19, %v260_v28  ;;  %v142_v17 = vld [vmem:[%s877_s12 + $0x88] sm:$0xff]  ;;  %v144_v27 = vld [vmem:[%s877_s12 + $0x98] sm:$0xff] }
  0x16   : > { %v477_v40 = vrot.slane %v381_v30, 4  ;;  %v478_v41 = vrot.slane %v382_v31, 4  ;;  %v199_v42 = vunpack.c.l.bf16 %v134_v29  ;;  %v200_v43 = vunpack.c.h.bf16 %v134_v29 }
  0x17   : > { %v383_v44 = vpack.c.bf16 %v322_v36, %v321_v35  ;;  %v384_v45 = vpack.c.bf16 %v324_v38, %v323_v37  ;;  %v261_v46 = vunpack.c.l.bf16 %v135_v32  ;;  %v262_v47 = vunpack.c.h.bf16 %v135_v32  ;;  %v145_v32 = vld [vmem:[%s877_s12 + $0xa0] sm:$0xff] }
  0x18   : > { %v541_v48 = vunpack.c.l.bf16 %v477_v40  ;;  %v542_v49 = vunpack.c.l.bf16 %v478_v41  ;;  %v263_v50 = vunpack.c.l.bf16 %v136_v39  ;;  %v264_v51 = vunpack.c.h.bf16 %v136_v39  ;;  %v146_v41 = vld [vmem:[%s877_s12 + $0xa8] sm:$0xff] }
  0x19   : > { %v479_v53 = vrot.slane %v383_v44, 4  ;;  %v480_v54 = vrot.slane %v384_v45, 4  ;;  %v325_v55 = vmax.f32 %v197_v33, %v261_v46  ;;  %v326_v56 = vmax.f32 %v198_v34, %v262_v47  ;;  %v147_v45 = vld [vmem:[%s877_s12 + $0xb0] sm:$0xff] }
  0x1a   : > { %v573_v58 = vmax.f32 %v317_v21, %v541_v48  ;;  %v574_v59 = vmax.f32 %v319_v23, %v542_v49  ;;  %v327_v60 = vmax.f32 %v199_v42, %v263_v50  ;;  %v328_v61 = vmax.f32 %v200_v43, %v264_v51  ;;  %v143_v21 = vld [vmem:[%s877_s12 + $0x90] sm:$0xff]  ;;  %v148_v51 = vld [vmem:[%s877_s12 + $0xb8] sm:$0xff] }
  0x1b   : > { %v543_v62 = vunpack.c.l.bf16 %v479_v53  ;;  %v544_v63 = vunpack.c.l.bf16 %v480_v54  ;;  %v385_v0 = vpack.c.bf16 %v326_v56, %v325_v55  ;;  %v201_v3 = vunpack.c.l.bf16 %v137_v52 }
  0x1c   : > { %v745_v4 = vpack.c.bf16 %v574_v59, %v573_v58  ;;  %v386_v5 = vpack.c.bf16 %v328_v61, %v327_v60  ;;  %v202_v6 = vunpack.c.h.bf16 %v137_v52  ;;  %v203_v7 = vunpack.c.l.bf16 %v138_v57 }
  0x1d   : > { %v575_v9 = vmax.f32 %v321_v35, %v543_v62  ;;  %v576_v10 = vmax.f32 %v323_v37, %v544_v63  ;;  %v481_v11 = vrot.slane %v385_v0, 4  ;;  %v204_v12 = vunpack.c.h.bf16 %v138_v57 }
  0x1e   : > { %746 = vst [vmem:[%s897_s16] sm:$0xff] %v745_v4   ;;  %v482_v13 = vrot.slane %v386_v5, 4  ;;  %v265_v14 = vunpack.c.l.bf16 %v139_v1  ;;  %v266_v15 = vunpack.c.h.bf16 %v139_v1  ;;  %v267_v16 = vunpack.c.l.bf16 %v140_v2  ;;  %v150_v5 = vld [vmem:[%s877_s12 + $0xc8] sm:$0xff] }
  0x1f   : > { %v750_v18 = vpack.c.bf16 %v576_v10, %v575_v9  ;;  %v545_v19 = vunpack.c.l.bf16 %v481_v11  ;;  %v268_v20 = vunpack.c.h.bf16 %v140_v2  ;;  %v205_v22 = vunpack.c.l.bf16 %v141_v8  ;;  %v151_v9 = vld [vmem:[%s877_s12 + $0xd0] sm:$0xff] }
  0x20   : > { %v546_v23 = vunpack.c.l.bf16 %v482_v13  ;;  %v329_v24 = vmax.f32 %v201_v3, %v265_v14  ;;  %v330_v25 = vmax.f32 %v202_v6, %v266_v15  ;;  %v331_v26 = vmax.f32 %v203_v7, %v267_v16  ;;  %v152_v14 = vld [vmem:[%s877_s12 + $0xd8] sm:$0xff] }
  0x21   : > { %822 = vst [vmem:[%s897_s16 + $0x8] sm:$0xff] %v750_v18   ;;  %v577_v28 = vmax.f32 %v325_v55, %v545_v19  ;;  %v332_v29 = vmax.f32 %v204_v12, %v268_v20  ;;  %v206_v30 = vunpack.c.h.bf16 %v141_v8  ;;  %v207_v31 = vunpack.c.l.bf16 %v142_v17  ;;  %v153_v20 = vld [vmem:[%s877_s12 + $0xe0] sm:$0xff] }
  0x22   : > { %v578_v33 = vmax.f32 %v327_v60, %v546_v23  ;;  %v387_v34 = vpack.c.bf16 %v330_v25, %v329_v24  ;;  %v208_v35 = vunpack.c.h.bf16 %v142_v17  ;;  %v269_v36 = vunpack.c.l.bf16 %v143_v21  ;;  %v149_v60 = vld [vmem:[%s877_s12 + $0xc0] sm:$0xff] }
  0x23   : > { %v388_v37 = vpack.c.bf16 %v332_v29, %v331_v26  ;;  %v270_v38 = vunpack.c.h.bf16 %v143_v21  ;;  %v271_v39 = vunpack.c.l.bf16 %v144_v27  ;;  %v272_v40 = vunpack.c.h.bf16 %v144_v27  ;;  %v154_v29 = vld [vmem:[%s877_s12 + $0xe8] sm:$0xff] }
  0x24   : > { %v755_v42 = vpack.c.bf16 %v578_v33, %v577_v28  ;;  %v483_v43 = vrot.slane %v387_v34, 4  ;;  %v333_v44 = vmax.f32 %v205_v22, %v269_v36  ;;  %v209_v46 = vunpack.c.l.bf16 %v145_v32  ;;  %v155_v33 = vld [vmem:[%s877_s12 + $0xf0] sm:$0xff] }
  0x25   : > { %v484_v47 = vrot.slane %v388_v37, 4  ;;  %v334_v48 = vmax.f32 %v206_v30, %v270_v38  ;;  %v335_v49 = vmax.f32 %v207_v31, %v271_v39  ;;  %v336_v50 = vmax.f32 %v208_v35, %v272_v40  ;;  %v156_v39 = vld [vmem:[%s877_s12 + $0xf8] sm:$0xff] }
  0x26   : > { %823 = vst [vmem:[%s897_s16 + $0x10] sm:$0xff] %v755_v42   ;;  %v547_v52 = vunpack.c.l.bf16 %v483_v43  ;;  %v210_v53 = vunpack.c.h.bf16 %v145_v32  ;;  %v211_v54 = vunpack.c.l.bf16 %v146_v41  ;;  %v212_v55 = vunpack.c.h.bf16 %v146_v41 }
  0x27   : > { %v548_v56 = vunpack.c.l.bf16 %v484_v47  ;;  %v389_v57 = vpack.c.bf16 %v334_v48, %v333_v44  ;;  %v390_v58 = vpack.c.bf16 %v336_v50, %v335_v49  ;;  %v273_v59 = vunpack.c.l.bf16 %v147_v45 }
  0x28   : > { %v579_v61 = vmax.f32 %v329_v24, %v547_v52  ;;  %v274_v62 = vunpack.c.h.bf16 %v147_v45  ;;  %v275_v63 = vunpack.c.l.bf16 %v148_v51  ;;  %v276_v0 = vunpack.c.h.bf16 %v148_v51 }
  0x29   : > { %v580_v1 = vmax.f32 %v331_v26, %v548_v56  ;;  %v485_v2 = vrot.slane %v389_v57, 4  ;;  %v486_v3 = vrot.slane %v390_v58, 4  ;;  %v337_v4 = vmax.f32 %v209_v46, %v273_v59  ;;  %v159_v57 = vld [vmem:[%s877_s12 + $0x110] sm:$0xff] }
  0x2a   : > { %v338_v6 = vmax.f32 %v210_v53, %v274_v62  ;;  %v339_v7 = vmax.f32 %v211_v54, %v275_v63  ;;  %v340_v8 = vmax.f32 %v212_v55, %v276_v0  ;;  %v213_v10 = vunpack.c.l.bf16 %v149_v60  ;;  %v158_v53 = vld [vmem:[%s877_s12 + $0x108] sm:$0xff]  ;;  %v160_v63 = vld [vmem:[%s877_s12 + $0x118] sm:$0xff] }
  0x2b   : > { %v760_v11 = vpack.c.bf16 %v580_v1, %v579_v61  ;;  %v549_v12 = vunpack.c.l.bf16 %v485_v2  ;;  %v550_v13 = vunpack.c.l.bf16 %v486_v3  ;;  %v214_v15 = vunpack.c.h.bf16 %v149_v60 }
  0x2c   : > { %v391_v16 = vpack.c.bf16 %v338_v6, %v337_v4  ;;  %v392_v17 = vpack.c.bf16 %v340_v8, %v339_v7  ;;  %v215_v18 = vunpack.c.l.bf16 %v150_v5  ;;  %v216_v19 = vunpack.c.h.bf16 %v150_v5 }
  0x2d   : > { %824 = vst [vmem:[%s897_s16 + $0x18] sm:$0xff] %v760_v11   ;;  %v581_v21 = vmax.f32 %v333_v44, %v549_v12  ;;  %v582_v22 = vmax.f32 %v335_v49, %v550_v13  ;;  %v277_v23 = vunpack.c.l.bf16 %v151_v9  ;;  %v278_v24 = vunpack.c.h.bf16 %v151_v9  ;;  %v157_v44 = vld [vmem:[%s877_s12 + $0x100] sm:$0xff]  ;;  %v162_v13 = vld [vmem:[%s877_s12 + $0x128] sm:$0xff] }
  0x2e   : > { %v487_v25 = vrot.slane %v391_v16, 4  ;;  %v488_v26 = vrot.slane %v392_v17, 4  ;;  %v279_v27 = vunpack.c.l.bf16 %v152_v14  ;;  %v280_v28 = vunpack.c.h.bf16 %v152_v14  ;;  %v163_v17 = vld [vmem:[%s877_s12 + $0x130] sm:$0xff] }
  0x2f   : > { %v765_v30 = vpack.c.bf16 %v582_v22, %v581_v21  ;;  %v341_v31 = vmax.f32 %v213_v10, %v277_v23  ;;  %v342_v32 = vmax.f32 %v214_v15, %v278_v24  ;;  %v217_v34 = vunpack.c.l.bf16 %v153_v20  ;;  %v164_v23 = vld [vmem:[%s877_s12 + $0x138] sm:$0xff] }
  0x30   : > { %v551_v35 = vunpack.c.l.bf16 %v487_v25  ;;  %v552_v36 = vunpack.c.l.bf16 %v488_v26  ;;  %v343_v37 = vmax.f32 %v215_v18, %v279_v27  ;;  %v344_v38 = vmax.f32 %v216_v19, %v280_v28 }
  0x31   : > { %825 = vst [vmem:[%s897_s16 + $0x20] sm:$0xff] %v765_v30   ;;  %v393_v40 = vpack.c.bf16 %v342_v32, %v341_v31  ;;  %v218_v41 = vunpack.c.h.bf16 %v153_v20  ;;  %v219_v42 = vunpack.c.l.bf16 %v154_v29  ;;  %v220_v43 = vunpack.c.h.bf16 %v154_v29  ;;  %v165_v32 = vld [vmem:[%s877_s12 + $0x140] sm:$0xff] }
  0x32   : > { %v583_v45 = vmax.f32 %v337_v4, %v551_v35  ;;  %v584_v46 = vmax.f32 %v339_v7, %v552_v36  ;;  %v394_v47 = vpack.c.bf16 %v344_v38, %v343_v37  ;;  %v281_v48 = vunpack.c.l.bf16 %v155_v33  ;;  %v161_v4 = vld [vmem:[%s877_s12 + $0x120] sm:$0xff] }
  0x33   : > { %v489_v49 = vrot.slane %v393_v40, 4  ;;  %v282_v50 = vunpack.c.h.bf16 %v155_v33  ;;  %v283_v51 = vunpack.c.l.bf16 %v156_v39  ;;  %v284_v52 = vunpack.c.h.bf16 %v156_v39 }
  0x34   : > { %v770_v54 = vpack.c.bf16 %v584_v46, %v583_v45  ;;  %v490_v55 = vrot.slane %v394_v47, 4  ;;  %v345_v56 = vmax.f32 %v217_v34, %v281_v48  ;;  %v221_v58 = vunpack.c.l.bf16 %v157_v44 }
  0x35   : > { %v553_v59 = vunpack.c.l.bf16 %v489_v49  ;;  %v346_v60 = vmax.f32 %v218_v41, %v282_v50  ;;  %v347_v61 = vmax.f32 %v219_v42, %v283_v51  ;;  %v348_v62 = vmax.f32 %v220_v43, %v284_v52  ;;  %v166_v41 = vld [vmem:[%s877_s12 + $0x148] sm:$0xff]  ;;  %v167_v42 = vld [vmem:[%s877_s12 + $0x150] sm:$0xff]  ;;  %v168_v50 = vld [vmem:[%s877_s12 + $0x158] sm:$0xff] }
  0x36   : > { %826 = vst [vmem:[%s897_s16 + $0x28] sm:$0xff] %v770_v54   ;;  %v554_v0 = vunpack.c.l.bf16 %v490_v55  ;;  %v222_v1 = vunpack.c.h.bf16 %v157_v44  ;;  %v223_v2 = vunpack.c.l.bf16 %v158_v53  ;;  %v224_v3 = vunpack.c.h.bf16 %v158_v53 }
  0x37   : > { %v585_v5 = vmax.f32 %v341_v31, %v553_v59  ;;  %v395_v6 = vpack.c.bf16 %v346_v60, %v345_v56  ;;  %v396_v7 = vpack.c.bf16 %v348_v62, %v347_v61  ;;  %v285_v8 = vunpack.c.l.bf16 %v159_v57 }
  0x38   : > { %v586_v9 = vmax.f32 %v343_v37, %v554_v0  ;;  %v286_v10 = vunpack.c.h.bf16 %v159_v57  ;;  %v287_v11 = vunpack.c.l.bf16 %v160_v63  ;;  %v288_v12 = vunpack.c.h.bf16 %v160_v63 }
  0x39   : > { %v491_v14 = vrot.slane %v395_v6, 4  ;;  %v492_v15 = vrot.slane %v396_v7, 4  ;;  %v349_v16 = vmax.f32 %v221_v58, %v285_v8  ;;  %v225_v18 = vunpack.c.l.bf16 %v161_v4 }
  0x3a   : > { %v775_v19 = vpack.c.bf16 %v586_v9, %v585_v5  ;;  %v350_v20 = vmax.f32 %v222_v1, %v286_v10  ;;  %v351_v21 = vmax.f32 %v223_v2, %v287_v11  ;;  %v352_v22 = vmax.f32 %v224_v3, %v288_v12  ;;  %v170_v1 = vld [vmem:[%s877_s12 + $0x168] sm:$0xff]  ;;  %v171_v5 = vld [vmem:[%s877_s12 + $0x170] sm:$0xff]  ;;  %v172_v10 = vld [vmem:[%s877_s12 + $0x178] sm:$0xff] }
  0x3b   : > { %v555_v24 = vunpack.c.l.bf16 %v491_v14  ;;  %v556_v25 = vunpack.c.l.bf16 %v492_v15  ;;  %v226_v26 = vunpack.c.h.bf16 %v161_v4  ;;  %v227_v27 = vunpack.c.l.bf16 %v162_v13 }
  0x3c   : > { %827 = vst [vmem:[%s897_s16 + $0x30] sm:$0xff] %v775_v19   ;;  %v397_v28 = vpack.c.bf16 %v350_v20, %v349_v16  ;;  %v398_v29 = vpack.c.bf16 %v352_v22, %v351_v21  ;;  %v228_v30 = vunpack.c.h.bf16 %v162_v13  ;;  %v289_v31 = vunpack.c.l.bf16 %v163_v17 }
  0x3d   : > { %v587_v33 = vmax.f32 %v345_v56, %v555_v24  ;;  %v588_v34 = vmax.f32 %v347_v61, %v556_v25  ;;  %v290_v35 = vunpack.c.h.bf16 %v163_v17  ;;  %v291_v36 = vunpack.c.l.bf16 %v164_v23  ;;  %v169_v56 = vld [vmem:[%s877_s12 + $0x160] sm:$0xff]  ;;  %v174_v25 = vld [vmem:[%s877_s12 + $0x188] sm:$0xff] }
  0x3e   : > { %v493_v37 = vrot.slane %v397_v28, 4  ;;  %v494_v38 = vrot.slane %v398_v29, 4  ;;  %v292_v39 = vunpack.c.h.bf16 %v164_v23  ;;  %v353_v40 = vmax.f32 %v225_v18, %v289_v31  ;;  %v175_v29 = vld [vmem:[%s877_s12 + $0x190] sm:$0xff] }
  0x3f   : > { %v780_v43 = vpack.c.bf16 %v588_v34, %v587_v33  ;;  %v354_v44 = vmax.f32 %v226_v26, %v290_v35  ;;  %v355_v45 = vmax.f32 %v227_v27, %v291_v36  ;;  %v229_v46 = vunpack.c.l.bf16 %v165_v32  ;;  %v176_v35 = vld [vmem:[%s877_s12 + $0x198] sm:$0xff] }
  0x40   : > { %v557_v47 = vunpack.c.l.bf16 %v493_v37  ;;  %v558_v48 = vunpack.c.l.bf16 %v494_v38  ;;  %v356_v49 = vmax.f32 %v228_v30, %v292_v39  ;;  %v230_v51 = vunpack.c.h.bf16 %v165_v32 }
  0x41   : > { %828 = vst [vmem:[%s897_s16 + $0x38] sm:$0xff] %v780_v43   ;;  %v399_v52 = vpack.c.bf16 %v354_v44, %v353_v40  ;;  %v231_v53 = vunpack.c.l.bf16 %v166_v41  ;;  %v232_v54 = vunpack.c.h.bf16 %v166_v41  ;;  %v293_v55 = vunpack.c.l.bf16 %v167_v42 }
  0x42   : > { %v589_v57 = vmax.f32 %v349_v16, %v557_v47  ;;  %v590_v58 = vmax.f32 %v351_v21, %v558_v48  ;;  %v400_v59 = vpack.c.bf16 %v356_v49, %v355_v45  ;;  %v294_v60 = vunpack.c.h.bf16 %v167_v42  ;;  %v173_v16 = vld [vmem:[%s877_s12 + $0x180] sm:$0xff]  ;;  %v178_v49 = vld [vmem:[%s877_s12 + $0x1a8] sm:$0xff] }
  0x43   : > { %v495_v61 = vrot.slane %v399_v52, 4  ;;  %v295_v62 = vunpack.c.l.bf16 %v168_v50  ;;  %v296_v63 = vunpack.c.h.bf16 %v168_v50  ;;  %v357_v0 = vmax.f32 %v229_v46, %v293_v55 }
  0x44   : > { %v785_v2 = vpack.c.bf16 %v590_v58, %v589_v57  ;;  %v496_v3 = vrot.slane %v400_v59, 4  ;;  %v358_v4 = vmax.f32 %v230_v51, %v294_v60  ;;  %v233_v6 = vunpack.c.l.bf16 %v169_v56  ;;  %v180_v59 = vld [vmem:[%s877_s12 + $0x1b8] sm:$0xff] }
  0x45   : > { %v559_v7 = vunpack.c.l.bf16 %v495_v61  ;;  %v359_v8 = vmax.f32 %v231_v53, %v295_v62  ;;  %v360_v9 = vmax.f32 %v232_v54, %v296_v63  ;;  %v234_v11 = vunpack.c.h.bf16 %v169_v56  ;;  %v179_v53 = vld [vmem:[%s877_s12 + $0x1b0] sm:$0xff] }
  0x46   : > { %829 = vst [vmem:[%s897_s16 + $0x40] sm:$0xff] %v785_v2   ;;  %v560_v12 = vunpack.c.l.bf16 %v496_v3  ;;  %v401_v13 = vpack.c.bf16 %v358_v4, %v357_v0  ;;  %v235_v14 = vunpack.c.l.bf16 %v170_v1  ;;  %v236_v15 = vunpack.c.h.bf16 %v170_v1 }
  0x47   : > { %v591_v17 = vmax.f32 %v353_v40, %v559_v7  ;;  %v402_v18 = vpack.c.bf16 %v360_v9, %v359_v8  ;;  %v297_v19 = vunpack.c.l.bf16 %v171_v5  ;;  %v298_v20 = vunpack.c.h.bf16 %v171_v5  ;;  %v177_v40 = vld [vmem:[%s877_s12 + $0x1a0] sm:$0xff]  ;;  %v182_v9 = vld [vmem:[%s877_s12 + $0x1c8] sm:$0xff] }
  0x48   : > { %v592_v21 = vmax.f32 %v355_v45, %v560_v12  ;;  %v497_v22 = vrot.slane %v401_v13, 4  ;;  %v299_v23 = vunpack.c.l.bf16 %v172_v10  ;;  %v300_v24 = vunpack.c.h.bf16 %v172_v10  ;;  %v183_v13 = vld [vmem:[%s877_s12 + $0x1d0] sm:$0xff] }
  0x49   : > { %v498_v26 = vrot.slane %v402_v18, 4  ;;  %v361_v27 = vmax.f32 %v233_v6, %v297_v19  ;;  %v362_v28 = vmax.f32 %v234_v11, %v298_v20  ;;  %v237_v30 = vunpack.c.l.bf16 %v173_v16  ;;  %v184_v19 = vld [vmem:[%s877_s12 + $0x1d8] sm:$0xff] }
  0x4a   : > { %v790_v31 = vpack.c.bf16 %v592_v21, %v591_v17  ;;  %v561_v32 = vunpack.c.l.bf16 %v497_v22  ;;  %v363_v33 = vmax.f32 %v235_v14, %v299_v23  ;;  %v364_v34 = vmax.f32 %v236_v15, %v300_v24 }
  0x4b   : > { %v562_v36 = vunpack.c.l.bf16 %v498_v26  ;;  %v403_v37 = vpack.c.bf16 %v362_v28, %v361_v27  ;;  %v238_v38 = vunpack.c.h.bf16 %v173_v16  ;;  %v239_v39 = vunpack.c.l.bf16 %v174_v25  ;;  %v185_v28 = vld [vmem:[%s877_s12 + $0x1e0] sm:$0xff] }
  0x4c   : > { %830 = vst [vmem:[%s897_s16 + $0x48] sm:$0xff] %v790_v31   ;;  %v593_v41 = vmax.f32 %v357_v0, %v561_v32  ;;  %v404_v42 = vpack.c.bf16 %v364_v34, %v363_v33  ;;  %v240_v43 = vunpack.c.h.bf16 %v174_v25  ;;  %v301_v44 = vunpack.c.l.bf16 %v175_v29  ;;  %v181_v0 = vld [vmem:[%s877_s12 + $0x1c0] sm:$0xff] }
  0x4d   : > { %v594_v45 = vmax.f32 %v359_v8, %v562_v36  ;;  %v499_v46 = vrot.slane %v403_v37, 4  ;;  %v302_v47 = vunpack.c.h.bf16 %v175_v29  ;;  %v303_v48 = vunpack.c.l.bf16 %v176_v35  ;;  %v186_v37 = vld [vmem:[%s877_s12 + $0x1e8] sm:$0xff] }
  0x4e   : > { %v500_v50 = vrot.slane %v404_v42, 4  ;;  %v304_v51 = vunpack.c.h.bf16 %v176_v35  ;;  %v365_v52 = vmax.f32 %v237_v30, %v301_v44  ;;  %v241_v54 = vunpack.c.l.bf16 %v177_v40 }
  0x4f   : > { %v795_v55 = vpack.c.bf16 %v594_v45, %v593_v41  ;;  %v563_v56 = vunpack.c.l.bf16 %v499_v46  ;;  %v366_v57 = vmax.f32 %v238_v38, %v302_v47  ;;  %v367_v58 = vmax.f32 %v239_v39, %v303_v48  ;;  %v187_v41 = vld [vmem:[%s877_s12 + $0x1f0] sm:$0xff]  ;;  %v188_v46 = vld [vmem:[%s877_s12 + $0x1f8] sm:$0xff] }
  0x50   : > { %v564_v60 = vunpack.c.l.bf16 %v500_v50  ;;  %v368_v61 = vmax.f32 %v240_v43, %v304_v51  ;;  %v242_v62 = vunpack.c.h.bf16 %v177_v40  ;;  %v243_v63 = vunpack.c.l.bf16 %v178_v49 }
  0x51   : > { %831 = vst [vmem:[%s897_s16 + $0x50] sm:$0xff] %v795_v55   ;;  %v595_v1 = vmax.f32 %v361_v27, %v563_v56  ;;  %v405_v2 = vpack.c.bf16 %v366_v57, %v365_v52  ;;  %v244_v3 = vunpack.c.h.bf16 %v178_v49  ;;  %v305_v4 = vunpack.c.l.bf16 %v179_v53 }
  0x52   : > { %v596_v5 = vmax.f32 %v363_v33, %v564_v60  ;;  %v406_v6 = vpack.c.bf16 %v368_v61, %v367_v58  ;;  %v306_v7 = vunpack.c.h.bf16 %v179_v53  ;;  %v307_v8 = vunpack.c.l.bf16 %v180_v59 }
  0x53   : > { %v501_v10 = vrot.slane %v405_v2, 4  ;;  %v308_v11 = vunpack.c.h.bf16 %v180_v59  ;;  %v369_v12 = vmax.f32 %v241_v54, %v305_v4  ;;  %v245_v14 = vunpack.c.l.bf16 %v181_v0 }
  0x54   : > { %v800_v15 = vpack.c.bf16 %v596_v5, %v595_v1  ;;  %v502_v16 = vrot.slane %v406_v6, 4  ;;  %v370_v17 = vmax.f32 %v242_v62, %v306_v7  ;;  %v371_v18 = vmax.f32 %v243_v63, %v307_v8 }
  0x55   : > { %v565_v20 = vunpack.c.l.bf16 %v501_v10  ;;  %v372_v21 = vmax.f32 %v244_v3, %v308_v11  ;;  %v246_v22 = vunpack.c.h.bf16 %v181_v0  ;;  %v247_v23 = vunpack.c.l.bf16 %v182_v9 }
  0x56   : > { %832 = vst [vmem:[%s897_s16 + $0x58] sm:$0xff] %v800_v15   ;;  %v566_v24 = vunpack.c.l.bf16 %v502_v16  ;;  %v407_v25 = vpack.c.bf16 %v370_v17, %v369_v12  ;;  %v248_v26 = vunpack.c.h.bf16 %v182_v9  ;;  %v309_v27 = vunpack.c.l.bf16 %v183_v13 }
  0x57   : > { %v597_v29 = vmax.f32 %v365_v52, %v565_v20  ;;  %v408_v30 = vpack.c.bf16 %v372_v21, %v371_v18  ;;  %v310_v31 = vunpack.c.h.bf16 %v183_v13  ;;  %v311_v32 = vunpack.c.l.bf16 %v184_v19 }
  0x58   : > { %v598_v33 = vmax.f32 %v367_v58, %v566_v24  ;;  %v503_v34 = vrot.slane %v407_v25, 4  ;;  %v312_v35 = vunpack.c.h.bf16 %v184_v19  ;;  %v373_v36 = vmax.f32 %v245_v14, %v309_v27 }
  0x59   : > { %v504_v38 = vrot.slane %v408_v30, 4  ;;  %v374_v39 = vmax.f32 %v246_v22, %v310_v31  ;;  %v375_v40 = vmax.f32 %v247_v23, %v311_v32  ;;  %v249_v42 = vunpack.c.l.bf16 %v185_v28 }
  0x5a   : > { %v805_v43 = vpack.c.bf16 %v598_v33, %v597_v29  ;;  %v567_v44 = vunpack.c.l.bf16 %v503_v34  ;;  %v376_v45 = vmax.f32 %v248_v26, %v312_v35  ;;  %v250_v47 = vunpack.c.h.bf16 %v185_v28 }
  0x5b   : > { %v568_v48 = vunpack.c.l.bf16 %v504_v38  ;;  %v409_v49 = vpack.c.bf16 %v374_v39, %v373_v36  ;;  %v251_v50 = vunpack.c.l.bf16 %v186_v37  ;;  %v252_v51 = vunpack.c.h.bf16 %v186_v37 }
  0x5c   : > { %833 = vst [vmem:[%s897_s16 + $0x60] sm:$0xff] %v805_v43   ;;  %v599_v52 = vmax.f32 %v369_v12, %v567_v44  ;;  %v410_v53 = vpack.c.bf16 %v376_v45, %v375_v40  ;;  %v313_v54 = vunpack.c.l.bf16 %v187_v41  ;;  %v314_v55 = vunpack.c.h.bf16 %v187_v41 }
  0x5d   : > { %v600_v56 = vmax.f32 %v371_v18, %v568_v48  ;;  %v505_v57 = vrot.slane %v409_v49, 4  ;;  %v315_v58 = vunpack.c.l.bf16 %v188_v46  ;;  %v316_v59 = vunpack.c.h.bf16 %v188_v46 }
  0x5e   : > { %v506_v60 = vrot.slane %v410_v53, 4  ;;  %v377_v61 = vmax.f32 %v249_v42, %v313_v54  ;;  %v378_v62 = vmax.f32 %v250_v47, %v314_v55 }
  0x5f   : > { %v810_v63 = vpack.c.bf16 %v600_v56, %v599_v52  ;;  %v569_v0 = vunpack.c.l.bf16 %v505_v57  ;;  %v379_v1 = vmax.f32 %v251_v50, %v315_v58  ;;  %v380_v2 = vmax.f32 %v252_v51, %v316_v59 }
  0x60   : > { %v570_v3 = vunpack.c.l.bf16 %v506_v60  ;;  %v411_v4 = vpack.c.bf16 %v378_v62, %v377_v61 }
  0x61   : > { %834 = vst [vmem:[%s897_s16 + $0x68] sm:$0xff] %v810_v63   ;;  %v601_v5 = vmax.f32 %v373_v36, %v569_v0  ;;  %v412_v6 = vpack.c.bf16 %v380_v2, %v379_v1 }
  0x62   : > { %v602_v7 = vmax.f32 %v375_v40, %v570_v3  ;;  %v507_v8 = vrot.slane %v411_v4, 4 }
  0x63   : > { %v508_v9 = vrot.slane %v412_v6, 4 }
  0x64   : > { %v815_v10 = vpack.c.bf16 %v602_v7, %v601_v5  ;;  %v571_v11 = vunpack.c.l.bf16 %v507_v8 }
  0x65   : > { %v572_v12 = vunpack.c.l.bf16 %v508_v9 }
  0x66   : > { %835 = vst [vmem:[%s897_s16 + $0x70] sm:$0xff] %v815_v10   ;;  %v603_v13 = vmax.f32 %v377_v61, %v571_v11 }
  0x67   : > { %v604_v14 = vmax.f32 %v379_v1, %v572_v12 }
  0x69   : > { %v820_v15 = vpack.c.bf16 %v604_v14, %v603_v13 }
  0x6b   : > { %836 = vst [vmem:[%s897_s16 + $0x78] sm:$0xff] %v820_v15  }
  0x6c PF: > { %s11_s6 = sadd.s32 1, %s851_s6  }
  0x6d   : > { %p8_p4 = scmp.ge.s32.totalorder %s11_s6, 4  }
  0x6f   :  { %10 = sbr.rel (!%p8_p4) target bundleno = 1 (0x1), region = 54 }

// kernel: forward.6
= control target key start
LH: loop header
LB: loop body
LE: loop exit
PB: predicated region body
PF: predicated region fallthrough
CT: control target
= control target key end

     0   :  { %s2734_s12 = smov 0   ;;  %s2736_s13 = smov 0   ;;  %s3209_s0 = inlined_call_operand.vmem [shape: bf16[2048,128], index: 0, kind: input, shape index: {}]   ;;  %s3210_s1 = inlined_call_operand.vmem [shape: bf16[128,128], index: 1, kind: input, shape index: {}]   ;;  %s3211_s2 = inlined_call_operand.vmem [shape: f32[2,128], index: 2, kind: input, shape index: {}]   ;;  %s3212_s3 = inlined_call_operand.vmem [shape: bf16[2048,128], index: 3, kind: output, shape index: {}]  }
   0x1   :  { %s2738_s14 = smov 0  }
   0x2 LB: > { %s25_s15 = sadd.s32 1, %s2708_s13  ;;  %p1888_p0 = scmp.ge.s32.totalorder %s2712_s14, 1  ;;  %s2712_s14 = sphi %s2738_s14, %s13_s14   ;;  %s2708_s13 = sphi %s2736_s13, %s3214_s13   ;;  %s2704_s12 = sphi %s2734_s12, %s3213_s12  }
   0x3   : > { %p27_p1 = scmp.ge.s32.totalorder %s25_s15, 2  ;;  %p170_p2 = scmp.lt.s32.totalorder %s2712_s14, 3 }
   0x5   : > { %s3216_s15 = smov (%p27_p1, %s25_s15), 0  ;;  %p171_p3 = pnand %p1888_p0, %p170_p2 }
   0x6   : > { %s1889_s24 = sshll.u32 (!%p171_p3), %s2704_s12, 7 }
   0x7   : > { %174 = sbr.rel (%p171_p3) target bundleno = 435 (0x1b3), region = 32  ;;  %p206_p4 = scmp.lt.s32.totalorder (!%p171_p3), %s1889_s24, 255 }
   0xc   : > { %v2254_v0 = vld [vmem:[%s3210_s1 + $0x38] sm:$0xff]  ;;  %v2253_v1 = vld [vmem:[%s3210_s1 + $0x30] sm:$0xff]  ;;  %v2252_v2 = vld [vmem:[%s3210_s1 + $0x28] sm:$0xff]  ;;  %s3218_s24 = smov (!%p206_p4, %s1889_s24), 255 }
   0xd   : > { %804 = vmatpush.bf16.msra.mxu0 %v2254_v0  ;;  %2638 = vmatpush.bf16.msra.mxu1 %v2254_v0  ;;  %v2251_v3 = vld [vmem:[%s3210_s1 + $0x20] sm:$0xff]  ;;  %v2250_v4 = vld [vmem:[%s3210_s1 + $0x18] sm:$0xff]  ;;  %v2249_v5 = vld [vmem:[%s3210_s1 + $0x10] sm:$0xff]  ;;  %s1890_s4 = sshll.u32 %s3218_s24, 2 }
   0xe   : > { %2639 = vmatpush.bf16.msra.mxu2 %v2254_v0  ;;  %2640 = vmatpush.bf16.msra.mxu3 %v2254_v0  ;;  %v2248_v6 = vld [vmem:[%s3210_s1 + $0x8] sm:$0xff]  ;;  %v2247_v7 = vld [vmem:[%s3210_s1] sm:$0xff]  ;;  %s2787_s9 = scalar_lea.vmem %s3209_s0, %s1890_s4  ;;  %s2850_s19 = scalar_lea.vmem %s3212_s3, %s1890_s4 }
   0xf   : > { %v2183_v8 = vld [vmem:[%s2787_s9] sm:$0xff]  ;;  %v2184_v12 = vld [vmem:[%s2787_s9 + $0x8] sm:$0xff]  ;;  %v2185_v16 = vld [vmem:[%s2787_s9 + $0x10] sm:$0xff] }
  0x10   : > { %v2199_v9 = vld [vmem:[%s2787_s9 + $0x80] sm:$0xff]  ;;  %v2200_v13 = vld [vmem:[%s2787_s9 + $0x88] sm:$0xff]  ;;  %v2201_v17 = vld [vmem:[%s2787_s9 + $0x90] sm:$0xff] }
  0x11   : > { %805 = vmatpush.bf16.msra.mxu0 %v2253_v1  ;;  %2641 = vmatpush.bf16.msra.mxu1 %v2253_v1  ;;  %v2215_v10 = vld [vmem:[%s2787_s9 + $0x100] sm:$0xff]  ;;  %v2216_v14 = vld [vmem:[%s2787_s9 + $0x108] sm:$0xff]  ;;  %v2217_v18 = vld [vmem:[%s2787_s9 + $0x110] sm:$0xff] }
  0x12   : > { %2642 = vmatpush.bf16.msra.mxu2 %v2253_v1  ;;  %2643 = vmatpush.bf16.msra.mxu3 %v2253_v1  ;;  %v2231_v11 = vld [vmem:[%s2787_s9 + $0x180] sm:$0xff]  ;;  %v2232_v15 = vld [vmem:[%s2787_s9 + $0x188] sm:$0xff]  ;;  %v2233_v19 = vld [vmem:[%s2787_s9 + $0x190] sm:$0xff] }
  0x13   : > { %v2186_v20 = vld [vmem:[%s2787_s9 + $0x18] sm:$0xff]  ;;  %v2187_v24 = vld [vmem:[%s2787_s9 + $0x20] sm:$0xff]  ;;  %v2188_v28 = vld [vmem:[%s2787_s9 + $0x28] sm:$0xff] }
  0x14   : > { %v2202_v21 = vld [vmem:[%s2787_s9 + $0x98] sm:$0xff]  ;;  %v2203_v25 = vld [vmem:[%s2787_s9 + $0xa0] sm:$0xff]  ;;  %v2204_v29 = vld [vmem:[%s2787_s9 + $0xa8] sm:$0xff] }
  0x15   : > { %806 = vmatpush.bf16.msra.mxu0 %v2252_v2  ;;  %2644 = vmatpush.bf16.msra.mxu1 %v2252_v2  ;;  %v2218_v22 = vld [vmem:[%s2787_s9 + $0x118] sm:$0xff]  ;;  %v2219_v26 = vld [vmem:[%s2787_s9 + $0x120] sm:$0xff]  ;;  %v2220_v30 = vld [vmem:[%s2787_s9 + $0x128] sm:$0xff] }
  0x16   : > { %2645 = vmatpush.bf16.msra.mxu2 %v2252_v2  ;;  %2646 = vmatpush.bf16.msra.mxu3 %v2252_v2  ;;  %v2234_v23 = vld [vmem:[%s2787_s9 + $0x198] sm:$0xff]  ;;  %v2235_v27 = vld [vmem:[%s2787_s9 + $0x1a0] sm:$0xff]  ;;  %v2236_v31 = vld [vmem:[%s2787_s9 + $0x1a8] sm:$0xff] }
  0x17   : > { %v2189_v32 = vld [vmem:[%s2787_s9 + $0x30] sm:$0xff]  ;;  %v2190_v36 = vld [vmem:[%s2787_s9 + $0x38] sm:$0xff]  ;;  %v2191_v40 = vld [vmem:[%s2787_s9 + $0x40] sm:$0xff] }
  0x18   : > { %v2205_v33 = vld [vmem:[%s2787_s9 + $0xb0] sm:$0xff]  ;;  %v2206_v37 = vld [vmem:[%s2787_s9 + $0xb8] sm:$0xff]  ;;  %v2207_v41 = vld [vmem:[%s2787_s9 + $0xc0] sm:$0xff] }
  0x19   : > { %807 = vmatpush.bf16.msra.mxu0 %v2251_v3  ;;  %2647 = vmatpush.bf16.msra.mxu1 %v2251_v3  ;;  %v2221_v34 = vld [vmem:[%s2787_s9 + $0x130] sm:$0xff]  ;;  %v2222_v38 = vld [vmem:[%s2787_s9 + $0x138] sm:$0xff]  ;;  %v2223_v44 = vld [vmem:[%s2787_s9 + $0x140] sm:$0xff] }
  0x1a   : > { %2648 = vmatpush.bf16.msra.mxu2 %v2251_v3  ;;  %2649 = vmatpush.bf16.msra.mxu3 %v2251_v3  ;;  %v2237_v35 = vld [vmem:[%s2787_s9 + $0x1b0] sm:$0xff]  ;;  %v2238_v39 = vld [vmem:[%s2787_s9 + $0x1b8] sm:$0xff]  ;;  %v2239_v45 = vld [vmem:[%s2787_s9 + $0x1c0] sm:$0xff] }
  0x1b   : > { %v2828_v46 = vld [vmem:[%s3211_s2] ss:$0 sm:$0xff]  ;;  %v2834_v48 = vld [vmem:[%s3211_s2 + $0x1] ss:$0 sm:$0xff] }
  0x1d   : > { %808 = vmatpush.bf16.msra.mxu0 %v2250_v4  ;;  %2650 = vmatpush.bf16.msra.mxu1 %v2250_v4 }
  0x1e   : > { %2651 = vmatpush.bf16.msra.mxu2 %v2250_v4  ;;  %2652 = vmatpush.bf16.msra.mxu3 %v2250_v4 }
  0x21   : > { %809 = vmatpush.bf16.msra.mxu0 %v2249_v5  ;;  %2653 = vmatpush.bf16.msra.mxu1 %v2249_v5 }
  0x22   : > { %2654 = vmatpush.bf16.msra.mxu2 %v2249_v5  ;;  %2655 = vmatpush.bf16.msra.mxu3 %v2249_v5 }
  0x25   : > { %810 = vmatpush.bf16.msra.mxu0 %v2248_v6  ;;  %2656 = vmatpush.bf16.msra.mxu1 %v2248_v6 }
  0x26   : > { %2657 = vmatpush.bf16.msra.mxu2 %v2248_v6  ;;  %2658 = vmatpush.bf16.msra.mxu3 %v2248_v6  ;;  %v2192_v6 = vld [vmem:[%s2787_s9 + $0x48] sm:$0xff] }
  0x29   : > { %811 = vmatpush.bf16.msra.mxu0 %v2247_v7  ;;  %2659 = vmatpush.bf16.msra.mxu1 %v2247_v7 }
  0x2a   : > { %2660 = vmatpush.bf16.msra.mxu2 %v2247_v7  ;;  %2661 = vmatpush.bf16.msra.mxu3 %v2247_v7  ;;  %v2208_v7 = vld [vmem:[%s2787_s9 + $0xc8] sm:$0xff] }
  0x2c   : > { %812 = vmatmul.bf16.vlgmr.msra.gmra.mxu0 %v2183_v8  ;;  %892 = vmatmul.bf16.vlgmr.msra.gmra.mxu1 %v2199_v9 }
  0x2d   : > { %972 = vmatmul.bf16.vlgmr.msra.gmra.mxu2 %v2215_v10  ;;  %1052 = vmatmul.bf16.vlgmr.msra.gmra.mxu3 %v2231_v11 }
  0x3c   : > { %817 = vmatmul.bf16.gmra.mxu0 %v2184_v12  ;;  %897 = vmatmul.bf16.gmra.mxu1 %v2200_v13 }
  0x3d   : > { %977 = vmatmul.bf16.gmra.mxu2 %v2216_v14  ;;  %1057 = vmatmul.bf16.gmra.mxu3 %v2232_v15  ;;  %v2224_v14 = vld [vmem:[%s2787_s9 + $0x148] sm:$0xff] }
  0x3e   : > { %v2240_v15 = vld [vmem:[%s2787_s9 + $0x1c8] sm:$0xff] }
  0x4c   : > { %822 = vmatmul.bf16.gmra.mxu0 %v2185_v16  ;;  %902 = vmatmul.bf16.gmra.mxu1 %v2201_v17 }
  0x4d   : > { %982 = vmatmul.bf16.gmra.mxu2 %v2217_v18  ;;  %1062 = vmatmul.bf16.gmra.mxu3 %v2233_v19 }
  0x5c   : > { %827 = vmatmul.bf16.gmra.mxu0 %v2186_v20  ;;  %907 = vmatmul.bf16.gmra.mxu1 %v2202_v21 }
  0x5d   : > { %987 = vmatmul.bf16.gmra.mxu2 %v2218_v22  ;;  %1067 = vmatmul.bf16.gmra.mxu3 %v2234_v23 }
  0x6c   : > { %832 = vmatmul.bf16.gmra.mxu0 %v2187_v24  ;;  %912 = vmatmul.bf16.gmra.mxu1 %v2203_v25 }
  0x6d   : > { %992 = vmatmul.bf16.gmra.mxu2 %v2219_v26  ;;  %1072 = vmatmul.bf16.gmra.mxu3 %v2235_v27 }
  0x7c   : > { %837 = vmatmul.bf16.gmra.mxu0 %v2188_v28  ;;  %917 = vmatmul.bf16.gmra.mxu1 %v2204_v29 }
  0x7d   : > { %997 = vmatmul.bf16.gmra.mxu2 %v2220_v30  ;;  %1077 = vmatmul.bf16.gmra.mxu3 %v2236_v31 }
  0x8c   : > { %842 = vmatmul.bf16.gmra.mxu0 %v2189_v32  ;;  %922 = vmatmul.bf16.gmra.mxu1 %v2205_v33 }
  0x8d   : > { %1002 = vmatmul.bf16.gmra.mxu2 %v2221_v34  ;;  %1082 = vmatmul.bf16.gmra.mxu3 %v2237_v35 }
  0x9c   : > { %847 = vmatmul.bf16.gmra.mxu0 %v2190_v36  ;;  %927 = vmatmul.bf16.gmra.mxu1 %v2206_v37 }
  0x9d   : > { %1007 = vmatmul.bf16.gmra.mxu2 %v2222_v38  ;;  %1087 = vmatmul.bf16.gmra.mxu3 %v2238_v39 }
  0xa9   : > { %v813_v42 = vpop.f32.mrf.mxu0  ;;  %v893_v43 = vpop.f32.mrf.mxu1 }
  0xaa   : > { %v1135_v47 = vmul.f32 %v2828_v46, %v813_v42  ;;  %v1167_v49 = vmul.f32 %v2828_v46, %v893_v43 }
  0xac   : > { %852 = vmatmul.bf16.gmra.mxu0 %v2191_v40  ;;  %932 = vmatmul.bf16.gmra.mxu1 %v2207_v41  ;;  %v1265_v54 = vadd.f32 %v2834_v48, %v1135_v47  ;;  %v1297_v55 = vadd.f32 %v2834_v48, %v1167_v49  ;;  %v2193_v47 = vld [vmem:[%s2787_s9 + $0x50] sm:$0xff] }
  0xad   : > { %1012 = vmatmul.bf16.gmra.mxu2 %v2223_v44  ;;  %1092 = vmatmul.bf16.gmra.mxu3 %v2239_v45  ;;  %v2209_v49 = vld [vmem:[%s2787_s9 + $0xd0] sm:$0xff] }
  0xae   : > { %v1393_v62 = vmax.f32 %v1265_v54, 0.0  ;;  %v1425_v63 = vmax.f32 %v1297_v55, 0.0 }
  0xb0   : > { %v973_v50 = vpop.f32.mrf.mxu2  ;;  %v1053_v51 = vpop.f32.mrf.mxu3 }
  0xb1   : > { %v815_v52 = vpop.f32.mrf.mxu0  ;;  %v895_v53 = vpop.f32.mrf.mxu1  ;;  %v1199_v60 = vmul.f32 %v2828_v46, %v973_v50  ;;  %v1231_v61 = vmul.f32 %v2828_v46, %v1053_v51 }
  0xb2   : > { %v1136_v56 = vmul.f32 %v2828_v46, %v815_v52  ;;  %v1168_v57 = vmul.f32 %v2828_v46, %v895_v53 }
  0xb3   : > { %v1329_v8 = vadd.f32 %v2834_v48, %v1199_v60  ;;  %v1361_v9 = vadd.f32 %v2834_v48, %v1231_v61 }
  0xb4   : > { %v1266_v58 = vadd.f32 %v2834_v48, %v1136_v56  ;;  %v1298_v59 = vadd.f32 %v2834_v48, %v1168_v57  ;;  %v2225_v56 = vld [vmem:[%s2787_s9 + $0x150] sm:$0xff] }
  0xb5   : > { %v1457_v18 = vmax.f32 %v1329_v8, 0.0  ;;  %v1489_v19 = vmax.f32 %v1361_v9, 0.0  ;;  %v2241_v57 = vld [vmem:[%s2787_s9 + $0x1d0] sm:$0xff] }
  0xb6   : > { %v1394_v0 = vmax.f32 %v1266_v58, 0.0  ;;  %v1426_v1 = vmax.f32 %v1298_v59, 0.0 }
  0xb8   : > { %v2258_v2 = vpack.c.bf16 %v1394_v0, %v1393_v62  ;;  %v2338_v3 = vpack.c.bf16 %v1426_v1, %v1425_v63  ;;  %v975_v4 = vpop.f32.mrf.mxu2  ;;  %v1055_v5 = vpop.f32.mrf.mxu3 }
  0xb9   : > { %v1200_v10 = vmul.f32 %v2828_v46, %v975_v4  ;;  %v1232_v11 = vmul.f32 %v2828_v46, %v1055_v5  ;;  %v818_v12 = vpop.f32.mrf.mxu0  ;;  %v898_v13 = vpop.f32.mrf.mxu1 }
  0xba   : > { %2259 = vst [vmem:[%s2850_s19] sm:$0xff] %v2258_v2   ;;  %v1137_v22 = vmul.f32 %v2828_v46, %v818_v12  ;;  %v1169_v23 = vmul.f32 %v2828_v46, %v898_v13 }
  0xbb   : > { %2590 = vst [vmem:[%s2850_s19 + $0x80] sm:$0xff] %v2338_v3   ;;  %v1330_v16 = vadd.f32 %v2834_v48, %v1200_v10  ;;  %v1362_v17 = vadd.f32 %v2834_v48, %v1232_v11 }
  0xbc   : > { %857 = vmatmul.bf16.gmra.mxu0 %v2192_v6  ;;  %937 = vmatmul.bf16.gmra.mxu1 %v2208_v7  ;;  %v1267_v30 = vadd.f32 %v2834_v48, %v1137_v22  ;;  %v1299_v31 = vadd.f32 %v2834_v48, %v1169_v23 }
  0xbd   : > { %v1458_v20 = vmax.f32 %v1330_v16, 0.0  ;;  %v1490_v21 = vmax.f32 %v1362_v17, 0.0  ;;  %1017 = vmatmul.bf16.gmra.mxu2 %v2224_v14  ;;  %1097 = vmatmul.bf16.gmra.mxu3 %v2240_v15 }
  0xbe   : > { %v1395_v38 = vmax.f32 %v1267_v30, 0.0  ;;  %v1427_v39 = vmax.f32 %v1299_v31, 0.0 }
  0xbf   : > { %v2418_v24 = vpack.c.bf16 %v1458_v20, %v1457_v18  ;;  %v2498_v25 = vpack.c.bf16 %v1490_v21, %v1489_v19 }
  0xc0   : > { %v978_v26 = vpop.f32.mrf.mxu2  ;;  %v1058_v27 = vpop.f32.mrf.mxu3 }
  0xc1   : > { %2606 = vst [vmem:[%s2850_s19 + $0x100] sm:$0xff] %v2418_v24   ;;  %v820_v28 = vpop.f32.mrf.mxu0  ;;  %v900_v29 = vpop.f32.mrf.mxu1  ;;  %v1201_v36 = vmul.f32 %v2828_v46, %v978_v26  ;;  %v1233_v37 = vmul.f32 %v2828_v46, %v1058_v27  ;;  %v2194_v24 = vld [vmem:[%s2787_s9 + $0x58] sm:$0xff] }
  0xc2   : > { %2622 = vst [vmem:[%s2850_s19 + $0x180] sm:$0xff] %v2498_v25   ;;  %v1138_v32 = vmul.f32 %v2828_v46, %v820_v28  ;;  %v1170_v33 = vmul.f32 %v2828_v46, %v900_v29  ;;  %v2210_v25 = vld [vmem:[%s2787_s9 + $0xd8] sm:$0xff] }
  0xc3   : > { %v1331_v50 = vadd.f32 %v2834_v48, %v1201_v36  ;;  %v1363_v51 = vadd.f32 %v2834_v48, %v1233_v37 }
  0xc4   : > { %v1268_v34 = vadd.f32 %v2834_v48, %v1138_v32  ;;  %v1300_v35 = vadd.f32 %v2834_v48, %v1170_v33  ;;  %v2226_v32 = vld [vmem:[%s2787_s9 + $0x158] sm:$0xff] }
  0xc5   : > { %v1459_v60 = vmax.f32 %v1331_v50, 0.0  ;;  %v1491_v61 = vmax.f32 %v1363_v51, 0.0  ;;  %v2242_v33 = vld [vmem:[%s2787_s9 + $0x1d8] sm:$0xff] }
  0xc6   : > { %v1396_v40 = vmax.f32 %v1268_v34, 0.0  ;;  %v1428_v41 = vmax.f32 %v1300_v35, 0.0 }
  0xc8   : > { %v2263_v42 = vpack.c.bf16 %v1396_v40, %v1395_v38  ;;  %v2343_v43 = vpack.c.bf16 %v1428_v41, %v1427_v39  ;;  %v980_v44 = vpop.f32.mrf.mxu2  ;;  %v1060_v45 = vpop.f32.mrf.mxu3 }
  0xc9   : > { %v1202_v52 = vmul.f32 %v2828_v46, %v980_v44  ;;  %v1234_v53 = vmul.f32 %v2828_v46, %v1060_v45  ;;  %v823_v54 = vpop.f32.mrf.mxu0  ;;  %v903_v55 = vpop.f32.mrf.mxu1 }
  0xca   : > { %2575 = vst [vmem:[%s2850_s19 + $0x8] sm:$0xff] %v2263_v42   ;;  %v1139_v0 = vmul.f32 %v2828_v46, %v823_v54  ;;  %v1171_v1 = vmul.f32 %v2828_v46, %v903_v55 }
  0xcb   : > { %2591 = vst [vmem:[%s2850_s19 + $0x88] sm:$0xff] %v2343_v43   ;;  %v1332_v58 = vadd.f32 %v2834_v48, %v1202_v52  ;;  %v1364_v59 = vadd.f32 %v2834_v48, %v1234_v53 }
  0xcc   : > { %862 = vmatmul.bf16.gmra.mxu0 %v2193_v47  ;;  %942 = vmatmul.bf16.gmra.mxu1 %v2209_v49  ;;  %v1269_v8 = vadd.f32 %v2834_v48, %v1139_v0  ;;  %v1301_v9 = vadd.f32 %v2834_v48, %v1171_v1 }
  0xcd   : > { %v1460_v62 = vmax.f32 %v1332_v58, 0.0  ;;  %v1492_v63 = vmax.f32 %v1364_v59, 0.0  ;;  %1022 = vmatmul.bf16.gmra.mxu2 %v2225_v56  ;;  %1102 = vmatmul.bf16.gmra.mxu3 %v2241_v57 }
  0xce   : > { %v1397_v16 = vmax.f32 %v1269_v8, 0.0  ;;  %v1429_v17 = vmax.f32 %v1301_v9, 0.0 }
  0xcf   : > { %v2423_v2 = vpack.c.bf16 %v1460_v62, %v1459_v60  ;;  %v2503_v3 = vpack.c.bf16 %v1492_v63, %v1491_v61 }
  0xd0   : > { %v983_v4 = vpop.f32.mrf.mxu2  ;;  %v1063_v5 = vpop.f32.mrf.mxu3 }
  0xd1   : > { %2607 = vst [vmem:[%s2850_s19 + $0x108] sm:$0xff] %v2423_v2   ;;  %v825_v6 = vpop.f32.mrf.mxu0  ;;  %v905_v7 = vpop.f32.mrf.mxu1  ;;  %v1203_v14 = vmul.f32 %v2828_v46, %v983_v4  ;;  %v1235_v15 = vmul.f32 %v2828_v46, %v1063_v5  ;;  %v2195_v2 = vld [vmem:[%s2787_s9 + $0x60] sm:$0xff] }
  0xd2   : > { %2623 = vst [vmem:[%s2850_s19 + $0x188] sm:$0xff] %v2503_v3   ;;  %v1140_v10 = vmul.f32 %v2828_v46, %v825_v6  ;;  %v1172_v11 = vmul.f32 %v2828_v46, %v905_v7  ;;  %v2211_v3 = vld [vmem:[%s2787_s9 + $0xe0] sm:$0xff] }
  0xd3   : > { %v1333_v26 = vadd.f32 %v2834_v48, %v1203_v14  ;;  %v1365_v27 = vadd.f32 %v2834_v48, %v1235_v15 }
  0xd4   : > { %v1270_v12 = vadd.f32 %v2834_v48, %v1140_v10  ;;  %v1302_v13 = vadd.f32 %v2834_v48, %v1172_v11  ;;  %v2227_v10 = vld [vmem:[%s2787_s9 + $0x160] sm:$0xff] }
  0xd5   : > { %v1461_v36 = vmax.f32 %v1333_v26, 0.0  ;;  %v1493_v37 = vmax.f32 %v1365_v27, 0.0  ;;  %v2243_v11 = vld [vmem:[%s2787_s9 + $0x1e0] sm:$0xff] }
  0xd6   : > { %v1398_v18 = vmax.f32 %v1270_v12, 0.0  ;;  %v1430_v19 = vmax.f32 %v1302_v13, 0.0 }
  0xd8   : > { %v2268_v20 = vpack.c.bf16 %v1398_v18, %v1397_v16  ;;  %v2348_v21 = vpack.c.bf16 %v1430_v19, %v1429_v17  ;;  %v985_v22 = vpop.f32.mrf.mxu2  ;;  %v1065_v23 = vpop.f32.mrf.mxu3 }
  0xd9   : > { %v1204_v28 = vmul.f32 %v2828_v46, %v985_v22  ;;  %v1236_v29 = vmul.f32 %v2828_v46, %v1065_v23  ;;  %v828_v30 = vpop.f32.mrf.mxu0  ;;  %v908_v31 = vpop.f32.mrf.mxu1 }
  0xda   : > { %2576 = vst [vmem:[%s2850_s19 + $0x10] sm:$0xff] %v2268_v20   ;;  %v1141_v40 = vmul.f32 %v2828_v46, %v828_v30  ;;  %v1173_v41 = vmul.f32 %v2828_v46, %v908_v31 }
  0xdb   : > { %2592 = vst [vmem:[%s2850_s19 + $0x90] sm:$0xff] %v2348_v21   ;;  %v1334_v34 = vadd.f32 %v2834_v48, %v1204_v28  ;;  %v1366_v35 = vadd.f32 %v2834_v48, %v1236_v29 }
  0xdc   : > { %867 = vmatmul.bf16.gmra.mxu0 %v2194_v24  ;;  %947 = vmatmul.bf16.gmra.mxu1 %v2210_v25  ;;  %v1271_v50 = vadd.f32 %v2834_v48, %v1141_v40  ;;  %v1303_v51 = vadd.f32 %v2834_v48, %v1173_v41 }
  0xdd   : > { %v1462_v38 = vmax.f32 %v1334_v34, 0.0  ;;  %v1494_v39 = vmax.f32 %v1366_v35, 0.0  ;;  %1027 = vmatmul.bf16.gmra.mxu2 %v2226_v32  ;;  %1107 = vmatmul.bf16.gmra.mxu3 %v2242_v33 }
  0xde   : > { %v1399_v58 = vmax.f32 %v1271_v50, 0.0  ;;  %v1431_v59 = vmax.f32 %v1303_v51, 0.0 }
  0xdf   : > { %v2428_v42 = vpack.c.bf16 %v1462_v38, %v1461_v36  ;;  %v2508_v43 = vpack.c.bf16 %v1494_v39, %v1493_v37 }
  0xe0   : > { %v988_v44 = vpop.f32.mrf.mxu2  ;;  %v1068_v45 = vpop.f32.mrf.mxu3 }
  0xe1   : > { %2608 = vst [vmem:[%s2850_s19 + $0x110] sm:$0xff] %v2428_v42   ;;  %v830_v47 = vpop.f32.mrf.mxu0  ;;  %v910_v49 = vpop.f32.mrf.mxu1  ;;  %v1205_v56 = vmul.f32 %v2828_v46, %v988_v44  ;;  %v1237_v57 = vmul.f32 %v2828_v46, %v1068_v45  ;;  %v2196_v42 = vld [vmem:[%s2787_s9 + $0x68] sm:$0xff] }
  0xe2   : > { %2624 = vst [vmem:[%s2850_s19 + $0x190] sm:$0xff] %v2508_v43   ;;  %v1142_v52 = vmul.f32 %v2828_v46, %v830_v47  ;;  %v1174_v53 = vmul.f32 %v2828_v46, %v910_v49  ;;  %v2212_v43 = vld [vmem:[%s2787_s9 + $0xe8] sm:$0xff] }
  0xe3   : > { %v1335_v4 = vadd.f32 %v2834_v48, %v1205_v56  ;;  %v1367_v5 = vadd.f32 %v2834_v48, %v1237_v57 }
  0xe4   : > { %v1272_v54 = vadd.f32 %v2834_v48, %v1142_v52  ;;  %v1304_v55 = vadd.f32 %v2834_v48, %v1174_v53  ;;  %v2228_v52 = vld [vmem:[%s2787_s9 + $0x168] sm:$0xff] }
  0xe5   : > { %v1463_v14 = vmax.f32 %v1335_v4, 0.0  ;;  %v1495_v15 = vmax.f32 %v1367_v5, 0.0  ;;  %v2244_v53 = vld [vmem:[%s2787_s9 + $0x1e8] sm:$0xff] }
  0xe6   : > { %v1400_v60 = vmax.f32 %v1272_v54, 0.0  ;;  %v1432_v61 = vmax.f32 %v1304_v55, 0.0 }
  0xe8   : > { %v2273_v62 = vpack.c.bf16 %v1400_v60, %v1399_v58  ;;  %v2353_v63 = vpack.c.bf16 %v1432_v61, %v1431_v59  ;;  %v990_v0 = vpop.f32.mrf.mxu2  ;;  %v1070_v1 = vpop.f32.mrf.mxu3 }
  0xe9   : > { %v1206_v6 = vmul.f32 %v2828_v46, %v990_v0  ;;  %v1238_v7 = vmul.f32 %v2828_v46, %v1070_v1  ;;  %v833_v8 = vpop.f32.mrf.mxu0  ;;  %v913_v9 = vpop.f32.mrf.mxu1 }
  0xea   : > { %2577 = vst [vmem:[%s2850_s19 + $0x18] sm:$0xff] %v2273_v62   ;;  %v1143_v18 = vmul.f32 %v2828_v46, %v833_v8  ;;  %v1175_v19 = vmul.f32 %v2828_v46, %v913_v9 }
  0xeb   : > { %2593 = vst [vmem:[%s2850_s19 + $0x98] sm:$0xff] %v2353_v63   ;;  %v1336_v12 = vadd.f32 %v2834_v48, %v1206_v6  ;;  %v1368_v13 = vadd.f32 %v2834_v48, %v1238_v7 }
  0xec   : > { %872 = vmatmul.bf16.gmra.mxu0 %v2195_v2  ;;  %952 = vmatmul.bf16.gmra.mxu1 %v2211_v3  ;;  %v1273_v26 = vadd.f32 %v2834_v48, %v1143_v18  ;;  %v1305_v27 = vadd.f32 %v2834_v48, %v1175_v19 }
  0xed   : > { %v1464_v16 = vmax.f32 %v1336_v12, 0.0  ;;  %v1496_v17 = vmax.f32 %v1368_v13, 0.0  ;;  %1032 = vmatmul.bf16.gmra.mxu2 %v2227_v10  ;;  %1112 = vmatmul.bf16.gmra.mxu3 %v2243_v11 }
  0xee   : > { %v1401_v34 = vmax.f32 %v1273_v26, 0.0  ;;  %v1433_v35 = vmax.f32 %v1305_v27, 0.0 }
  0xef   : > { %v2433_v20 = vpack.c.bf16 %v1464_v16, %v1463_v14  ;;  %v2513_v21 = vpack.c.bf16 %v1496_v17, %v1495_v15 }
  0xf0   : > { %v993_v22 = vpop.f32.mrf.mxu2  ;;  %v1073_v23 = vpop.f32.mrf.mxu3 }
  0xf1   : > { %2609 = vst [vmem:[%s2850_s19 + $0x118] sm:$0xff] %v2433_v20   ;;  %v835_v24 = vpop.f32.mrf.mxu0  ;;  %v915_v25 = vpop.f32.mrf.mxu1  ;;  %v1207_v32 = vmul.f32 %v2828_v46, %v993_v22  ;;  %v1239_v33 = vmul.f32 %v2828_v46, %v1073_v23  ;;  %v2197_v20 = vld [vmem:[%s2787_s9 + $0x70] sm:$0xff] }
  0xf2   : > { %2625 = vst [vmem:[%s2850_s19 + $0x198] sm:$0xff] %v2513_v21   ;;  %v1144_v28 = vmul.f32 %v2828_v46, %v835_v24  ;;  %v1176_v29 = vmul.f32 %v2828_v46, %v915_v25  ;;  %v2213_v21 = vld [vmem:[%s2787_s9 + $0xf0] sm:$0xff] }
  0xf3   : > { %v1337_v44 = vadd.f32 %v2834_v48, %v1207_v32  ;;  %v1369_v45 = vadd.f32 %v2834_v48, %v1239_v33 }
  0xf4   : > { %v1274_v30 = vadd.f32 %v2834_v48, %v1144_v28  ;;  %v1306_v31 = vadd.f32 %v2834_v48, %v1176_v29  ;;  %v2229_v28 = vld [vmem:[%s2787_s9 + $0x170] sm:$0xff] }
  0xf5   : > { %v1465_v56 = vmax.f32 %v1337_v44, 0.0  ;;  %v1497_v57 = vmax.f32 %v1369_v45, 0.0  ;;  %v2245_v29 = vld [vmem:[%s2787_s9 + $0x1f0] sm:$0xff] }
  0xf6   : > { %v1402_v36 = vmax.f32 %v1274_v30, 0.0  ;;  %v1434_v37 = vmax.f32 %v1306_v31, 0.0 }
  0xf8   : > { %v2278_v38 = vpack.c.bf16 %v1402_v36, %v1401_v34  ;;  %v2358_v39 = vpack.c.bf16 %v1434_v37, %v1433_v35  ;;  %v995_v40 = vpop.f32.mrf.mxu2  ;;  %v1075_v41 = vpop.f32.mrf.mxu3 }
  0xf9   : > { %v1208_v47 = vmul.f32 %v2828_v46, %v995_v40  ;;  %v1240_v49 = vmul.f32 %v2828_v46, %v1075_v41  ;;  %v838_v50 = vpop.f32.mrf.mxu0  ;;  %v918_v51 = vpop.f32.mrf.mxu1 }
  0xfa   : > { %2578 = vst [vmem:[%s2850_s19 + $0x20] sm:$0xff] %v2278_v38   ;;  %v1145_v60 = vmul.f32 %v2828_v46, %v838_v50  ;;  %v1177_v61 = vmul.f32 %v2828_v46, %v918_v51 }
  0xfb   : > { %2594 = vst [vmem:[%s2850_s19 + $0xa0] sm:$0xff] %v2358_v39   ;;  %v1338_v54 = vadd.f32 %v2834_v48, %v1208_v47  ;;  %v1370_v55 = vadd.f32 %v2834_v48, %v1240_v49 }
  0xfc   : > { %877 = vmatmul.bf16.gmra.mxu0 %v2196_v42  ;;  %957 = vmatmul.bf16.gmra.mxu1 %v2212_v43  ;;  %v1275_v4 = vadd.f32 %v2834_v48, %v1145_v60  ;;  %v1307_v5 = vadd.f32 %v2834_v48, %v1177_v61 }
  0xfd   : > { %v1466_v58 = vmax.f32 %v1338_v54, 0.0  ;;  %v1498_v59 = vmax.f32 %v1370_v55, 0.0  ;;  %1037 = vmatmul.bf16.gmra.mxu2 %v2228_v52  ;;  %1117 = vmatmul.bf16.gmra.mxu3 %v2244_v53 }
  0xfe   : > { %v1403_v12 = vmax.f32 %v1275_v4, 0.0  ;;  %v1435_v13 = vmax.f32 %v1307_v5, 0.0 }
  0xff   : > { %v2438_v62 = vpack.c.bf16 %v1466_v58, %v1465_v56  ;;  %v2518_v63 = vpack.c.bf16 %v1498_v59, %v1497_v57 }
 0x100   : > { %v998_v0 = vpop.f32.mrf.mxu2  ;;  %v1078_v1 = vpop.f32.mrf.mxu3 }
 0x101   : > { %2610 = vst [vmem:[%s2850_s19 + $0x120] sm:$0xff] %v2438_v62   ;;  %v840_v2 = vpop.f32.mrf.mxu0  ;;  %v920_v3 = vpop.f32.mrf.mxu1  ;;  %v1209_v10 = vmul.f32 %v2828_v46, %v998_v0  ;;  %v1241_v11 = vmul.f32 %v2828_v46, %v1078_v1  ;;  %v2198_v62 = vld [vmem:[%s2787_s9 + $0x78] sm:$0xff] }
 0x102   : > { %2626 = vst [vmem:[%s2850_s19 + $0x1a0] sm:$0xff] %v2518_v63   ;;  %v1146_v6 = vmul.f32 %v2828_v46, %v840_v2  ;;  %v1178_v7 = vmul.f32 %v2828_v46, %v920_v3  ;;  %v2214_v63 = vld [vmem:[%s2787_s9 + $0xf8] sm:$0xff] }
 0x103   : > { %v1339_v22 = vadd.f32 %v2834_v48, %v1209_v10  ;;  %v1371_v23 = vadd.f32 %v2834_v48, %v1241_v11 }
 0x104   : > { %v1276_v8 = vadd.f32 %v2834_v48, %v1146_v6  ;;  %v1308_v9 = vadd.f32 %v2834_v48, %v1178_v7  ;;  %v2230_v6 = vld [vmem:[%s2787_s9 + $0x178] sm:$0xff] }
 0x105   : > { %v1467_v32 = vmax.f32 %v1339_v22, 0.0  ;;  %v1499_v33 = vmax.f32 %v1371_v23, 0.0  ;;  %v2246_v7 = vld [vmem:[%s2787_s9 + $0x1f8] sm:$0xff] }
 0x106   : > { %v1404_v14 = vmax.f32 %v1276_v8, 0.0  ;;  %v1436_v15 = vmax.f32 %v1308_v9, 0.0 }
 0x108   : > { %v2283_v16 = vpack.c.bf16 %v1404_v14, %v1403_v12  ;;  %v2363_v17 = vpack.c.bf16 %v1436_v15, %v1435_v13  ;;  %v1000_v18 = vpop.f32.mrf.mxu2  ;;  %v1080_v19 = vpop.f32.mrf.mxu3 }
 0x109   : > { %v1210_v24 = vmul.f32 %v2828_v46, %v1000_v18  ;;  %v1242_v25 = vmul.f32 %v2828_v46, %v1080_v19  ;;  %v843_v26 = vpop.f32.mrf.mxu0  ;;  %v923_v27 = vpop.f32.mrf.mxu1 }
 0x10a   : > { %2579 = vst [vmem:[%s2850_s19 + $0x28] sm:$0xff] %v2283_v16   ;;  %v1147_v36 = vmul.f32 %v2828_v46, %v843_v26  ;;  %v1179_v37 = vmul.f32 %v2828_v46, %v923_v27 }
 0x10b   : > { %2595 = vst [vmem:[%s2850_s19 + $0xa8] sm:$0xff] %v2363_v17   ;;  %v1340_v30 = vadd.f32 %v2834_v48, %v1210_v24  ;;  %v1372_v31 = vadd.f32 %v2834_v48, %v1242_v25 }
 0x10c   : > { %882 = vmatmul.bf16.gmra.mxu0 %v2197_v20  ;;  %962 = vmatmul.bf16.gmra.mxu1 %v2213_v21  ;;  %v1277_v44 = vadd.f32 %v2834_v48, %v1147_v36  ;;  %v1309_v45 = vadd.f32 %v2834_v48, %v1179_v37 }
 0x10d   : > { %v1468_v34 = vmax.f32 %v1340_v30, 0.0  ;;  %v1500_v35 = vmax.f32 %v1372_v31, 0.0  ;;  %1042 = vmatmul.bf16.gmra.mxu2 %v2229_v28  ;;  %1122 = vmatmul.bf16.gmra.mxu3 %v2245_v29 }
 0x10e   : > { %v1405_v54 = vmax.f32 %v1277_v44, 0.0  ;;  %v1437_v55 = vmax.f32 %v1309_v45, 0.0 }
 0x10f   : > { %v2443_v38 = vpack.c.bf16 %v1468_v34, %v1467_v32  ;;  %v2523_v39 = vpack.c.bf16 %v1500_v35, %v1499_v33 }
 0x110   : > { %v1003_v40 = vpop.f32.mrf.mxu2  ;;  %v1083_v41 = vpop.f32.mrf.mxu3 }
 0x111   : > { %2611 = vst [vmem:[%s2850_s19 + $0x128] sm:$0xff] %v2443_v38   ;;  %v845_v42 = vpop.f32.mrf.mxu0  ;;  %v925_v43 = vpop.f32.mrf.mxu1  ;;  %v1211_v52 = vmul.f32 %v2828_v46, %v1003_v40  ;;  %v1243_v53 = vmul.f32 %v2828_v46, %v1083_v41 }
 0x112   : > { %2627 = vst [vmem:[%s2850_s19 + $0x1a8] sm:$0xff] %v2523_v39   ;;  %v1148_v47 = vmul.f32 %v2828_v46, %v845_v42  ;;  %v1180_v49 = vmul.f32 %v2828_v46, %v925_v43 }
 0x113   : > { %v1341_v0 = vadd.f32 %v2834_v48, %v1211_v52  ;;  %v1373_v1 = vadd.f32 %v2834_v48, %v1243_v53 }
 0x114   : > { %v1278_v50 = vadd.f32 %v2834_v48, %v1148_v47  ;;  %v1310_v51 = vadd.f32 %v2834_v48, %v1180_v49 }
 0x115   : > { %v1469_v10 = vmax.f32 %v1341_v0, 0.0  ;;  %v1501_v11 = vmax.f32 %v1373_v1, 0.0 }
 0x116   : > { %v1406_v56 = vmax.f32 %v1278_v50, 0.0  ;;  %v1438_v57 = vmax.f32 %v1310_v51, 0.0 }
 0x118   : > { %v2288_v58 = vpack.c.bf16 %v1406_v56, %v1405_v54  ;;  %v2368_v59 = vpack.c.bf16 %v1438_v57, %v1437_v55  ;;  %v1005_v60 = vpop.f32.mrf.mxu2  ;;  %v1085_v61 = vpop.f32.mrf.mxu3 }
 0x119   : > { %v1212_v2 = vmul.f32 %v2828_v46, %v1005_v60  ;;  %v1244_v3 = vmul.f32 %v2828_v46, %v1085_v61  ;;  %v848_v4 = vpop.f32.mrf.mxu0  ;;  %v928_v5 = vpop.f32.mrf.mxu1 }
 0x11a   : > { %2580 = vst [vmem:[%s2850_s19 + $0x30] sm:$0xff] %v2288_v58   ;;  %v1149_v14 = vmul.f32 %v2828_v46, %v848_v4  ;;  %v1181_v15 = vmul.f32 %v2828_v46, %v928_v5 }
 0x11b   : > { %2596 = vst [vmem:[%s2850_s19 + $0xb0] sm:$0xff] %v2368_v59   ;;  %v1342_v8 = vadd.f32 %v2834_v48, %v1212_v2  ;;  %v1374_v9 = vadd.f32 %v2834_v48, %v1244_v3 }
 0x11c   : > { %887 = vmatmul.bf16.gmra.mxu0 %v2198_v62  ;;  %967 = vmatmul.bf16.gmra.mxu1 %v2214_v63  ;;  %v1279_v22 = vadd.f32 %v2834_v48, %v1149_v14  ;;  %v1311_v23 = vadd.f32 %v2834_v48, %v1181_v15 }
 0x11d   : > { %v1470_v12 = vmax.f32 %v1342_v8, 0.0  ;;  %v1502_v13 = vmax.f32 %v1374_v9, 0.0  ;;  %1047 = vmatmul.bf16.gmra.mxu2 %v2230_v6  ;;  %1127 = vmatmul.bf16.gmra.mxu3 %v2246_v7 }
 0x11e   : > { %v1407_v30 = vmax.f32 %v1279_v22, 0.0  ;;  %v1439_v31 = vmax.f32 %v1311_v23, 0.0 }
 0x11f   : > { %v2448_v16 = vpack.c.bf16 %v1470_v12, %v1469_v10  ;;  %v2528_v17 = vpack.c.bf16 %v1502_v13, %v1501_v11 }
 0x120   : > { %v1008_v18 = vpop.f32.mrf.mxu2  ;;  %v1088_v19 = vpop.f32.mrf.mxu3 }
 0x121   : > { %2612 = vst [vmem:[%s2850_s19 + $0x130] sm:$0xff] %v2448_v16   ;;  %v850_v20 = vpop.f32.mrf.mxu0  ;;  %v930_v21 = vpop.f32.mrf.mxu1  ;;  %v1213_v28 = vmul.f32 %v2828_v46, %v1008_v18  ;;  %v1245_v29 = vmul.f32 %v2828_v46, %v1088_v19 }
 0x122   : > { %2628 = vst [vmem:[%s2850_s19 + $0x1b0] sm:$0xff] %v2528_v17   ;;  %v1150_v24 = vmul.f32 %v2828_v46, %v850_v20  ;;  %v1182_v25 = vmul.f32 %v2828_v46, %v930_v21 }
 0x123   : > { %v1343_v38 = vadd.f32 %v2834_v48, %v1213_v28  ;;  %v1375_v39 = vadd.f32 %v2834_v48, %v1245_v29 }
 0x124   : > { %v1280_v26 = vadd.f32 %v2834_v48, %v1150_v24  ;;  %v1312_v27 = vadd.f32 %v2834_v48, %v1182_v25 }
 0x125   : > { %v1471_v47 = vmax.f32 %v1343_v38, 0.0  ;;  %v1503_v49 = vmax.f32 %v1375_v39, 0.0 }
 0x126   : > { %v1408_v32 = vmax.f32 %v1280_v26, 0.0  ;;  %v1440_v33 = vmax.f32 %v1312_v27, 0.0 }
 0x128   : > { %v2293_v34 = vpack.c.bf16 %v1408_v32, %v1407_v30  ;;  %v2373_v35 = vpack.c.bf16 %v1440_v33, %v1439_v31  ;;  %v1010_v36 = vpop.f32.mrf.mxu2  ;;  %v1090_v37 = vpop.f32.mrf.mxu3 }
 0x129   : > { %v1214_v40 = vmul.f32 %v2828_v46, %v1010_v36  ;;  %v1246_v41 = vmul.f32 %v2828_v46, %v1090_v37  ;;  %v853_v42 = vpop.f32.mrf.mxu0  ;;  %v933_v43 = vpop.f32.mrf.mxu1 }
 0x12a   : > { %2581 = vst [vmem:[%s2850_s19 + $0x38] sm:$0xff] %v2293_v34   ;;  %v1151_v52 = vmul.f32 %v2828_v46, %v853_v42  ;;  %v1183_v53 = vmul.f32 %v2828_v46, %v933_v43 }
 0x12b   : > { %2597 = vst [vmem:[%s2850_s19 + $0xb8] sm:$0xff] %v2373_v35   ;;  %v1344_v44 = vadd.f32 %v2834_v48, %v1214_v40  ;;  %v1376_v45 = vadd.f32 %v2834_v48, %v1246_v41 }
 0x12c   : > { %v1281_v60 = vadd.f32 %v2834_v48, %v1151_v52  ;;  %v1313_v61 = vadd.f32 %v2834_v48, %v1183_v53 }
 0x12d   : > { %v1472_v50 = vmax.f32 %v1344_v44, 0.0  ;;  %v1504_v51 = vmax.f32 %v1376_v45, 0.0 }
 0x12e   : > { %v1409_v4 = vmax.f32 %v1281_v60, 0.0  ;;  %v1441_v5 = vmax.f32 %v1313_v61, 0.0 }
 0x12f   : > { %v2453_v54 = vpack.c.bf16 %v1472_v50, %v1471_v47  ;;  %v2533_v55 = vpack.c.bf16 %v1504_v51, %v1503_v49 }
 0x130   : > { %v1013_v56 = vpop.f32.mrf.mxu2  ;;  %v1093_v57 = vpop.f32.mrf.mxu3 }
 0x131   : > { %2613 = vst [vmem:[%s2850_s19 + $0x138] sm:$0xff] %v2453_v54   ;;  %v855_v58 = vpop.f32.mrf.mxu0  ;;  %v935_v59 = vpop.f32.mrf.mxu1  ;;  %v1215_v2 = vmul.f32 %v2828_v46, %v1013_v56  ;;  %v1247_v3 = vmul.f32 %v2828_v46, %v1093_v57 }
 0x132   : > { %2629 = vst [vmem:[%s2850_s19 + $0x1b8] sm:$0xff] %v2533_v55   ;;  %v1152_v62 = vmul.f32 %v2828_v46, %v855_v58  ;;  %v1184_v63 = vmul.f32 %v2828_v46, %v935_v59 }
 0x133   : > { %v1345_v12 = vadd.f32 %v2834_v48, %v1215_v2  ;;  %v1377_v13 = vadd.f32 %v2834_v48, %v1247_v3 }
 0x134   : > { %v1282_v0 = vadd.f32 %v2834_v48, %v1152_v62  ;;  %v1314_v1 = vadd.f32 %v2834_v48, %v1184_v63 }
 0x135   : > { %v1473_v20 = vmax.f32 %v1345_v12, 0.0  ;;  %v1505_v21 = vmax.f32 %v1377_v13, 0.0 }
 0x136   : > { %v1410_v6 = vmax.f32 %v1282_v0, 0.0  ;;  %v1442_v7 = vmax.f32 %v1314_v1, 0.0 }
 0x138   : > { %v2298_v8 = vpack.c.bf16 %v1410_v6, %v1409_v4  ;;  %v2378_v9 = vpack.c.bf16 %v1442_v7, %v1441_v5  ;;  %v1015_v10 = vpop.f32.mrf.mxu2  ;;  %v1095_v11 = vpop.f32.mrf.mxu3 }
 0x139   : > { %v1216_v14 = vmul.f32 %v2828_v46, %v1015_v10  ;;  %v1248_v15 = vmul.f32 %v2828_v46, %v1095_v11  ;;  %v858_v16 = vpop.f32.mrf.mxu0  ;;  %v938_v17 = vpop.f32.mrf.mxu1 }
 0x13a   : > { %2582 = vst [vmem:[%s2850_s19 + $0x40] sm:$0xff] %v2298_v8   ;;  %v1153_v24 = vmul.f32 %v2828_v46, %v858_v16  ;;  %v1185_v25 = vmul.f32 %v2828_v46, %v938_v17 }
 0x13b   : > { %2598 = vst [vmem:[%s2850_s19 + $0xc0] sm:$0xff] %v2378_v9   ;;  %v1346_v18 = vadd.f32 %v2834_v48, %v1216_v14  ;;  %v1378_v19 = vadd.f32 %v2834_v48, %v1248_v15 }
 0x13c   : > { %v1283_v32 = vadd.f32 %v2834_v48, %v1153_v24  ;;  %v1315_v33 = vadd.f32 %v2834_v48, %v1185_v25 }
 0x13d   : > { %v1474_v22 = vmax.f32 %v1346_v18, 0.0  ;;  %v1506_v23 = vmax.f32 %v1378_v19, 0.0 }
 0x13e   : > { %v1411_v40 = vmax.f32 %v1283_v32, 0.0  ;;  %v1443_v41 = vmax.f32 %v1315_v33, 0.0 }
 0x13f   : > { %v2458_v26 = vpack.c.bf16 %v1474_v22, %v1473_v20  ;;  %v2538_v27 = vpack.c.bf16 %v1506_v23, %v1505_v21 }
 0x140   : > { %v1018_v28 = vpop.f32.mrf.mxu2  ;;  %v1098_v29 = vpop.f32.mrf.mxu3 }
 0x141   : > { %2614 = vst [vmem:[%s2850_s19 + $0x140] sm:$0xff] %v2458_v26   ;;  %v860_v30 = vpop.f32.mrf.mxu0  ;;  %v940_v31 = vpop.f32.mrf.mxu1  ;;  %v1217_v38 = vmul.f32 %v2828_v46, %v1018_v28  ;;  %v1249_v39 = vmul.f32 %v2828_v46, %v1098_v29 }
 0x142   : > { %2630 = vst [vmem:[%s2850_s19 + $0x1c0] sm:$0xff] %v2538_v27   ;;  %v1154_v34 = vmul.f32 %v2828_v46, %v860_v30  ;;  %v1186_v35 = vmul.f32 %v2828_v46, %v940_v31 }
 0x143   : > { %v1347_v50 = vadd.f32 %v2834_v48, %v1217_v38  ;;  %v1379_v51 = vadd.f32 %v2834_v48, %v1249_v39 }
 0x144   : > { %v1284_v36 = vadd.f32 %v2834_v48, %v1154_v34  ;;  %v1316_v37 = vadd.f32 %v2834_v48, %v1186_v35 }
 0x145   : > { %v1475_v58 = vmax.f32 %v1347_v50, 0.0  ;;  %v1507_v59 = vmax.f32 %v1379_v51, 0.0 }
 0x146   : > { %v1412_v42 = vmax.f32 %v1284_v36, 0.0  ;;  %v1444_v43 = vmax.f32 %v1316_v37, 0.0 }
 0x148   : > { %v2303_v44 = vpack.c.bf16 %v1412_v42, %v1411_v40  ;;  %v2383_v45 = vpack.c.bf16 %v1444_v43, %v1443_v41  ;;  %v1020_v47 = vpop.f32.mrf.mxu2  ;;  %v1100_v49 = vpop.f32.mrf.mxu3 }
 0x149   : > { %v1218_v52 = vmul.f32 %v2828_v46, %v1020_v47  ;;  %v1250_v53 = vmul.f32 %v2828_v46, %v1100_v49  ;;  %v863_v54 = vpop.f32.mrf.mxu0  ;;  %v943_v55 = vpop.f32.mrf.mxu1 }
 0x14a   : > { %2583 = vst [vmem:[%s2850_s19 + $0x48] sm:$0xff] %v2303_v44   ;;  %v1155_v62 = vmul.f32 %v2828_v46, %v863_v54  ;;  %v1187_v63 = vmul.f32 %v2828_v46, %v943_v55 }
 0x14b   : > { %2599 = vst [vmem:[%s2850_s19 + $0xc8] sm:$0xff] %v2383_v45   ;;  %v1348_v56 = vadd.f32 %v2834_v48, %v1218_v52  ;;  %v1380_v57 = vadd.f32 %v2834_v48, %v1250_v53  ;;  %v3098_v45 = vld [vmem:[%s3211_s2] ss:$0 sm:$0xff] }
 0x14c   : > { %v1285_v6 = vadd.f32 %v2834_v48, %v1155_v62  ;;  %v1317_v7 = vadd.f32 %v2834_v48, %v1187_v63 }
 0x14d   : > { %v1476_v60 = vmax.f32 %v1348_v56, 0.0  ;;  %v1508_v61 = vmax.f32 %v1380_v57, 0.0 }
 0x14e   : > { %v1413_v14 = vmax.f32 %v1285_v6, 0.0  ;;  %v1445_v15 = vmax.f32 %v1317_v7, 0.0 }
 0x14f   : > { %v2463_v0 = vpack.c.bf16 %v1476_v60, %v1475_v58  ;;  %v2543_v1 = vpack.c.bf16 %v1508_v61, %v1507_v59  ;;  %v3108_v60 = vld [vmem:[%s3211_s2 + $0x1] ss:$0 sm:$0xff] }
 0x150   : > { %v1023_v2 = vpop.f32.mrf.mxu2  ;;  %v1103_v3 = vpop.f32.mrf.mxu3 }
 0x151   : > { %2615 = vst [vmem:[%s2850_s19 + $0x148] sm:$0xff] %v2463_v0   ;;  %v865_v4 = vpop.f32.mrf.mxu0  ;;  %v945_v5 = vpop.f32.mrf.mxu1  ;;  %v1219_v12 = vmul.f32 %v2828_v46, %v1023_v2  ;;  %v1251_v13 = vmul.f32 %v2828_v46, %v1103_v3 }
 0x152   : > { %2631 = vst [vmem:[%s2850_s19 + $0x1c8] sm:$0xff] %v2543_v1   ;;  %v1156_v8 = vmul.f32 %v2828_v46, %v865_v4  ;;  %v1188_v9 = vmul.f32 %v2828_v46, %v945_v5 }
 0x153   : > { %v1349_v22 = vadd.f32 %v2834_v48, %v1219_v12  ;;  %v1381_v23 = vadd.f32 %v2834_v48, %v1251_v13 }
 0x154   : > { %v1286_v10 = vadd.f32 %v2834_v48, %v1156_v8  ;;  %v1318_v11 = vadd.f32 %v2834_v48, %v1188_v9 }
 0x155   : > { %v1477_v30 = vmax.f32 %v1349_v22, 0.0  ;;  %v1509_v31 = vmax.f32 %v1381_v23, 0.0 }
 0x156   : > { %v1414_v16 = vmax.f32 %v1286_v10, 0.0  ;;  %v1446_v17 = vmax.f32 %v1318_v11, 0.0 }
 0x158   : > { %v2308_v18 = vpack.c.bf16 %v1414_v16, %v1413_v14  ;;  %v2388_v19 = vpack.c.bf16 %v1446_v17, %v1445_v15  ;;  %v1025_v20 = vpop.f32.mrf.mxu2  ;;  %v1105_v21 = vpop.f32.mrf.mxu3 }
 0x159   : > { %v1220_v24 = vmul.f32 %v2828_v46, %v1025_v20  ;;  %v1252_v25 = vmul.f32 %v2828_v46, %v1105_v21  ;;  %v868_v26 = vpop.f32.mrf.mxu0  ;;  %v948_v27 = vpop.f32.mrf.mxu1 }
 0x15a   : > { %2584 = vst [vmem:[%s2850_s19 + $0x50] sm:$0xff] %v2308_v18   ;;  %v1157_v34 = vmul.f32 %v2828_v46, %v868_v26  ;;  %v1189_v35 = vmul.f32 %v2828_v46, %v948_v27 }
 0x15b   : > { %2600 = vst [vmem:[%s2850_s19 + $0xd0] sm:$0xff] %v2388_v19   ;;  %v1350_v28 = vadd.f32 %v2834_v48, %v1220_v24  ;;  %v1382_v29 = vadd.f32 %v2834_v48, %v1252_v25 }
 0x15c   : > { %v1287_v42 = vadd.f32 %v2834_v48, %v1157_v34  ;;  %v1319_v43 = vadd.f32 %v2834_v48, %v1189_v35 }
 0x15d   : > { %v1478_v32 = vmax.f32 %v1350_v28, 0.0  ;;  %v1510_v33 = vmax.f32 %v1382_v29, 0.0 }
 0x15e   : > { %v1415_v53 = vmax.f32 %v1287_v42, 0.0  ;;  %v1447_v54 = vmax.f32 %v1319_v43, 0.0 }
 0x15f   : > { %v2468_v36 = vpack.c.bf16 %v1478_v32, %v1477_v30  ;;  %v2548_v37 = vpack.c.bf16 %v1510_v33, %v1509_v31 }
 0x160   : > { %v1028_v38 = vpop.f32.mrf.mxu2  ;;  %v1108_v39 = vpop.f32.mrf.mxu3 }
 0x161   : > { %2616 = vst [vmem:[%s2850_s19 + $0x150] sm:$0xff] %v2468_v36   ;;  %v870_v40 = vpop.f32.mrf.mxu0  ;;  %v950_v41 = vpop.f32.mrf.mxu1  ;;  %v1221_v51 = vmul.f32 %v3098_v45, %v1028_v38  ;;  %v1253_v52 = vmul.f32 %v3098_v45, %v1108_v39 }
 0x162   : > { %2632 = vst [vmem:[%s2850_s19 + $0x1d0] sm:$0xff] %v2548_v37   ;;  %v1158_v44 = vmul.f32 %v2828_v46, %v870_v40  ;;  %v1190_v47 = vmul.f32 %v3098_v45, %v950_v41 }
 0x163   : > { %v1383_v61 = vadd.f32 %v3108_v60, %v1253_v52 }
 0x164   : > { %v1288_v49 = vadd.f32 %v2834_v48, %v1158_v44  ;;  %v1320_v50 = vadd.f32 %v2834_v48, %v1190_v47  ;;  %v1351_v48 = vadd.f32 %v3108_v60, %v1221_v51 }
 0x165   : > { %v1511_v5 = vmax.f32 %v1383_v61, 0.0 }
 0x166   : > { %v1416_v46 = vmax.f32 %v1288_v49, 0.0  ;;  %v1448_v55 = vmax.f32 %v1320_v50, 0.0  ;;  %v1479_v4 = vmax.f32 %v1351_v48, 0.0 }
 0x168   : > { %v2313_v56 = vpack.c.bf16 %v1416_v46, %v1415_v53  ;;  %v2393_v57 = vpack.c.bf16 %v1448_v55, %v1447_v54  ;;  %v1030_v58 = vpop.f32.mrf.mxu2  ;;  %v1110_v59 = vpop.f32.mrf.mxu3 }
 0x169   : > { %v1222_v62 = vmul.f32 %v3098_v45, %v1030_v58  ;;  %v1254_v63 = vmul.f32 %v3098_v45, %v1110_v59  ;;  %v873_v0 = vpop.f32.mrf.mxu0  ;;  %v953_v1 = vpop.f32.mrf.mxu1 }
 0x16a   : > { %2585 = vst [vmem:[%s2850_s19 + $0x58] sm:$0xff] %v2313_v56   ;;  %v1159_v8 = vmul.f32 %v3098_v45, %v873_v0  ;;  %v1191_v9 = vmul.f32 %v3098_v45, %v953_v1 }
 0x16b   : > { %2601 = vst [vmem:[%s2850_s19 + $0xd8] sm:$0xff] %v2393_v57   ;;  %v1352_v2 = vadd.f32 %v3108_v60, %v1222_v62  ;;  %v1384_v3 = vadd.f32 %v3108_v60, %v1254_v63 }
 0x16c   : > { %v1289_v16 = vadd.f32 %v3108_v60, %v1159_v8  ;;  %v1321_v17 = vadd.f32 %v3108_v60, %v1191_v9 }
 0x16d   : > { %v1480_v6 = vmax.f32 %v1352_v2, 0.0  ;;  %v1512_v7 = vmax.f32 %v1384_v3, 0.0 }
 0x16e   : > { %v1417_v24 = vmax.f32 %v1289_v16, 0.0  ;;  %v1449_v25 = vmax.f32 %v1321_v17, 0.0 }
 0x16f   : > { %v2473_v10 = vpack.c.bf16 %v1480_v6, %v1479_v4  ;;  %v2553_v11 = vpack.c.bf16 %v1512_v7, %v1511_v5 }
 0x170   : > { %v1033_v12 = vpop.f32.mrf.mxu2  ;;  %v1113_v13 = vpop.f32.mrf.mxu3 }
 0x171   : > { %2617 = vst [vmem:[%s2850_s19 + $0x158] sm:$0xff] %v2473_v10   ;;  %v875_v14 = vpop.f32.mrf.mxu0  ;;  %v955_v15 = vpop.f32.mrf.mxu1  ;;  %v1223_v22 = vmul.f32 %v3098_v45, %v1033_v12  ;;  %v1255_v23 = vmul.f32 %v3098_v45, %v1113_v13 }
 0x172   : > { %2633 = vst [vmem:[%s2850_s19 + $0x1d8] sm:$0xff] %v2553_v11   ;;  %v1160_v18 = vmul.f32 %v3098_v45, %v875_v14  ;;  %v1192_v19 = vmul.f32 %v3098_v45, %v955_v15 }
 0x173   : > { %v1353_v32 = vadd.f32 %v3108_v60, %v1223_v22  ;;  %v1385_v33 = vadd.f32 %v3108_v60, %v1255_v23 }
 0x174   : > { %v1290_v20 = vadd.f32 %v3108_v60, %v1160_v18  ;;  %v1322_v21 = vadd.f32 %v3108_v60, %v1192_v19 }
 0x175   : > { %v1481_v40 = vmax.f32 %v1353_v32, 0.0  ;;  %v1513_v41 = vmax.f32 %v1385_v33, 0.0 }
 0x176   : > { %v1418_v26 = vmax.f32 %v1290_v20, 0.0  ;;  %v1450_v27 = vmax.f32 %v1322_v21, 0.0 }
 0x178   : > { %v2318_v28 = vpack.c.bf16 %v1418_v26, %v1417_v24  ;;  %v2398_v29 = vpack.c.bf16 %v1450_v27, %v1449_v25  ;;  %v1035_v30 = vpop.f32.mrf.mxu2  ;;  %v1115_v31 = vpop.f32.mrf.mxu3 }
 0x179   : > { %v1224_v34 = vmul.f32 %v3098_v45, %v1035_v30  ;;  %v1256_v35 = vmul.f32 %v3098_v45, %v1115_v31  ;;  %v878_v36 = vpop.f32.mrf.mxu0  ;;  %v958_v37 = vpop.f32.mrf.mxu1 }
 0x17a   : > { %2586 = vst [vmem:[%s2850_s19 + $0x60] sm:$0xff] %v2318_v28   ;;  %v1161_v44 = vmul.f32 %v3098_v45, %v878_v36  ;;  %v1193_v47 = vmul.f32 %v3098_v45, %v958_v37 }
 0x17b   : > { %2602 = vst [vmem:[%s2850_s19 + $0xe0] sm:$0xff] %v2398_v29   ;;  %v1354_v38 = vadd.f32 %v3108_v60, %v1224_v34  ;;  %v1386_v39 = vadd.f32 %v3108_v60, %v1256_v35 }
 0x17c   : > { %v1291_v46 = vadd.f32 %v3108_v60, %v1161_v44  ;;  %v1323_v55 = vadd.f32 %v3108_v60, %v1193_v47 }
 0x17d   : > { %v1482_v42 = vmax.f32 %v1354_v38, 0.0  ;;  %v1514_v43 = vmax.f32 %v1386_v39, 0.0 }
 0x17e   : > { %v1419_v62 = vmax.f32 %v1291_v46, 0.0  ;;  %v1451_v63 = vmax.f32 %v1323_v55, 0.0 }
 0x17f   : > { %v2478_v49 = vpack.c.bf16 %v1482_v42, %v1481_v40  ;;  %v2558_v50 = vpack.c.bf16 %v1514_v43, %v1513_v41 }
 0x180   : > { %v1038_v51 = vpop.f32.mrf.mxu2  ;;  %v1118_v52 = vpop.f32.mrf.mxu3 }
 0x181   : > { %2618 = vst [vmem:[%s2850_s19 + $0x160] sm:$0xff] %v2478_v49   ;;  %v880_v53 = vpop.f32.mrf.mxu0  ;;  %v960_v54 = vpop.f32.mrf.mxu1  ;;  %v1225_v48 = vmul.f32 %v3098_v45, %v1038_v51  ;;  %v1257_v61 = vmul.f32 %v3098_v45, %v1118_v52 }
 0x182   : > { %2634 = vst [vmem:[%s2850_s19 + $0x1e0] sm:$0xff] %v2558_v50   ;;  %v1162_v56 = vmul.f32 %v3098_v45, %v880_v53  ;;  %v1194_v57 = vmul.f32 %v3098_v45, %v960_v54 }
 0x183   : > { %v1355_v6 = vadd.f32 %v3108_v60, %v1225_v48  ;;  %v1387_v7 = vadd.f32 %v3108_v60, %v1257_v61 }
 0x184   : > { %v1292_v58 = vadd.f32 %v3108_v60, %v1162_v56  ;;  %v1324_v59 = vadd.f32 %v3108_v60, %v1194_v57 }
 0x185   : > { %v1483_v14 = vmax.f32 %v1355_v6, 0.0  ;;  %v1515_v15 = vmax.f32 %v1387_v7, 0.0 }
 0x186   : > { %v1420_v0 = vmax.f32 %v1292_v58, 0.0  ;;  %v1452_v1 = vmax.f32 %v1324_v59, 0.0 }
 0x188   : > { %v2323_v2 = vpack.c.bf16 %v1420_v0, %v1419_v62  ;;  %v2403_v3 = vpack.c.bf16 %v1452_v1, %v1451_v63  ;;  %v1040_v4 = vpop.f32.mrf.mxu2  ;;  %v1120_v5 = vpop.f32.mrf.mxu3 }
 0x189   : > { %v1226_v8 = vmul.f32 %v3098_v45, %v1040_v4  ;;  %v1258_v9 = vmul.f32 %v3098_v45, %v1120_v5  ;;  %v883_v10 = vpop.f32.mrf.mxu0  ;;  %v963_v11 = vpop.f32.mrf.mxu1 }
 0x18a   : > { %2587 = vst [vmem:[%s2850_s19 + $0x68] sm:$0xff] %v2323_v2   ;;  %v1163_v18 = vmul.f32 %v3098_v45, %v883_v10  ;;  %v1195_v19 = vmul.f32 %v3098_v45, %v963_v11 }
 0x18b   : > { %2603 = vst [vmem:[%s2850_s19 + $0xe8] sm:$0xff] %v2403_v3   ;;  %v1356_v12 = vadd.f32 %v3108_v60, %v1226_v8  ;;  %v1388_v13 = vadd.f32 %v3108_v60, %v1258_v9 }
 0x18c   : > { %v1293_v26 = vadd.f32 %v3108_v60, %v1163_v18  ;;  %v1325_v27 = vadd.f32 %v3108_v60, %v1195_v19 }
 0x18d   : > { %v1484_v16 = vmax.f32 %v1356_v12, 0.0  ;;  %v1516_v17 = vmax.f32 %v1388_v13, 0.0 }
 0x18e   : > { %v1421_v34 = vmax.f32 %v1293_v26, 0.0  ;;  %v1453_v35 = vmax.f32 %v1325_v27, 0.0 }
 0x18f   : > { %v2483_v20 = vpack.c.bf16 %v1484_v16, %v1483_v14  ;;  %v2563_v21 = vpack.c.bf16 %v1516_v17, %v1515_v15 }
 0x190   : > { %v1043_v22 = vpop.f32.mrf.mxu2  ;;  %v1123_v23 = vpop.f32.mrf.mxu3 }
 0x191   : > { %2619 = vst [vmem:[%s2850_s19 + $0x168] sm:$0xff] %v2483_v20   ;;  %v885_v24 = vpop.f32.mrf.mxu0  ;;  %v965_v25 = vpop.f32.mrf.mxu1  ;;  %v1227_v32 = vmul.f32 %v3098_v45, %v1043_v22  ;;  %v1259_v33 = vmul.f32 %v3098_v45, %v1123_v23 }
 0x192   : > { %2635 = vst [vmem:[%s2850_s19 + $0x1e8] sm:$0xff] %v2563_v21   ;;  %v1164_v28 = vmul.f32 %v3098_v45, %v885_v24  ;;  %v1196_v29 = vmul.f32 %v3098_v45, %v965_v25 }
 0x193   : > { %v1357_v42 = vadd.f32 %v3108_v60, %v1227_v32  ;;  %v1389_v43 = vadd.f32 %v3108_v60, %v1259_v33 }
 0x194   : > { %v1294_v30 = vadd.f32 %v3108_v60, %v1164_v28  ;;  %v1326_v31 = vadd.f32 %v3108_v60, %v1196_v29 }
 0x195   : > { %v1485_v53 = vmax.f32 %v1357_v42, 0.0  ;;  %v1517_v54 = vmax.f32 %v1389_v43, 0.0 }
 0x196   : > { %v1422_v36 = vmax.f32 %v1294_v30, 0.0  ;;  %v1454_v37 = vmax.f32 %v1326_v31, 0.0 }
 0x198   : > { %v2328_v38 = vpack.c.bf16 %v1422_v36, %v1421_v34  ;;  %v2408_v39 = vpack.c.bf16 %v1454_v37, %v1453_v35  ;;  %v1045_v40 = vpop.f32.mrf.mxu2  ;;  %v1125_v41 = vpop.f32.mrf.mxu3 }
 0x199   : > { %v1228_v44 = vmul.f32 %v3098_v45, %v1045_v40  ;;  %v1260_v47 = vmul.f32 %v3098_v45, %v1125_v41  ;;  %v888_v49 = vpop.f32.mrf.mxu0  ;;  %v968_v50 = vpop.f32.mrf.mxu1 }
 0x19a   : > { %2588 = vst [vmem:[%s2850_s19 + $0x70] sm:$0xff] %v2328_v38   ;;  %v1165_v56 = vmul.f32 %v3098_v45, %v888_v49  ;;  %v1197_v57 = vmul.f32 %v3098_v45, %v968_v50 }
 0x19b   : > { %2604 = vst [vmem:[%s2850_s19 + $0xf0] sm:$0xff] %v2408_v39   ;;  %v1358_v51 = vadd.f32 %v3108_v60, %v1228_v44  ;;  %v1390_v52 = vadd.f32 %v3108_v60, %v1260_v47 }
 0x19c   : > { %v1295_v0 = vadd.f32 %v3108_v60, %v1165_v56  ;;  %v1327_v1 = vadd.f32 %v3108_v60, %v1197_v57 }
 0x19d   : > { %v1486_v46 = vmax.f32 %v1358_v51, 0.0  ;;  %v1518_v55 = vmax.f32 %v1390_v52, 0.0 }
 0x19e   : > { %v1423_v8 = vmax.f32 %v1295_v0, 0.0  ;;  %v1455_v9 = vmax.f32 %v1327_v1, 0.0 }
 0x19f   : > { %v2488_v58 = vpack.c.bf16 %v1486_v46, %v1485_v53  ;;  %v2568_v59 = vpack.c.bf16 %v1518_v55, %v1517_v54 }
 0x1a0   : > { %v1048_v48 = vpop.f32.mrf.mxu2  ;;  %v1128_v61 = vpop.f32.mrf.mxu3 }
 0x1a1   : > { %2620 = vst [vmem:[%s2850_s19 + $0x170] sm:$0xff] %v2488_v58   ;;  %v890_v62 = vpop.f32.mrf.mxu0  ;;  %v970_v63 = vpop.f32.mrf.mxu1  ;;  %v1229_v6 = vmul.f32 %v3098_v45, %v1048_v48  ;;  %v1261_v7 = vmul.f32 %v3098_v45, %v1128_v61 }
 0x1a2   : > { %2636 = vst [vmem:[%s2850_s19 + $0x1f0] sm:$0xff] %v2568_v59   ;;  %v1166_v2 = vmul.f32 %v3098_v45, %v890_v62  ;;  %v1198_v3 = vmul.f32 %v3098_v45, %v970_v63 }
 0x1a3   : > { %v1359_v16 = vadd.f32 %v3108_v60, %v1229_v6  ;;  %v1391_v17 = vadd.f32 %v3108_v60, %v1261_v7 }
 0x1a4   : > { %v1296_v4 = vadd.f32 %v3108_v60, %v1166_v2  ;;  %v1328_v5 = vadd.f32 %v3108_v60, %v1198_v3 }
 0x1a5   : > { %v1487_v22 = vmax.f32 %v1359_v16, 0.0  ;;  %v1519_v23 = vmax.f32 %v1391_v17, 0.0 }
 0x1a6   : > { %v1424_v10 = vmax.f32 %v1296_v4, 0.0  ;;  %v1456_v11 = vmax.f32 %v1328_v5, 0.0 }
 0x1a8   : > { %v2333_v12 = vpack.c.bf16 %v1424_v10, %v1423_v8  ;;  %v2413_v13 = vpack.c.bf16 %v1456_v11, %v1455_v9  ;;  %v1050_v14 = vpop.f32.mrf.mxu2  ;;  %v1130_v15 = vpop.f32.mrf.mxu3 }
 0x1a9   : > { %v1230_v18 = vmul.f32 %v3098_v45, %v1050_v14  ;;  %v1262_v19 = vmul.f32 %v3098_v45, %v1130_v15 }
 0x1aa   : > { %2589 = vst [vmem:[%s2850_s19 + $0x78] sm:$0xff] %v2333_v12  }
 0x1ab   : > { %2605 = vst [vmem:[%s2850_s19 + $0xf8] sm:$0xff] %v2413_v13   ;;  %v1360_v20 = vadd.f32 %v3108_v60, %v1230_v18  ;;  %v1392_v21 = vadd.f32 %v3108_v60, %v1262_v19 }
 0x1ad   : > { %v1488_v24 = vmax.f32 %v1360_v20, 0.0  ;;  %v1520_v25 = vmax.f32 %v1392_v21, 0.0 }
 0x1af   : > { %v2493_v26 = vpack.c.bf16 %v1488_v24, %v1487_v22  ;;  %v2573_v27 = vpack.c.bf16 %v1520_v25, %v1519_v23 }
 0x1b1   : > { %2621 = vst [vmem:[%s2850_s19 + $0x178] sm:$0xff] %v2493_v26  }
 0x1b2   : > { %2637 = vst [vmem:[%s2850_s19 + $0x1f8] sm:$0xff] %v2573_v27  }
 0x1b3 PF: > { %s13_s14 = sadd.s32 1, %s2712_s14   ;;  %s3213_s12 = smov %s2708_s13 }
 0x1b4   : > { %p10_p5 = scmp.ge.s32.totalorder %s13_s14, 4   ;;  %s3214_s13 = smov %s3216_s15 }
 0x1b6   :  { %12 = sbr.rel (!%p10_p5) target bundleno = 2 (0x2), region = 68 }

// kernel: forward.8
= control target key start
LH: loop header
LB: loop body
LE: loop exit
PB: predicated region body
PF: predicated region fallthrough
CT: control target
= control target key end

     0   :  { %s1434_s12 = smov 0   ;;  %s1436_s13 = smov 0   ;;  %s1680_s0 = inlined_call_operand.vmem [shape: bf16[512,256], index: 0, kind: input, shape index: {}]   ;;  %s1681_s1 = inlined_call_operand.vmem [shape: bf16[256,128], index: 1, kind: input, shape index: {}]   ;;  %s1682_s2 = inlined_call_operand.vmem [shape: f32[2,128], index: 2, kind: input, shape index: {}]   ;;  %s1683_s3 = inlined_call_operand.vmem [shape: bf16[512,128], index: 3, kind: output, shape index: {}]  }
   0x1   :  { %s1438_s14 = smov 0  }
   0x2 LB: > { %s25_s15 = sadd.s32 1, %s1408_s13  ;;  %p1004_p0 = scmp.ge.s32.totalorder %s1412_s14, 1  ;;  %s1412_s14 = sphi %s1438_s14, %s13_s14   ;;  %s1408_s13 = sphi %s1436_s13, %s1685_s13   ;;  %s1404_s12 = sphi %s1434_s12, %s1684_s12  }
   0x3   : > { %p27_p1 = scmp.ge.s32.totalorder %s25_s15, 2  ;;  %p171_p2 = scmp.lt.s32.totalorder %s1412_s14, 3 }
   0x5   : > { %s1687_s15 = smov (%p27_p1, %s25_s15), 0  ;;  %p172_p3 = pnand %p1004_p0, %p171_p2 }
   0x6   : > { %s1005_s28 = sshll.u32 (!%p172_p3), %s1404_s12, 5 }
   0x7   : > { %175 = sbr.rel (%p172_p3) target bundleno = 308 (0x134), region = 32  ;;  %p208_p4 = scmp.lt.s32.totalorder (!%p172_p3), %s1005_s28, 63 }
   0xc   : > { %v1244_v0 = vld [vmem:[%s1681_s1 + $0x38] sm:$0xff]  ;;  %v1243_v2 = vld [vmem:[%s1681_s1 + $0x30] sm:$0xff]  ;;  %v1242_v4 = vld [vmem:[%s1681_s1 + $0x28] sm:$0xff]  ;;  %s1689_s28 = smov (!%p208_p4, %s1005_s28), 63 }
   0xd   : > { %v1252_v1 = vld [vmem:[%s1681_s1 + $0x78] sm:$0xff]  ;;  %551 = vmatpush.bf16.msra.mxu0 %v1244_v0  ;;  %1348 = vmatpush.bf16.msra.mxu2 %v1244_v0  ;;  %v1251_v3 = vld [vmem:[%s1681_s1 + $0x70] sm:$0xff]  ;;  %v1250_v5 = vld [vmem:[%s1681_s1 + $0x68] sm:$0xff]  ;;  %s1204_s17 = sshll.u32 %s1689_s28, 3  ;;  %s1009_s7 = sshll.u32 %s1689_s28, 2 }
   0xe   : > { %640 = vmatpush.bf16.msra.mxu1 %v1252_v1  ;;  %1356 = vmatpush.bf16.msra.mxu3 %v1252_v1  ;;  %v1241_v6 = vld [vmem:[%s1681_s1 + $0x20] sm:$0xff]  ;;  %v1240_v8 = vld [vmem:[%s1681_s1 + $0x18] sm:$0xff]  ;;  %v1239_v10 = vld [vmem:[%s1681_s1 + $0x10] sm:$0xff]  ;;  %s1500_s22 = scalar_lea.vmem %s1680_s0, %s1204_s17  ;;  %s1594_s10 = scalar_lea.vmem %s1683_s3, %s1009_s7 }
   0xf   : > { %v1249_v7 = vld [vmem:[%s1681_s1 + $0x60] sm:$0xff]  ;;  %v1248_v9 = vld [vmem:[%s1681_s1 + $0x58] sm:$0xff]  ;;  %v1247_v11 = vld [vmem:[%s1681_s1 + $0x50] sm:$0xff] }
  0x10   : > { %v1238_v12 = vld [vmem:[%s1681_s1 + $0x8] sm:$0xff]  ;;  %v1237_v14 = vld [vmem:[%s1681_s1] sm:$0xff]  ;;  %v1020_v28 = vld [vmem:[%s1500_s22 + $0x10] sm:$0xf] }
  0x11   : > { %552 = vmatpush.bf16.msra.mxu0 %v1243_v2  ;;  %1349 = vmatpush.bf16.msra.mxu2 %v1243_v2  ;;  %v1246_v13 = vld [vmem:[%s1681_s1 + $0x48] sm:$0xff]  ;;  %v1245_v15 = vld [vmem:[%s1681_s1 + $0x40] sm:$0xff]  ;;  %v1208_v29 = vld [vmem:[%s1500_s22 + $0x14] sm:$0xf0] }
  0x12   : > { %641 = vmatpush.bf16.msra.mxu1 %v1251_v3  ;;  %1357 = vmatpush.bf16.msra.mxu3 %v1251_v3  ;;  %v1012_v16 = vld [vmem:[%s1500_s22] sm:$0xf]  ;;  %v1206_v17 = vld [vmem:[%s1500_s22 + $0x4] sm:$0xf0]  ;;  %v1205_v20 = vld [vmem:[%s1500_s22 + $0x4] sm:$0xf]  ;;  %v1021_v36 = vor.u32 %v1208_v29, %v1020_v28 }
  0x13   : > { %v1076_v18 = vld [vmem:[%s1500_s22 + $0x80] sm:$0xf]  ;;  %v1222_v19 = vld [vmem:[%s1500_s22 + $0x84] sm:$0xf0]  ;;  %v1014_v21 = vld [vmem:[%s1500_s22 + $0x8] sm:$0xf0]  ;;  %v1013_v24 = vor.u32 %v1206_v17, %v1012_v16 }
  0x14   : > { %v1221_v22 = vld [vmem:[%s1500_s22 + $0x84] sm:$0xf]  ;;  %v1078_v23 = vld [vmem:[%s1500_s22 + $0x88] sm:$0xf0]  ;;  %v1077_v25 = vor.u32 %v1222_v19, %v1076_v18  ;;  %v1017_v26 = vor.u32 %v1205_v20, %v1014_v21  ;;  %v1084_v30 = vld [vmem:[%s1500_s22 + $0x90] sm:$0xf] }
  0x15   : > { %553 = vmatpush.bf16.msra.mxu0 %v1242_v4  ;;  %1350 = vmatpush.bf16.msra.mxu2 %v1242_v4  ;;  %v1081_v27 = vor.u32 %v1221_v22, %v1078_v23  ;;  %v1224_v31 = vld [vmem:[%s1500_s22 + $0x94] sm:$0xf0]  ;;  %v1207_v32 = vld [vmem:[%s1500_s22 + $0x14] sm:$0xf]  ;;  %v1022_v33 = vld [vmem:[%s1500_s22 + $0x18] sm:$0xf0] }
  0x16   : > { %642 = vmatpush.bf16.msra.mxu1 %v1250_v5  ;;  %1358 = vmatpush.bf16.msra.mxu3 %v1250_v5  ;;  %v1223_v34 = vld [vmem:[%s1500_s22 + $0x94] sm:$0xf]  ;;  %v1086_v35 = vld [vmem:[%s1500_s22 + $0x98] sm:$0xf0]  ;;  %v1085_v37 = vor.u32 %v1224_v31, %v1084_v30  ;;  %v1025_v38 = vor.u32 %v1207_v32, %v1022_v33  ;;  %v1028_v40 = vld [vmem:[%s1500_s22 + $0x20] sm:$0xf] }
  0x17   : > { %v1089_v39 = vor.u32 %v1223_v34, %v1086_v35  ;;  %v1210_v41 = vld [vmem:[%s1500_s22 + $0x24] sm:$0xf0]  ;;  %v1092_v42 = vld [vmem:[%s1500_s22 + $0xa0] sm:$0xf]  ;;  %v1209_v44 = vld [vmem:[%s1500_s22 + $0x24] sm:$0xf] }
  0x18   : > { %v1226_v43 = vld [vmem:[%s1500_s22 + $0xa4] sm:$0xf0]  ;;  %v1030_v45 = vld [vmem:[%s1500_s22 + $0x28] sm:$0xf0]  ;;  %v1225_v46 = vld [vmem:[%s1500_s22 + $0xa4] sm:$0xf]  ;;  %v1029_v48 = vor.u32 %v1210_v41, %v1028_v40 }
  0x19   : > { %554 = vmatpush.bf16.msra.mxu0 %v1241_v6  ;;  %1351 = vmatpush.bf16.msra.mxu2 %v1241_v6  ;;  %v1094_v47 = vld [vmem:[%s1500_s22 + $0xa8] sm:$0xf0]  ;;  %v1093_v49 = vor.u32 %v1226_v43, %v1092_v42  ;;  %v1033_v50 = vor.u32 %v1209_v44, %v1030_v45  ;;  %v1036_v52 = vld [vmem:[%s1500_s22 + $0x30] sm:$0xf]  ;;  %v1212_v53 = vld [vmem:[%s1500_s22 + $0x34] sm:$0xf0] }
  0x1a   : > { %643 = vmatpush.bf16.msra.mxu1 %v1249_v7  ;;  %1359 = vmatpush.bf16.msra.mxu3 %v1249_v7  ;;  %v1097_v51 = vor.u32 %v1225_v46, %v1094_v47  ;;  %v1100_v54 = vld [vmem:[%s1500_s22 + $0xb0] sm:$0xf]  ;;  %v1228_v55 = vld [vmem:[%s1500_s22 + $0xb4] sm:$0xf0]  ;;  %v1211_v56 = vld [vmem:[%s1500_s22 + $0x34] sm:$0xf]  ;;  %v1037_v60 = vor.u32 %v1212_v53, %v1036_v52 }
  0x1b   : > { %v1038_v57 = vld [vmem:[%s1500_s22 + $0x38] sm:$0xf0]  ;;  %v1227_v58 = vld [vmem:[%s1500_s22 + $0xb4] sm:$0xf]  ;;  %v1101_v61 = vor.u32 %v1228_v55, %v1100_v54  ;;  %v1044_v0 = vld [vmem:[%s1500_s22 + $0x40] sm:$0xf] }
  0x1c   : > { %v1102_v59 = vld [vmem:[%s1500_s22 + $0xb8] sm:$0xf0]  ;;  %v1041_v62 = vor.u32 %v1211_v56, %v1038_v57  ;;  %v1214_v1 = vld [vmem:[%s1500_s22 + $0x44] sm:$0xf0]  ;;  %v1108_v2 = vld [vmem:[%s1500_s22 + $0xc0] sm:$0xf] }
  0x1d   : > { %555 = vmatpush.bf16.msra.mxu0 %v1240_v8  ;;  %1352 = vmatpush.bf16.msra.mxu2 %v1240_v8  ;;  %v1105_v63 = vor.u32 %v1227_v58, %v1102_v59  ;;  %v1230_v3 = vld [vmem:[%s1500_s22 + $0xc4] sm:$0xf0]  ;;  %v1213_v4 = vld [vmem:[%s1500_s22 + $0x44] sm:$0xf]  ;;  %v1046_v5 = vld [vmem:[%s1500_s22 + $0x48] sm:$0xf0]  ;;  %v1045_v8 = vor.u32 %v1214_v1, %v1044_v0 }
  0x1e   : > { %644 = vmatpush.bf16.msra.mxu1 %v1248_v9  ;;  %1360 = vmatpush.bf16.msra.mxu3 %v1248_v9  ;;  %v1229_v6 = vld [vmem:[%s1500_s22 + $0xc4] sm:$0xf]  ;;  %v1110_v7 = vld [vmem:[%s1500_s22 + $0xc8] sm:$0xf0]  ;;  %v1109_v9 = vor.u32 %v1230_v3, %v1108_v2  ;;  %v1215_v16 = vld [vmem:[%s1500_s22 + $0x54] sm:$0xf] }
  0x1f   : > { %v1054_v17 = vld [vmem:[%s1500_s22 + $0x58] sm:$0xf0]  ;;  %v1231_v18 = vld [vmem:[%s1500_s22 + $0xd4] sm:$0xf]  ;;  %v1217_v28 = vld [vmem:[%s1500_s22 + $0x64] sm:$0xf] }
  0x20   : > { %v1118_v19 = vld [vmem:[%s1500_s22 + $0xd8] sm:$0xf0]  ;;  %v1057_v22 = vor.u32 %v1215_v16, %v1054_v17  ;;  %v1062_v29 = vld [vmem:[%s1500_s22 + $0x68] sm:$0xf0]  ;;  %v1233_v30 = vld [vmem:[%s1500_s22 + $0xe4] sm:$0xf] }
  0x21   : > { %556 = vmatpush.bf16.msra.mxu0 %v1239_v10  ;;  %1353 = vmatpush.bf16.msra.mxu2 %v1239_v10  ;;  %v1049_v10 = vor.u32 %v1213_v4, %v1046_v5  ;;  %v1121_v23 = vor.u32 %v1231_v18, %v1118_v19  ;;  %v1126_v31 = vld [vmem:[%s1500_s22 + $0xe8] sm:$0xf0]  ;;  %v1065_v34 = vor.u32 %v1217_v28, %v1062_v29  ;;  %v1219_v40 = vld [vmem:[%s1500_s22 + $0x74] sm:$0xf]  ;;  %v1070_v41 = vld [vmem:[%s1500_s22 + $0x78] sm:$0xf0] }
  0x22   : > { %645 = vmatpush.bf16.msra.mxu1 %v1247_v11  ;;  %1361 = vmatpush.bf16.msra.mxu3 %v1247_v11  ;;  %v1113_v11 = vor.u32 %v1229_v6, %v1110_v7  ;;  %v1129_v35 = vor.u32 %v1233_v30, %v1126_v31  ;;  %v1235_v42 = vld [vmem:[%s1500_s22 + $0xf4] sm:$0xf]  ;;  %v1134_v43 = vld [vmem:[%s1500_s22 + $0xf8] sm:$0xf0]  ;;  %v1073_v46 = vor.u32 %v1219_v40, %v1070_v41  ;;  %v1584_v55 = vld [vmem:[%s1682_s2 + $0x1] ss:$0 sm:$0xff] }
  0x23   : > { %v1137_v47 = vor.u32 %v1235_v42, %v1134_v43 }
  0x25   : > { %557 = vmatpush.bf16.msra.mxu0 %v1238_v12  ;;  %1354 = vmatpush.bf16.msra.mxu2 %v1238_v12  ;;  %v1052_v12 = vld [vmem:[%s1500_s22 + $0x50] sm:$0xf] }
  0x26   : > { %646 = vmatpush.bf16.msra.mxu1 %v1246_v13  ;;  %1362 = vmatpush.bf16.msra.mxu3 %v1246_v13  ;;  %v1216_v13 = vld [vmem:[%s1500_s22 + $0x54] sm:$0xf0] }
  0x27   : > { %v1053_v20 = vor.u32 %v1216_v13, %v1052_v12 }
  0x29   : > { %558 = vmatpush.bf16.msra.mxu0 %v1237_v14  ;;  %1355 = vmatpush.bf16.msra.mxu2 %v1237_v14  ;;  %v1116_v14 = vld [vmem:[%s1500_s22 + $0xd0] sm:$0xf] }
  0x2a   : > { %647 = vmatpush.bf16.msra.mxu1 %v1245_v15  ;;  %1363 = vmatpush.bf16.msra.mxu3 %v1245_v15  ;;  %v1232_v15 = vld [vmem:[%s1500_s22 + $0xd4] sm:$0xf0] }
  0x2b   : > { %v1117_v21 = vor.u32 %v1232_v15, %v1116_v14 }
  0x2c   : > { %559 = vmatmul.bf16.vlgmr.msra.gmra.mxu0 %v1013_v24  ;;  %599 = vmatmul.bf16.vlgmr.msra.gmra.mxu2 %v1077_v25  ;;  %v1060_v24 = vld [vmem:[%s1500_s22 + $0x60] sm:$0xf]  ;;  %v1218_v25 = vld [vmem:[%s1500_s22 + $0x64] sm:$0xf0] }
  0x2d   : > { %648 = vmatmul.bf16.vlgmr.msra.gmra.mxu1 %v1017_v26  ;;  %688 = vmatmul.bf16.vlgmr.msra.gmra.mxu3 %v1081_v27  ;;  %v1124_v26 = vld [vmem:[%s1500_s22 + $0xe0] sm:$0xf]  ;;  %v1234_v27 = vld [vmem:[%s1500_s22 + $0xe4] sm:$0xf0]  ;;  %v1061_v32 = vor.u32 %v1218_v25, %v1060_v24 }
  0x2e   : > { %v1125_v33 = vor.u32 %v1234_v27, %v1124_v26 }
  0x3c   : > { %564 = vmatmul.bf16.gmra.mxu0 %v1021_v36  ;;  %604 = vmatmul.bf16.gmra.mxu2 %v1085_v37  ;;  %v1068_v36 = vld [vmem:[%s1500_s22 + $0x70] sm:$0xf]  ;;  %v1220_v37 = vld [vmem:[%s1500_s22 + $0x74] sm:$0xf0] }
  0x3d   : > { %653 = vmatmul.bf16.gmra.mxu1 %v1025_v38  ;;  %693 = vmatmul.bf16.gmra.mxu3 %v1089_v39  ;;  %v1132_v38 = vld [vmem:[%s1500_s22 + $0xf0] sm:$0xf]  ;;  %v1236_v39 = vld [vmem:[%s1500_s22 + $0xf4] sm:$0xf0]  ;;  %v1069_v44 = vor.u32 %v1220_v37, %v1068_v36 }
  0x3e   : > { %v1133_v45 = vor.u32 %v1236_v39, %v1132_v38 }
  0x4c   : > { %569 = vmatmul.bf16.gmra.mxu0 %v1029_v48  ;;  %609 = vmatmul.bf16.gmra.mxu2 %v1093_v49 }
  0x4d   : > { %658 = vmatmul.bf16.gmra.mxu1 %v1033_v50  ;;  %698 = vmatmul.bf16.gmra.mxu3 %v1097_v51  ;;  %v1578_v51 = vld [vmem:[%s1682_s2] ss:$0 sm:$0xff] }
  0x5c   : > { %574 = vmatmul.bf16.gmra.mxu0 %v1037_v60  ;;  %614 = vmatmul.bf16.gmra.mxu2 %v1101_v61 }
  0x5d   : > { %663 = vmatmul.bf16.gmra.mxu1 %v1041_v62  ;;  %703 = vmatmul.bf16.gmra.mxu3 %v1105_v63 }
  0x6c   : > { %579 = vmatmul.bf16.gmra.mxu0 %v1045_v8  ;;  %619 = vmatmul.bf16.gmra.mxu2 %v1109_v9 }
  0x6d   : > { %668 = vmatmul.bf16.gmra.mxu1 %v1049_v10  ;;  %708 = vmatmul.bf16.gmra.mxu3 %v1113_v11 }
  0x7c   : > { %584 = vmatmul.bf16.gmra.mxu0 %v1053_v20  ;;  %624 = vmatmul.bf16.gmra.mxu2 %v1117_v21 }
  0x7d   : > { %673 = vmatmul.bf16.gmra.mxu1 %v1057_v22  ;;  %713 = vmatmul.bf16.gmra.mxu3 %v1121_v23 }
  0x8c   : > { %589 = vmatmul.bf16.gmra.mxu0 %v1061_v32  ;;  %629 = vmatmul.bf16.gmra.mxu2 %v1125_v33 }
  0x8d   : > { %678 = vmatmul.bf16.gmra.mxu1 %v1065_v34  ;;  %718 = vmatmul.bf16.gmra.mxu3 %v1129_v35 }
  0x9c   : > { %594 = vmatmul.bf16.gmra.mxu0 %v1069_v44  ;;  %634 = vmatmul.bf16.gmra.mxu2 %v1133_v45 }
  0x9d   : > { %683 = vmatmul.bf16.gmra.mxu1 %v1073_v46  ;;  %723 = vmatmul.bf16.gmra.mxu3 %v1137_v47 }
  0xa9   : > { %v560_v48 = vpop.f32.mrf.mxu0 }
  0xaa   : > { %v649_v49 = vpop.f32.mrf.mxu1 }
  0xab   : > { %v650_v50 = vadd.f32 %v649_v49, %v560_v48 }
  0xad   : > { %v731_v54 = vmul.f32 %v1578_v51, %v650_v50 }
  0xaf   : > { %v600_v52 = vpop.f32.mrf.mxu2  ;;  %v765_v60 = vadd.f32 %v1584_v55, %v731_v54 }
  0xb0   : > { %v689_v53 = vpop.f32.mrf.mxu3 }
  0xb1   : > { %v562_v56 = vpop.f32.mrf.mxu0  ;;  %v690_v58 = vadd.f32 %v689_v53, %v600_v52  ;;  %v797_v2 = vmax.f32 %v765_v60, 0.0 }
  0xb2   : > { %v651_v57 = vpop.f32.mrf.mxu1 }
  0xb3   : > { %v652_v59 = vadd.f32 %v651_v57, %v562_v56  ;;  %v747_v62 = vmul.f32 %v1578_v51, %v690_v58 }
  0xb5   : > { %v732_v61 = vmul.f32 %v1578_v51, %v652_v59  ;;  %v781_v7 = vadd.f32 %v1584_v55, %v747_v62 }
  0xb7   : > { %v766_v63 = vadd.f32 %v1584_v55, %v732_v61  ;;  %v602_v0 = vpop.f32.mrf.mxu2  ;;  %v813_v12 = vmax.f32 %v781_v7, 0.0 }
  0xb8   : > { %v691_v1 = vpop.f32.mrf.mxu3 }
  0xb9   : > { %v798_v3 = vmax.f32 %v766_v63, 0.0  ;;  %v692_v4 = vadd.f32 %v691_v1, %v602_v0  ;;  %v565_v5 = vpop.f32.mrf.mxu0 }
  0xba   : > { %v654_v6 = vpop.f32.mrf.mxu1 }
  0xbb   : > { %v1256_v8 = vpack.c.bf16 %v798_v3, %v797_v2  ;;  %v748_v9 = vmul.f32 %v1578_v51, %v692_v4  ;;  %v655_v11 = vadd.f32 %v654_v6, %v565_v5 }
  0xbd   : > { %1257 = vst [vmem:[%s1594_s10] sm:$0xff] %v1256_v8   ;;  %v782_v10 = vadd.f32 %v1584_v55, %v748_v9  ;;  %v733_v17 = vmul.f32 %v1578_v51, %v655_v11 }
  0xbf   : > { %v814_v13 = vmax.f32 %v782_v10, 0.0  ;;  %v605_v14 = vpop.f32.mrf.mxu2  ;;  %v767_v22 = vadd.f32 %v1584_v55, %v733_v17 }
  0xc0   : > { %v694_v15 = vpop.f32.mrf.mxu3 }
  0xc1   : > { %v1296_v16 = vpack.c.bf16 %v814_v13, %v813_v12  ;;  %v567_v18 = vpop.f32.mrf.mxu0  ;;  %v695_v20 = vadd.f32 %v694_v15, %v605_v14  ;;  %v799_v28 = vmax.f32 %v767_v22, 0.0 }
  0xc2   : > { %v656_v19 = vpop.f32.mrf.mxu1 }
  0xc3   : > { %1340 = vst [vmem:[%s1594_s10 + $0x40] sm:$0xff] %v1296_v16   ;;  %v657_v21 = vadd.f32 %v656_v19, %v567_v18  ;;  %v749_v24 = vmul.f32 %v1578_v51, %v695_v20 }
  0xc5   : > { %v734_v23 = vmul.f32 %v1578_v51, %v657_v21  ;;  %v783_v33 = vadd.f32 %v1584_v55, %v749_v24 }
  0xc7   : > { %v768_v25 = vadd.f32 %v1584_v55, %v734_v23  ;;  %v607_v26 = vpop.f32.mrf.mxu2  ;;  %v815_v38 = vmax.f32 %v783_v33, 0.0 }
  0xc8   : > { %v696_v27 = vpop.f32.mrf.mxu3 }
  0xc9   : > { %v800_v29 = vmax.f32 %v768_v25, 0.0  ;;  %v697_v30 = vadd.f32 %v696_v27, %v607_v26  ;;  %v570_v31 = vpop.f32.mrf.mxu0 }
  0xca   : > { %v659_v32 = vpop.f32.mrf.mxu1 }
  0xcb   : > { %v1261_v34 = vpack.c.bf16 %v800_v29, %v799_v28  ;;  %v750_v35 = vmul.f32 %v1578_v51, %v697_v30  ;;  %v660_v37 = vadd.f32 %v659_v32, %v570_v31 }
  0xcd   : > { %1333 = vst [vmem:[%s1594_s10 + $0x8] sm:$0xff] %v1261_v34   ;;  %v784_v36 = vadd.f32 %v1584_v55, %v750_v35  ;;  %v735_v43 = vmul.f32 %v1578_v51, %v660_v37 }
  0xcf   : > { %v816_v39 = vmax.f32 %v784_v36, 0.0  ;;  %v610_v40 = vpop.f32.mrf.mxu2  ;;  %v769_v48 = vadd.f32 %v1584_v55, %v735_v43 }
  0xd0   : > { %v699_v41 = vpop.f32.mrf.mxu3 }
  0xd1   : > { %v1301_v42 = vpack.c.bf16 %v816_v39, %v815_v38  ;;  %v572_v44 = vpop.f32.mrf.mxu0  ;;  %v700_v46 = vadd.f32 %v699_v41, %v610_v40  ;;  %v801_v56 = vmax.f32 %v769_v48, 0.0 }
  0xd2   : > { %v661_v45 = vpop.f32.mrf.mxu1 }
  0xd3   : > { %1341 = vst [vmem:[%s1594_s10 + $0x48] sm:$0xff] %v1301_v42   ;;  %v662_v47 = vadd.f32 %v661_v45, %v572_v44  ;;  %v751_v50 = vmul.f32 %v1578_v51, %v700_v46 }
  0xd5   : > { %v736_v49 = vmul.f32 %v1578_v51, %v662_v47  ;;  %v785_v61 = vadd.f32 %v1584_v55, %v751_v50 }
  0xd7   : > { %v770_v52 = vadd.f32 %v1584_v55, %v736_v49  ;;  %v612_v53 = vpop.f32.mrf.mxu2  ;;  %v817_v2 = vmax.f32 %v785_v61, 0.0 }
  0xd8   : > { %v701_v54 = vpop.f32.mrf.mxu3 }
  0xd9   : > { %v802_v57 = vmax.f32 %v770_v52, 0.0  ;;  %v702_v58 = vadd.f32 %v701_v54, %v612_v53  ;;  %v575_v59 = vpop.f32.mrf.mxu0 }
  0xda   : > { %v664_v60 = vpop.f32.mrf.mxu1 }
  0xdb   : > { %v1266_v62 = vpack.c.bf16 %v802_v57, %v801_v56  ;;  %v752_v63 = vmul.f32 %v1578_v51, %v702_v58  ;;  %v665_v1 = vadd.f32 %v664_v60, %v575_v59 }
  0xdd   : > { %1334 = vst [vmem:[%s1594_s10 + $0x10] sm:$0xff] %v1266_v62   ;;  %v786_v0 = vadd.f32 %v1584_v55, %v752_v63  ;;  %v737_v7 = vmul.f32 %v1578_v51, %v665_v1 }
  0xdf   : > { %v818_v3 = vmax.f32 %v786_v0, 0.0  ;;  %v615_v4 = vpop.f32.mrf.mxu2  ;;  %v771_v12 = vadd.f32 %v1584_v55, %v737_v7 }
  0xe0   : > { %v704_v5 = vpop.f32.mrf.mxu3 }
  0xe1   : > { %v1306_v6 = vpack.c.bf16 %v818_v3, %v817_v2  ;;  %v577_v8 = vpop.f32.mrf.mxu0  ;;  %v705_v10 = vadd.f32 %v704_v5, %v615_v4  ;;  %v803_v18 = vmax.f32 %v771_v12, 0.0 }
  0xe2   : > { %v666_v9 = vpop.f32.mrf.mxu1 }
  0xe3   : > { %1342 = vst [vmem:[%s1594_s10 + $0x50] sm:$0xff] %v1306_v6   ;;  %v667_v11 = vadd.f32 %v666_v9, %v577_v8  ;;  %v753_v14 = vmul.f32 %v1578_v51, %v705_v10 }
  0xe5   : > { %v738_v13 = vmul.f32 %v1578_v51, %v667_v11  ;;  %v787_v23 = vadd.f32 %v1584_v55, %v753_v14 }
  0xe7   : > { %v772_v15 = vadd.f32 %v1584_v55, %v738_v13  ;;  %v617_v16 = vpop.f32.mrf.mxu2  ;;  %v819_v28 = vmax.f32 %v787_v23, 0.0 }
  0xe8   : > { %v706_v17 = vpop.f32.mrf.mxu3 }
  0xe9   : > { %v804_v19 = vmax.f32 %v772_v15, 0.0  ;;  %v707_v20 = vadd.f32 %v706_v17, %v617_v16  ;;  %v580_v21 = vpop.f32.mrf.mxu0 }
  0xea   : > { %v669_v22 = vpop.f32.mrf.mxu1 }
  0xeb   : > { %v1271_v24 = vpack.c.bf16 %v804_v19, %v803_v18  ;;  %v754_v25 = vmul.f32 %v1578_v51, %v707_v20  ;;  %v670_v27 = vadd.f32 %v669_v22, %v580_v21 }
  0xed   : > { %1335 = vst [vmem:[%s1594_s10 + $0x18] sm:$0xff] %v1271_v24   ;;  %v788_v26 = vadd.f32 %v1584_v55, %v754_v25  ;;  %v739_v33 = vmul.f32 %v1578_v51, %v670_v27 }
  0xef   : > { %v820_v29 = vmax.f32 %v788_v26, 0.0  ;;  %v620_v30 = vpop.f32.mrf.mxu2  ;;  %v773_v38 = vadd.f32 %v1584_v55, %v739_v33 }
  0xf0   : > { %v709_v31 = vpop.f32.mrf.mxu3 }
  0xf1   : > { %v1311_v32 = vpack.c.bf16 %v820_v29, %v819_v28  ;;  %v582_v34 = vpop.f32.mrf.mxu0  ;;  %v710_v36 = vadd.f32 %v709_v31, %v620_v30  ;;  %v805_v44 = vmax.f32 %v773_v38, 0.0 }
  0xf2   : > { %v671_v35 = vpop.f32.mrf.mxu1 }
  0xf3   : > { %1343 = vst [vmem:[%s1594_s10 + $0x58] sm:$0xff] %v1311_v32   ;;  %v672_v37 = vadd.f32 %v671_v35, %v582_v34  ;;  %v755_v40 = vmul.f32 %v1578_v51, %v710_v36 }
  0xf5   : > { %v740_v39 = vmul.f32 %v1578_v51, %v672_v37  ;;  %v789_v49 = vadd.f32 %v1584_v55, %v755_v40 }
  0xf7   : > { %v774_v41 = vadd.f32 %v1584_v55, %v740_v39  ;;  %v622_v42 = vpop.f32.mrf.mxu2  ;;  %v821_v56 = vmax.f32 %v789_v49, 0.0 }
  0xf8   : > { %v711_v43 = vpop.f32.mrf.mxu3 }
  0xf9   : > { %v806_v45 = vmax.f32 %v774_v41, 0.0  ;;  %v712_v46 = vadd.f32 %v711_v43, %v622_v42  ;;  %v585_v47 = vpop.f32.mrf.mxu0 }
  0xfa   : > { %v674_v48 = vpop.f32.mrf.mxu1 }
  0xfb   : > { %v1276_v50 = vpack.c.bf16 %v806_v45, %v805_v44  ;;  %v756_v52 = vmul.f32 %v1578_v51, %v712_v46  ;;  %v675_v54 = vadd.f32 %v674_v48, %v585_v47 }
  0xfd   : > { %1336 = vst [vmem:[%s1594_s10 + $0x20] sm:$0xff] %v1276_v50   ;;  %v790_v53 = vadd.f32 %v1584_v55, %v756_v52  ;;  %v741_v61 = vmul.f32 %v1578_v51, %v675_v54 }
  0xff   : > { %v822_v57 = vmax.f32 %v790_v53, 0.0  ;;  %v625_v58 = vpop.f32.mrf.mxu2  ;;  %v775_v2 = vadd.f32 %v1584_v55, %v741_v61 }
 0x100   : > { %v714_v59 = vpop.f32.mrf.mxu3 }
 0x101   : > { %v1316_v60 = vpack.c.bf16 %v822_v57, %v821_v56  ;;  %v587_v62 = vpop.f32.mrf.mxu0  ;;  %v715_v0 = vadd.f32 %v714_v59, %v625_v58  ;;  %v807_v8 = vmax.f32 %v775_v2, 0.0 }
 0x102   : > { %v676_v63 = vpop.f32.mrf.mxu1 }
 0x103   : > { %1344 = vst [vmem:[%s1594_s10 + $0x60] sm:$0xff] %v1316_v60   ;;  %v677_v1 = vadd.f32 %v676_v63, %v587_v62  ;;  %v757_v4 = vmul.f32 %v1578_v51, %v715_v0 }
 0x105   : > { %v742_v3 = vmul.f32 %v1578_v51, %v677_v1  ;;  %v791_v13 = vadd.f32 %v1584_v55, %v757_v4 }
 0x107   : > { %v776_v5 = vadd.f32 %v1584_v55, %v742_v3  ;;  %v627_v6 = vpop.f32.mrf.mxu2  ;;  %v823_v18 = vmax.f32 %v791_v13, 0.0 }
 0x108   : > { %v716_v7 = vpop.f32.mrf.mxu3 }
 0x109   : > { %v808_v9 = vmax.f32 %v776_v5, 0.0  ;;  %v717_v10 = vadd.f32 %v716_v7, %v627_v6  ;;  %v590_v11 = vpop.f32.mrf.mxu0 }
 0x10a   : > { %v679_v12 = vpop.f32.mrf.mxu1 }
 0x10b   : > { %v1281_v14 = vpack.c.bf16 %v808_v9, %v807_v8  ;;  %v758_v15 = vmul.f32 %v1578_v51, %v717_v10  ;;  %v680_v17 = vadd.f32 %v679_v12, %v590_v11 }
 0x10d   : > { %1337 = vst [vmem:[%s1594_s10 + $0x28] sm:$0xff] %v1281_v14   ;;  %v792_v16 = vadd.f32 %v1584_v55, %v758_v15  ;;  %v743_v23 = vmul.f32 %v1578_v51, %v680_v17 }
 0x10f   : > { %v824_v19 = vmax.f32 %v792_v16, 0.0  ;;  %v630_v20 = vpop.f32.mrf.mxu2  ;;  %v777_v28 = vadd.f32 %v1584_v55, %v743_v23 }
 0x110   : > { %v719_v21 = vpop.f32.mrf.mxu3 }
 0x111   : > { %v1321_v22 = vpack.c.bf16 %v824_v19, %v823_v18  ;;  %v592_v24 = vpop.f32.mrf.mxu0  ;;  %v720_v26 = vadd.f32 %v719_v21, %v630_v20  ;;  %v809_v34 = vmax.f32 %v777_v28, 0.0 }
 0x112   : > { %v681_v25 = vpop.f32.mrf.mxu1 }
 0x113   : > { %1345 = vst [vmem:[%s1594_s10 + $0x68] sm:$0xff] %v1321_v22   ;;  %v682_v27 = vadd.f32 %v681_v25, %v592_v24  ;;  %v759_v30 = vmul.f32 %v1578_v51, %v720_v26 }
 0x115   : > { %v744_v29 = vmul.f32 %v1578_v51, %v682_v27  ;;  %v793_v39 = vadd.f32 %v1584_v55, %v759_v30 }
 0x117   : > { %v778_v31 = vadd.f32 %v1584_v55, %v744_v29  ;;  %v632_v32 = vpop.f32.mrf.mxu2  ;;  %v825_v44 = vmax.f32 %v793_v39, 0.0 }
 0x118   : > { %v721_v33 = vpop.f32.mrf.mxu3 }
 0x119   : > { %v810_v35 = vmax.f32 %v778_v31, 0.0  ;;  %v722_v36 = vadd.f32 %v721_v33, %v632_v32  ;;  %v595_v37 = vpop.f32.mrf.mxu0 }
 0x11a   : > { %v684_v38 = vpop.f32.mrf.mxu1 }
 0x11b   : > { %v1286_v40 = vpack.c.bf16 %v810_v35, %v809_v34  ;;  %v760_v41 = vmul.f32 %v1578_v51, %v722_v36  ;;  %v685_v43 = vadd.f32 %v684_v38, %v595_v37 }
 0x11d   : > { %1338 = vst [vmem:[%s1594_s10 + $0x30] sm:$0xff] %v1286_v40   ;;  %v794_v42 = vadd.f32 %v1584_v55, %v760_v41  ;;  %v745_v49 = vmul.f32 %v1578_v51, %v685_v43 }
 0x11f   : > { %v826_v45 = vmax.f32 %v794_v42, 0.0  ;;  %v635_v46 = vpop.f32.mrf.mxu2  ;;  %v779_v56 = vadd.f32 %v1584_v55, %v745_v49 }
 0x120   : > { %v724_v47 = vpop.f32.mrf.mxu3 }
 0x121   : > { %v1326_v48 = vpack.c.bf16 %v826_v45, %v825_v44  ;;  %v597_v50 = vpop.f32.mrf.mxu0  ;;  %v725_v53 = vadd.f32 %v724_v47, %v635_v46  ;;  %v811_v62 = vmax.f32 %v779_v56, 0.0 }
 0x122   : > { %v686_v52 = vpop.f32.mrf.mxu1 }
 0x123   : > { %1346 = vst [vmem:[%s1594_s10 + $0x70] sm:$0xff] %v1326_v48   ;;  %v687_v54 = vadd.f32 %v686_v52, %v597_v50  ;;  %v761_v58 = vmul.f32 %v1578_v51, %v725_v53 }
 0x125   : > { %v746_v57 = vmul.f32 %v1578_v51, %v687_v54  ;;  %v795_v1 = vadd.f32 %v1584_v55, %v761_v58 }
 0x127   : > { %v780_v59 = vadd.f32 %v1584_v55, %v746_v57  ;;  %v637_v60 = vpop.f32.mrf.mxu2  ;;  %v827_v5 = vmax.f32 %v795_v1, 0.0 }
 0x128   : > { %v726_v61 = vpop.f32.mrf.mxu3 }
 0x129   : > { %v812_v63 = vmax.f32 %v780_v59, 0.0  ;;  %v727_v0 = vadd.f32 %v726_v61, %v637_v60 }
 0x12b   : > { %v1291_v2 = vpack.c.bf16 %v812_v63, %v811_v62  ;;  %v762_v3 = vmul.f32 %v1578_v51, %v727_v0 }
 0x12d   : > { %1339 = vst [vmem:[%s1594_s10 + $0x38] sm:$0xff] %v1291_v2   ;;  %v796_v4 = vadd.f32 %v1584_v55, %v762_v3 }
 0x12f   : > { %v828_v6 = vmax.f32 %v796_v4, 0.0 }
 0x131   : > { %v1331_v7 = vpack.c.bf16 %v828_v6, %v827_v5 }
 0x133   : > { %1347 = vst [vmem:[%s1594_s10 + $0x78] sm:$0xff] %v1331_v7  }
 0x134 PF: > { %s13_s14 = sadd.s32 1, %s1412_s14   ;;  %s1684_s12 = smov %s1408_s13 }
 0x135   : > { %p10_p5 = scmp.ge.s32.totalorder %s13_s14, 4   ;;  %s1685_s13 = smov %s1687_s15 }
 0x137   :  { %12 = sbr.rel (!%p10_p5) target bundleno = 2 (0x2), region = 68 }

// kernel: forward.9
= control target key start
LH: loop header
LB: loop body
LE: loop exit
PB: predicated region body
PF: predicated region fallthrough
CT: control target
= control target key end

     0   :  { %s1842_s12 = smov 0   ;;  %s1844_s13 = smov 0   ;;  %s2240_s0 = inlined_call_operand.vmem [shape: bf16[512,384], index: 0, kind: input, shape index: {}]   ;;  %s2241_s1 = inlined_call_operand.vmem [shape: bf16[384,128], index: 1, kind: input, shape index: {}]   ;;  %s2242_s2 = inlined_call_operand.vmem [shape: f32[2,128], index: 2, kind: input, shape index: {}]   ;;  %s2243_s3 = inlined_call_operand.vmem [shape: bf16[512,128], index: 3, kind: output, shape index: {}]  }
   0x1   :  { %s1846_s14 = smov 0  }
   0x2 LB: > { %s25_s15 = sadd.s32 1, %s1816_s13  ;;  %p1285_p0 = scmp.ge.s32.totalorder %s1820_s14, 1  ;;  %s1820_s14 = sphi %s1846_s14, %s13_s14   ;;  %s1816_s13 = sphi %s1844_s13, %s2245_s13   ;;  %s1812_s12 = sphi %s1842_s12, %s2244_s12  }
   0x3   : > { %p27_p1 = scmp.ge.s32.totalorder %s25_s15, 2  ;;  %p171_p2 = scmp.lt.s32.totalorder %s1820_s14, 3 }
   0x5   : > { %s2247_s15 = smov (%p27_p1, %s25_s15), 0  ;;  %p172_p3 = pnand %p1285_p0, %p171_p2 }
   0x6   : > { %s1286_s7 = sshll.u32 (!%p172_p3), %s1812_s12, 5 }
   0x7   : > { %175 = sbr.rel (%p172_p3) target bundleno = 373 (0x175), region = 32  ;;  %p208_p4 = scmp.lt.s32.totalorder (!%p172_p3), %s1286_s7, 63 }
   0xc   : > { %v1635_v0 = vld [vmem:[%s2241_s1 + $0x38] sm:$0xff]  ;;  %v1634_v3 = vld [vmem:[%s2241_s1 + $0x30] sm:$0xff]  ;;  %v1633_v6 = vld [vmem:[%s2241_s1 + $0x28] sm:$0xff]  ;;  %s2249_s7 = smov (!%p208_p4, %s1286_s7), 63 }
   0xd   : > { %v1868_v1 = vld [vmem:[%s2241_s1 + $0x78] sm:$0xff]  ;;  %743 = vmatpush.bf16.msra.mxu0 %v1635_v0  ;;  %1747 = vmatpush.bf16.msra.mxu3 %v1635_v0  ;;  %v1883_v4 = vld [vmem:[%s2241_s1 + $0x70] sm:$0xff]  ;;  %v1898_v7 = vld [vmem:[%s2241_s1 + $0x68] sm:$0xff]  ;;  %s1771_s25 = smul.u32 12, %s2249_s7  ;;  %s1289_s26 = sshll.u32 %s2249_s7, 2 }
   0xe   : > { %v1873_v2 = vld [vmem:[%s2241_s1 + $0xb8] sm:$0xff]  ;;  %832 = vmatpush.bf16.msra.mxu1 %v1868_v1  ;;  %v1888_v5 = vld [vmem:[%s2241_s1 + $0xb0] sm:$0xff]  ;;  %v1903_v8 = vld [vmem:[%s2241_s1 + $0xa8] sm:$0xff]  ;;  %s2095_s7 = scalar_lea.vmem %s2243_s3, %s1289_s26 }
   0xf   : > { %921 = vmatpush.bf16.msra.mxu2 %v1873_v2  ;;  %v1632_v9 = vld [vmem:[%s2241_s1 + $0x20] sm:$0xff]  ;;  %v1631_v12 = vld [vmem:[%s2241_s1 + $0x18] sm:$0xff]  ;;  %v1630_v15 = vld [vmem:[%s2241_s1 + $0x10] sm:$0xff]  ;;  %s1955_s8 = scalar_lea.vmem %s2240_s0, %s1771_s25 }
  0x10   : > { %v1912_v10 = vld [vmem:[%s2241_s1 + $0x60] sm:$0xff]  ;;  %v1639_v13 = vld [vmem:[%s2241_s1 + $0x58] sm:$0xff]  ;;  %v1638_v16 = vld [vmem:[%s2241_s1 + $0x50] sm:$0xff] }
  0x11   : > { %744 = vmatpush.bf16.msra.mxu0 %v1634_v3  ;;  %1748 = vmatpush.bf16.msra.mxu3 %v1634_v3  ;;  %v1919_v11 = vld [vmem:[%s2241_s1 + $0xa0] sm:$0xff]  ;;  %v1934_v14 = vld [vmem:[%s2241_s1 + $0x98] sm:$0xff]  ;;  %v1947_v17 = vld [vmem:[%s2241_s1 + $0x90] sm:$0xff] }
  0x12   : > { %833 = vmatpush.bf16.msra.mxu1 %v1883_v4  ;;  %v1629_v18 = vld [vmem:[%s2241_s1 + $0x8] sm:$0xff]  ;;  %v1628_v21 = vld [vmem:[%s2241_s1] sm:$0xff]  ;;  %v1294_v29 = vld [vmem:[%s1955_s8 + $0xc] sm:$0xf0] }
  0x13   : > { %922 = vmatpush.bf16.msra.mxu2 %v1888_v5  ;;  %v1637_v19 = vld [vmem:[%s2241_s1 + $0x48] sm:$0xff]  ;;  %v1636_v22 = vld [vmem:[%s2241_s1 + $0x40] sm:$0xff]  ;;  %v1582_v31 = vld [vmem:[%s1955_s8 + $0x10] sm:$0xf0] }
  0x14   : > { %v1964_v20 = vld [vmem:[%s2241_s1 + $0x88] sm:$0xff]  ;;  %v1975_v23 = vld [vmem:[%s2241_s1 + $0x80] sm:$0xff]  ;;  %v1304_v36 = vld [vmem:[%s1955_s8 + $0x18] sm:$0xf] }
  0x15   : > { %745 = vmatpush.bf16.msra.mxu0 %v1633_v6  ;;  %1749 = vmatpush.bf16.msra.mxu3 %v1633_v6  ;;  %v1292_v24 = vld [vmem:[%s1955_s8] sm:$0xf]  ;;  %v1581_v25 = vld [vmem:[%s1955_s8 + $0x8] sm:$0xf0]  ;;  %v1580_v28 = vld [vmem:[%s1955_s8 + $0x4] sm:$0xf] }
  0x16   : > { %834 = vmatpush.bf16.msra.mxu1 %v1898_v7  ;;  %v1436_v26 = vld [vmem:[%s1955_s8 + $0x120] sm:$0xf]  ;;  %v1617_v27 = vld [vmem:[%s1955_s8 + $0x128] sm:$0xf0]  ;;  %v1300_v30 = vld [vmem:[%s1955_s8 + $0x8] sm:$0xf]  ;;  %v1293_v32 = vor.u32 %v1581_v25, %v1292_v24  ;;  %v1297_v34 = vor.u32 %v1580_v28, %v1294_v29 }
  0x17   : > { %923 = vmatpush.bf16.msra.mxu2 %v1903_v8  ;;  %v1437_v33 = vor.u32 %v1617_v27, %v1436_v26  ;;  %v1301_v35 = vor.u32 %v1582_v31, %v1300_v30  ;;  %v1584_v37 = vld [vmem:[%s1955_s8 + $0x20] sm:$0xf0]  ;;  %v1448_v38 = vld [vmem:[%s1955_s8 + $0x138] sm:$0xf]  ;;  %v1583_v40 = vld [vmem:[%s1955_s8 + $0x1c] sm:$0xf] }
  0x18   : > { %v1620_v39 = vld [vmem:[%s1955_s8 + $0x140] sm:$0xf0]  ;;  %v1306_v41 = vld [vmem:[%s1955_s8 + $0x24] sm:$0xf0]  ;;  %v1312_v42 = vld [vmem:[%s1955_s8 + $0x20] sm:$0xf]  ;;  %v1305_v44 = vor.u32 %v1584_v37, %v1304_v36 }
  0x19   : > { %746 = vmatpush.bf16.msra.mxu0 %v1632_v9  ;;  %1750 = vmatpush.bf16.msra.mxu3 %v1632_v9  ;;  %v1585_v43 = vld [vmem:[%s1955_s8 + $0x28] sm:$0xf0]  ;;  %v1449_v45 = vor.u32 %v1620_v39, %v1448_v38  ;;  %v1309_v46 = vor.u32 %v1583_v40, %v1306_v41  ;;  %v1316_v48 = vld [vmem:[%s1955_s8 + $0x30] sm:$0xf]  ;;  %v1587_v49 = vld [vmem:[%s1955_s8 + $0x38] sm:$0xf0] }
  0x1a   : > { %835 = vmatpush.bf16.msra.mxu1 %v1912_v10  ;;  %v1313_v47 = vor.u32 %v1585_v43, %v1312_v42  ;;  %v1460_v50 = vld [vmem:[%s1955_s8 + $0x150] sm:$0xf]  ;;  %v1623_v51 = vld [vmem:[%s1955_s8 + $0x158] sm:$0xf0]  ;;  %v1586_v52 = vld [vmem:[%s1955_s8 + $0x34] sm:$0xf]  ;;  %v1317_v56 = vor.u32 %v1587_v49, %v1316_v48 }
  0x1b   : > { %924 = vmatpush.bf16.msra.mxu2 %v1919_v11  ;;  %v1318_v53 = vld [vmem:[%s1955_s8 + $0x3c] sm:$0xf0]  ;;  %v1324_v54 = vld [vmem:[%s1955_s8 + $0x38] sm:$0xf]  ;;  %v1588_v55 = vld [vmem:[%s1955_s8 + $0x40] sm:$0xf0]  ;;  %v1461_v57 = vor.u32 %v1623_v51, %v1460_v50 }
  0x1c   : > { %v1321_v58 = vor.u32 %v1586_v52, %v1318_v53  ;;  %v1325_v59 = vor.u32 %v1588_v55, %v1324_v54  ;;  %v1328_v60 = vld [vmem:[%s1955_s8 + $0x48] sm:$0xf]  ;;  %v1590_v61 = vld [vmem:[%s1955_s8 + $0x50] sm:$0xf0]  ;;  %v1589_v0 = vld [vmem:[%s1955_s8 + $0x4c] sm:$0xf] }
  0x1d   : > { %747 = vmatpush.bf16.msra.mxu0 %v1631_v12  ;;  %1751 = vmatpush.bf16.msra.mxu3 %v1631_v12  ;;  %v1472_v62 = vld [vmem:[%s1955_s8 + $0x168] sm:$0xf]  ;;  %v1626_v63 = vld [vmem:[%s1955_s8 + $0x170] sm:$0xf0]  ;;  %v1591_v3 = vld [vmem:[%s1955_s8 + $0x58] sm:$0xf0] }
  0x1e   : > { %836 = vmatpush.bf16.msra.mxu1 %v1639_v13  ;;  %v1593_v9 = vld [vmem:[%s1955_s8 + $0x68] sm:$0xf0]  ;;  %v1438_v12 = vld [vmem:[%s1955_s8 + $0x12c] sm:$0xf0]  ;;  %v1619_v24 = vld [vmem:[%s1955_s8 + $0x13c] sm:$0xf] }
  0x1f   : > { %925 = vmatpush.bf16.msra.mxu2 %v1934_v14  ;;  %v1450_v25 = vld [vmem:[%s1955_s8 + $0x144] sm:$0xf0]  ;;  %v1360_v26 = vld [vmem:[%s1955_s8 + $0x80] sm:$0xf]  ;;  %v1597_v27 = vld [vmem:[%s1955_s8 + $0x88] sm:$0xf0] }
  0x20   : > { %v1453_v29 = vor.u32 %v1619_v24, %v1450_v25  ;;  %v1361_v31 = vor.u32 %v1597_v27, %v1360_v26  ;;  %v1462_v36 = vld [vmem:[%s1955_s8 + $0x15c] sm:$0xf0]  ;;  %v1372_v38 = vld [vmem:[%s1955_s8 + $0x98] sm:$0xf]  ;;  %v1600_v39 = vld [vmem:[%s1955_s8 + $0xa0] sm:$0xf0] }
  0x21   : > { %748 = vmatpush.bf16.msra.mxu0 %v1630_v15  ;;  %1752 = vmatpush.bf16.msra.mxu3 %v1630_v15  ;;  %v1594_v15 = vld [vmem:[%s1955_s8 + $0x70] sm:$0xf0]  ;;  %v1366_v37 = vld [vmem:[%s1955_s8 + $0x9c] sm:$0xf0]  ;;  %v1373_v43 = vor.u32 %v1600_v39, %v1372_v38  ;;  %v1474_v48 = vld [vmem:[%s1955_s8 + $0x174] sm:$0xf0] }
  0x22   : > { %837 = vmatpush.bf16.msra.mxu1 %v1638_v16  ;;  %v1378_v49 = vld [vmem:[%s1955_s8 + $0xb4] sm:$0xf0]  ;;  %v1384_v50 = vld [vmem:[%s1955_s8 + $0xb0] sm:$0xf]  ;;  %v1603_v51 = vld [vmem:[%s1955_s8 + $0xb8] sm:$0xf0] }
  0x23   : > { %926 = vmatpush.bf16.msra.mxu2 %v1947_v17  ;;  %v1385_v55 = vor.u32 %v1603_v51, %v1384_v50  ;;  %v1414_v50 = vld [vmem:[%s1955_s8 + $0xfc] sm:$0xf0]  ;;  %v1420_v51 = vld [vmem:[%s1955_s8 + $0xf8] sm:$0xf] }
  0x25   : > { %749 = vmatpush.bf16.msra.mxu0 %v1629_v18  ;;  %1753 = vmatpush.bf16.msra.mxu3 %v1629_v18 }
  0x26   : > { %838 = vmatpush.bf16.msra.mxu1 %v1637_v19 }
  0x27   : > { %927 = vmatpush.bf16.msra.mxu2 %v1964_v20 }
  0x29   : > { %750 = vmatpush.bf16.msra.mxu0 %v1628_v21  ;;  %1754 = vmatpush.bf16.msra.mxu3 %v1628_v21  ;;  %v1596_v21 = vld [vmem:[%s1955_s8 + $0x80] sm:$0xf0] }
  0x2a   : > { %839 = vmatpush.bf16.msra.mxu1 %v1636_v22 }
  0x2b   : > { %928 = vmatpush.bf16.msra.mxu2 %v1975_v23 }
  0x2c   : > { %751 = vmatmul.bf16.vlgmr.msra.gmra.mxu0 %v1293_v32  ;;  %811 = vmatmul.bf16.vlgmr.msra.gmra.mxu3 %v1437_v33  ;;  %v1364_v32 = vld [vmem:[%s1955_s8 + $0x90] sm:$0xf]  ;;  %v1599_v33 = vld [vmem:[%s1955_s8 + $0x98] sm:$0xf0] }
  0x2d   : > { %1755 = vmatpush.bf16.msrb.mxu3 %v1868_v1  ;;  %840 = vmatmul.bf16.vlgmr.msra.gmra.mxu1 %v1297_v34  ;;  %v1330_v1 = vld [vmem:[%s1955_s8 + $0x54] sm:$0xf0]  ;;  %v1598_v34 = vld [vmem:[%s1955_s8 + $0x94] sm:$0xf]  ;;  %v1365_v40 = vor.u32 %v1599_v33, %v1364_v32 }
  0x2e   : > { %929 = vmatmul.bf16.vlgmr.msra.gmra.mxu2 %v1301_v35  ;;  %v1333_v6 = vor.u32 %v1589_v0, %v1330_v1  ;;  %v1622_v35 = vld [vmem:[%s1955_s8 + $0x154] sm:$0xf]  ;;  %v1369_v42 = vor.u32 %v1598_v34, %v1366_v37 }
  0x2f   : > { %v1465_v41 = vor.u32 %v1622_v35, %v1462_v36 }
  0x31   : > { %1756 = vmatpush.bf16.msrb.mxu3 %v1883_v4  ;;  %v1329_v4 = vor.u32 %v1590_v61, %v1328_v60  ;;  %v1618_v60 = vld [vmem:[%s1955_s8 + $0x130] sm:$0xf0]  ;;  %v1390_v61 = vld [vmem:[%s1955_s8 + $0xcc] sm:$0xf0] }
  0x35   : > { %1757 = vmatpush.bf16.msrb.mxu3 %v1898_v7 }
  0x39   : > { %1758 = vmatpush.bf16.msrb.mxu3 %v1912_v10  ;;  %v1592_v10 = vld [vmem:[%s1955_s8 + $0x64] sm:$0xf] }
  0x3c   : > { %756 = vmatmul.bf16.gmra.mxu0 %v1305_v44  ;;  %816 = vmatmul.bf16.gmra.mxu3 %v1449_v45  ;;  %v1376_v44 = vld [vmem:[%s1955_s8 + $0xa8] sm:$0xf]  ;;  %v1602_v45 = vld [vmem:[%s1955_s8 + $0xb0] sm:$0xf0] }
  0x3d   : > { %1759 = vmatpush.bf16.msrb.mxu3 %v1639_v13  ;;  %845 = vmatmul.bf16.gmra.mxu1 %v1309_v46  ;;  %v1342_v13 = vld [vmem:[%s1955_s8 + $0x6c] sm:$0xf0]  ;;  %v1601_v46 = vld [vmem:[%s1955_s8 + $0xac] sm:$0xf]  ;;  %v1377_v52 = vor.u32 %v1602_v45, %v1376_v44 }
  0x3e   : > { %934 = vmatmul.bf16.gmra.mxu2 %v1313_v47  ;;  %v1345_v18 = vor.u32 %v1592_v10, %v1342_v13  ;;  %v1625_v47 = vld [vmem:[%s1955_s8 + $0x16c] sm:$0xf]  ;;  %v1381_v54 = vor.u32 %v1601_v46, %v1378_v49  ;;  %v1400_v13 = vld [vmem:[%s1955_s8 + $0xd8] sm:$0xf]  ;;  %v1412_v45 = vld [vmem:[%s1955_s8 + $0xf0] sm:$0xf] }
  0x3f   : > { %v1477_v53 = vor.u32 %v1625_v47, %v1474_v48  ;;  %v1611_v46 = vld [vmem:[%s1955_s8 + $0xf8] sm:$0xf0]  ;;  %v1610_v47 = vld [vmem:[%s1955_s8 + $0xf4] sm:$0xf]  ;;  %v1468_v48 = vld [vmem:[%s1955_s8 + $0x158] sm:$0xf] }
  0x40   : > { %v1624_v49 = vld [vmem:[%s1955_s8 + $0x160] sm:$0xf0] }
  0x41   : > { %1760 = vmatpush.bf16.msrb.mxu3 %v1638_v16 }
  0x45   : > { %1761 = vmatpush.bf16.msrb.mxu3 %v1637_v19 }
  0x49   : > { %1762 = vmatpush.bf16.msrb.mxu3 %v1636_v22  ;;  %v1595_v22 = vld [vmem:[%s1955_s8 + $0x7c] sm:$0xf] }
  0x4c   : > { %761 = vmatmul.bf16.gmra.mxu0 %v1317_v56  ;;  %821 = vmatmul.bf16.gmra.mxu3 %v1461_v57  ;;  %v1388_v56 = vld [vmem:[%s1955_s8 + $0xc0] sm:$0xf]  ;;  %v1605_v57 = vld [vmem:[%s1955_s8 + $0xc8] sm:$0xf0] }
  0x4d   : > { %1763 = vmatpush.bf16.msra.mxu3 %v1873_v2  ;;  %850 = vmatmul.bf16.gmra.mxu1 %v1321_v58  ;;  %v1336_v2 = vld [vmem:[%s1955_s8 + $0x50] sm:$0xf]  ;;  %v1604_v58 = vld [vmem:[%s1955_s8 + $0xc4] sm:$0xf]  ;;  %v1389_v0 = vor.u32 %v1605_v57, %v1388_v56  ;;  %v1413_v57 = vor.u32 %v1611_v46, %v1412_v45 }
  0x4e   : > { %939 = vmatmul.bf16.gmra.mxu2 %v1325_v59  ;;  %v1337_v7 = vor.u32 %v1591_v3, %v1336_v2  ;;  %v1444_v59 = vld [vmem:[%s1955_s8 + $0x128] sm:$0xf]  ;;  %v1393_v3 = vor.u32 %v1604_v58, %v1390_v61  ;;  %v1469_v58 = vor.u32 %v1624_v49, %v1468_v48  ;;  %v1417_v61 = vor.u32 %v1610_v47, %v1414_v50 }
  0x4f   : > { %v1445_v1 = vor.u32 %v1618_v60, %v1444_v59 }
  0x51   : > { %1764 = vmatpush.bf16.msra.mxu3 %v1888_v5  ;;  %v1473_v5 = vor.u32 %v1626_v63, %v1472_v62  ;;  %v1396_v62 = vld [vmem:[%s1955_s8 + $0xc8] sm:$0xf]  ;;  %v1606_v63 = vld [vmem:[%s1955_s8 + $0xd0] sm:$0xf0] }
  0x55   : > { %1765 = vmatpush.bf16.msra.mxu3 %v1903_v8  ;;  %v1340_v8 = vld [vmem:[%s1955_s8 + $0x60] sm:$0xf] }
  0x56   : > { %v1341_v16 = vor.u32 %v1593_v9, %v1340_v8 }
  0x59   : > { %1766 = vmatpush.bf16.msra.mxu3 %v1919_v11  ;;  %v1616_v11 = vld [vmem:[%s1955_s8 + $0x124] sm:$0xf] }
  0x5c   : > { %766 = vmatmul.bf16.gmra.mxu0 %v1329_v4  ;;  %826 = vmatmul.bf16.gmra.mxu3 %v1473_v5  ;;  %v1397_v4 = vor.u32 %v1606_v63, %v1396_v62 }
  0x5d   : > { %1767 = vmatpush.bf16.msra.mxu3 %v1934_v14  ;;  %855 = vmatmul.bf16.gmra.mxu1 %v1333_v6  ;;  %v1348_v14 = vld [vmem:[%s1955_s8 + $0x68] sm:$0xf] }
  0x5e   : > { %944 = vmatmul.bf16.gmra.mxu2 %v1337_v7  ;;  %v1349_v19 = vor.u32 %v1594_v15, %v1348_v14  ;;  %v1608_v14 = vld [vmem:[%s1955_s8 + $0xe0] sm:$0xf0]  ;;  %v1607_v15 = vld [vmem:[%s1955_s8 + $0xdc] sm:$0xf] }
  0x5f   : > { %v1401_v26 = vor.u32 %v1608_v14, %v1400_v13  ;;  %v1424_v14 = vld [vmem:[%s1955_s8 + $0x108] sm:$0xf] }
  0x61   : > { %1768 = vmatpush.bf16.msra.mxu3 %v1947_v17  ;;  %v1441_v17 = vor.u32 %v1616_v11, %v1438_v12  ;;  %v2068_v12 = vld [vmem:[%s2242_s2] ss:$0 sm:$0xff] }
  0x65   : > { %1769 = vmatpush.bf16.msra.mxu3 %v1964_v20  ;;  %v1352_v20 = vld [vmem:[%s1955_s8 + $0x78] sm:$0xf] }
  0x66   : > { %v1353_v28 = vor.u32 %v1596_v21, %v1352_v20  ;;  %v1609_v20 = vld [vmem:[%s1955_s8 + $0xe8] sm:$0xf0] }
  0x69   : > { %1770 = vmatpush.bf16.msra.mxu3 %v1975_v23  ;;  %v1354_v23 = vld [vmem:[%s1955_s8 + $0x84] sm:$0xf0] }
  0x6a   : > { %v1357_v30 = vor.u32 %v1595_v22, %v1354_v23  ;;  %v2082_v22 = vld [vmem:[%s2242_s2 + $0x1] ss:$0 sm:$0xff] }
  0x6c   : > { %771 = vmatmul.bf16.gmra.mxu0 %v1341_v16  ;;  %900 = vmatmul.bf16.vlgmr.msrb.gmra.mxu3 %v1441_v17  ;;  %v1456_v16 = vld [vmem:[%s1955_s8 + $0x140] sm:$0xf]  ;;  %v1621_v17 = vld [vmem:[%s1955_s8 + $0x148] sm:$0xf0] }
  0x6d   : > { %860 = vmatmul.bf16.gmra.mxu1 %v1345_v18  ;;  %v1402_v18 = vld [vmem:[%s1955_s8 + $0xe4] sm:$0xf0]  ;;  %v1457_v27 = vor.u32 %v1621_v17, %v1456_v16  ;;  %v1613_v16 = vld [vmem:[%s1955_s8 + $0x10c] sm:$0xf]  ;;  %v1480_v17 = vld [vmem:[%s1955_s8 + $0x170] sm:$0xf] }
  0x6e   : > { %949 = vmatmul.bf16.gmra.mxu2 %v1349_v19  ;;  %v1408_v19 = vld [vmem:[%s1955_s8 + $0xe0] sm:$0xf] }
  0x7c   : > { %776 = vmatmul.bf16.gmra.mxu0 %v1353_v28  ;;  %905 = vmatmul.bf16.gmra.mxu3 %v1453_v29 }
  0x7d   : > { %865 = vmatmul.bf16.gmra.mxu1 %v1357_v30  ;;  %v1405_v30 = vor.u32 %v1607_v15, %v1402_v18  ;;  %v1614_v15 = vld [vmem:[%s1955_s8 + $0x110] sm:$0xf0]  ;;  %v1627_v18 = vld [vmem:[%s1955_s8 + $0x178] sm:$0xf0] }
  0x7e   : > { %954 = vmatmul.bf16.gmra.mxu2 %v1361_v31  ;;  %v1409_v31 = vor.u32 %v1609_v20, %v1408_v19  ;;  %v1426_v19 = vld [vmem:[%s1955_s8 + $0x114] sm:$0xf0]  ;;  %v1432_v20 = vld [vmem:[%s1955_s8 + $0x110] sm:$0xf] }
  0x8c   : > { %781 = vmatmul.bf16.gmra.mxu0 %v1365_v40  ;;  %910 = vmatmul.bf16.gmra.mxu3 %v1465_v41 }
  0x8d   : > { %870 = vmatmul.bf16.gmra.mxu1 %v1369_v42 }
  0x8e   : > { %959 = vmatmul.bf16.gmra.mxu2 %v1373_v43 }
  0x9c   : > { %786 = vmatmul.bf16.gmra.mxu0 %v1377_v52  ;;  %915 = vmatmul.bf16.gmra.mxu3 %v1477_v53  ;;  %v1612_v52 = vld [vmem:[%s1955_s8 + $0x100] sm:$0xf0] }
  0x9d   : > { %875 = vmatmul.bf16.gmra.mxu1 %v1381_v54  ;;  %v1421_v62 = vor.u32 %v1612_v52, %v1420_v51 }
  0x9e   : > { %964 = vmatmul.bf16.gmra.mxu2 %v1385_v55 }
  0xa9   : > { %v752_v2 = vpop.f32.mrf.mxu0 }
  0xaa   : > { %v841_v5 = vpop.f32.mrf.mxu1 }
  0xab   : > { %v842_v6 = vadd.f32 %v841_v5, %v752_v2 }
  0xac   : > { %791 = vmatmul.bf16.gmra.mxu0 %v1389_v0  ;;  %989 = vmatmul.bf16.vlgmr.msra.gmra.mxu3 %v1445_v1 }
  0xad   : > { %880 = vmatmul.bf16.gmra.mxu1 %v1393_v3 }
  0xae   : > { %969 = vmatmul.bf16.gmra.mxu2 %v1397_v4 }
  0xaf   : > { %v2063_v7 = vpop.f32.mrf.mxu3 }
  0xb1   : > { %v930_v8 = vpop.f32.mrf.mxu2  ;;  %v754_v9 = vpop.f32.mrf.mxu0 }
  0xb2   : > { %v843_v10 = vpop.f32.mrf.mxu1  ;;  %v931_v11 = vadd.f32 %v930_v8, %v842_v6 }
  0xb3   : > { %v844_v24 = vadd.f32 %v843_v10, %v754_v9 }
  0xb4   : > { %v1012_v21 = vmul.f32 %v2068_v12, %v931_v11 }
  0xb6   : > { %v1046_v33 = vadd.f32 %v2082_v22, %v1012_v21  ;;  %v1615_v21 = vld [vmem:[%s1955_s8 + $0x118] sm:$0xf0] }
  0xb7   : > { %v2084_v25 = vpop.f32.mrf.mxu3 }
  0xb8   : > { %v1078_v36 = vmax.f32 %v1046_v33, 0.0  ;;  %v1433_v33 = vor.u32 %v1615_v21, %v1432_v20 }
  0xb9   : > { %v932_v23 = vpop.f32.mrf.mxu2  ;;  %v757_v29 = vpop.f32.mrf.mxu0 }
  0xba   : > { %v933_v28 = vadd.f32 %v932_v23, %v844_v24  ;;  %v846_v32 = vpop.f32.mrf.mxu1 }
  0xbb   : > { %v847_v38 = vadd.f32 %v846_v32, %v757_v29  ;;  %v1481_v29 = vor.u32 %v1627_v18, %v1480_v17  ;;  %v1429_v32 = vor.u32 %v1613_v16, %v1426_v19 }
  0xbc   : > { %v1013_v34 = vmul.f32 %v2068_v12, %v933_v28  ;;  %796 = vmatmul.bf16.gmra.mxu0 %v1401_v26  ;;  %994 = vmatmul.bf16.gmra.mxu3 %v1457_v27  ;;  %v1425_v28 = vor.u32 %v1614_v15, %v1424_v14 }
  0xbd   : > { %885 = vmatmul.bf16.gmra.mxu1 %v1405_v30 }
  0xbe   : > { %v1047_v35 = vadd.f32 %v2082_v22, %v1013_v34  ;;  %974 = vmatmul.bf16.gmra.mxu2 %v1409_v31 }
  0xbf   : > { %v2090_v39 = vpop.f32.mrf.mxu3 }
  0xc0   : > { %v1079_v37 = vmax.f32 %v1047_v35, 0.0 }
  0xc1   : > { %v935_v40 = vpop.f32.mrf.mxu2  ;;  %v759_v42 = vpop.f32.mrf.mxu0 }
  0xc2   : > { %v1655_v41 = vpack.c.bf16 %v1079_v37, %v1078_v36  ;;  %v848_v43 = vpop.f32.mrf.mxu1  ;;  %v936_v44 = vadd.f32 %v935_v40, %v847_v38 }
  0xc3   : > { %v849_v54 = vadd.f32 %v848_v43, %v759_v42 }
  0xc4   : > { %1656 = vst [vmem:[%s2095_s7] sm:$0xff] %v1655_v41   ;;  %v1014_v53 = vmul.f32 %v2068_v12, %v936_v44 }
  0xc6   : > { %v1048_v0 = vadd.f32 %v2082_v22, %v1014_v53 }
  0xc7   : > { %v2107_v55 = vpop.f32.mrf.mxu3 }
  0xc8   : > { %v1080_v3 = vmax.f32 %v1048_v0, 0.0 }
  0xc9   : > { %v937_v56 = vpop.f32.mrf.mxu2  ;;  %v762_v60 = vpop.f32.mrf.mxu0 }
  0xca   : > { %v938_v59 = vadd.f32 %v937_v56, %v849_v54  ;;  %v851_v63 = vpop.f32.mrf.mxu1 }
  0xcb   : > { %v852_v5 = vadd.f32 %v851_v63, %v762_v60 }
  0xcc   : > { %v1015_v1 = vmul.f32 %v2068_v12, %v938_v59  ;;  %801 = vmatmul.bf16.gmra.mxu0 %v1413_v57  ;;  %999 = vmatmul.bf16.gmra.mxu3 %v1469_v58 }
  0xcd   : > { %890 = vmatmul.bf16.gmra.mxu1 %v1417_v61 }
  0xce   : > { %v1049_v2 = vadd.f32 %v2082_v22, %v1015_v1  ;;  %979 = vmatmul.bf16.gmra.mxu2 %v1421_v62 }
  0xcf   : > { %v2112_v6 = vpop.f32.mrf.mxu3 }
  0xd0   : > { %v1081_v4 = vmax.f32 %v1049_v2, 0.0 }
  0xd1   : > { %v940_v8 = vpop.f32.mrf.mxu2  ;;  %v764_v10 = vpop.f32.mrf.mxu0 }
  0xd2   : > { %v1660_v9 = vpack.c.bf16 %v1081_v4, %v1080_v3  ;;  %v853_v11 = vpop.f32.mrf.mxu1  ;;  %v941_v13 = vadd.f32 %v940_v8, %v852_v5 }
  0xd3   : > { %v854_v23 = vadd.f32 %v853_v11, %v764_v10 }
  0xd4   : > { %1732 = vst [vmem:[%s2095_s7 + $0x8] sm:$0xff] %v1660_v9   ;;  %v1016_v24 = vmul.f32 %v2068_v12, %v941_v13 }
  0xd6   : > { %v1050_v35 = vadd.f32 %v2082_v22, %v1016_v24 }
  0xd7   : > { %v2124_v26 = vpop.f32.mrf.mxu3 }
  0xd8   : > { %v1082_v38 = vmax.f32 %v1050_v35, 0.0 }
  0xd9   : > { %v942_v27 = vpop.f32.mrf.mxu2  ;;  %v767_v31 = vpop.f32.mrf.mxu0 }
  0xda   : > { %v943_v30 = vadd.f32 %v942_v27, %v854_v23  ;;  %v856_v34 = vpop.f32.mrf.mxu1 }
  0xdb   : > { %v857_v41 = vadd.f32 %v856_v34, %v767_v31 }
  0xdc   : > { %v1017_v36 = vmul.f32 %v2068_v12, %v943_v30  ;;  %806 = vmatmul.bf16.gmra.mxu0 %v1425_v28  ;;  %1004 = vmatmul.bf16.gmra.mxu3 %v1481_v29 }
  0xdd   : > { %895 = vmatmul.bf16.gmra.mxu1 %v1429_v32 }
  0xde   : > { %v1051_v37 = vadd.f32 %v2082_v22, %v1017_v36  ;;  %984 = vmatmul.bf16.gmra.mxu2 %v1433_v33 }
  0xdf   : > { %v2129_v42 = vpop.f32.mrf.mxu3 }
  0xe0   : > { %v1083_v40 = vmax.f32 %v1051_v37, 0.0 }
  0xe1   : > { %v945_v43 = vpop.f32.mrf.mxu2  ;;  %v769_v45 = vpop.f32.mrf.mxu0 }
  0xe2   : > { %v1665_v44 = vpack.c.bf16 %v1083_v40, %v1082_v38  ;;  %v858_v46 = vpop.f32.mrf.mxu1  ;;  %v946_v47 = vadd.f32 %v945_v43, %v857_v41 }
  0xe3   : > { %v859_v49 = vadd.f32 %v858_v46, %v769_v45 }
  0xe4   : > { %1733 = vst [vmem:[%s2095_s7 + $0x10] sm:$0xff] %v1665_v44   ;;  %v1018_v48 = vmul.f32 %v2068_v12, %v946_v47 }
  0xe6   : > { %v1052_v56 = vadd.f32 %v2082_v22, %v1018_v48 }
  0xe7   : > { %v2133_v50 = vpop.f32.mrf.mxu3 }
  0xe8   : > { %v1084_v59 = vmax.f32 %v1052_v56, 0.0 }
  0xe9   : > { %v947_v51 = vpop.f32.mrf.mxu2  ;;  %v772_v53 = vpop.f32.mrf.mxu0 }
  0xea   : > { %v948_v52 = vadd.f32 %v947_v51, %v859_v49  ;;  %v861_v54 = vpop.f32.mrf.mxu1 }
  0xeb   : > { %v862_v61 = vadd.f32 %v861_v54, %v772_v53 }
  0xec   : > { %v1019_v57 = vmul.f32 %v2068_v12, %v948_v52 }
  0xee   : > { %v1053_v58 = vadd.f32 %v2082_v22, %v1019_v57 }
  0xef   : > { %v901_v62 = vpop.f32.mrf.mxu3 }
  0xf0   : > { %v1085_v60 = vmax.f32 %v1053_v58, 0.0  ;;  %v2139_v63 = vadd.f32 %v901_v62, %v2063_v7 }
  0xf1   : > { %v950_v0 = vpop.f32.mrf.mxu2  ;;  %v774_v2 = vpop.f32.mrf.mxu0 }
  0xf2   : > { %v1670_v1 = vpack.c.bf16 %v1085_v60, %v1084_v59  ;;  %v863_v3 = vpop.f32.mrf.mxu1  ;;  %v951_v4 = vadd.f32 %v950_v0, %v862_v61 }
  0xf3   : > { %v864_v8 = vadd.f32 %v863_v3, %v774_v2 }
  0xf4   : > { %1734 = vst [vmem:[%s2095_s7 + $0x18] sm:$0xff] %v1670_v1   ;;  %v1020_v5 = vmul.f32 %v2068_v12, %v951_v4 }
  0xf6   : > { %v1054_v15 = vadd.f32 %v2082_v22, %v1020_v5 }
  0xf7   : > { %v2143_v9 = vpop.f32.mrf.mxu3 }
  0xf8   : > { %v1086_v17 = vmax.f32 %v1054_v15, 0.0 }
  0xf9   : > { %v952_v10 = vpop.f32.mrf.mxu2  ;;  %v777_v13 = vpop.f32.mrf.mxu0 }
  0xfa   : > { %v953_v11 = vadd.f32 %v952_v10, %v864_v8  ;;  %v866_v14 = vpop.f32.mrf.mxu1 }
  0xfb   : > { %v867_v19 = vadd.f32 %v866_v14, %v777_v13 }
  0xfc   : > { %v1021_v7 = vmul.f32 %v2068_v12, %v953_v11 }
  0xfe   : > { %v1055_v16 = vadd.f32 %v2082_v22, %v1021_v7 }
  0xff   : > { %v906_v20 = vpop.f32.mrf.mxu3 }
 0x100   : > { %v1087_v18 = vmax.f32 %v1055_v16, 0.0  ;;  %v2149_v21 = vadd.f32 %v906_v20, %v2090_v39 }
 0x101   : > { %v955_v24 = vpop.f32.mrf.mxu2  ;;  %v779_v27 = vpop.f32.mrf.mxu0 }
 0x102   : > { %v1675_v23 = vpack.c.bf16 %v1087_v18, %v1086_v17  ;;  %v868_v28 = vpop.f32.mrf.mxu1  ;;  %v956_v29 = vadd.f32 %v955_v24, %v867_v19 }
 0x103   : > { %v869_v31 = vadd.f32 %v868_v28, %v779_v27 }
 0x104   : > { %1735 = vst [vmem:[%s2095_s7 + $0x20] sm:$0xff] %v1675_v23   ;;  %v1022_v30 = vmul.f32 %v2068_v12, %v956_v29 }
 0x106   : > { %v1056_v37 = vadd.f32 %v2082_v22, %v1022_v30 }
 0x107   : > { %v2153_v32 = vpop.f32.mrf.mxu3 }
 0x108   : > { %v1088_v40 = vmax.f32 %v1056_v37, 0.0 }
 0x109   : > { %v957_v33 = vpop.f32.mrf.mxu2  ;;  %v782_v35 = vpop.f32.mrf.mxu0 }
 0x10a   : > { %v958_v34 = vadd.f32 %v957_v33, %v869_v31  ;;  %v871_v36 = vpop.f32.mrf.mxu1 }
 0x10b   : > { %v872_v43 = vadd.f32 %v871_v36, %v782_v35  ;;  %v904_v36 = vadd.f32 %v2143_v9, %v2084_v25 }
 0x10c   : > { %v1023_v39 = vmul.f32 %v2068_v12, %v958_v34 }
 0x10e   : > { %v1057_v38 = vadd.f32 %v2082_v22, %v1023_v39 }
 0x10f   : > { %v911_v44 = vpop.f32.mrf.mxu3 }
 0x110   : > { %v1089_v41 = vmax.f32 %v1057_v38, 0.0  ;;  %v2159_v45 = vadd.f32 %v911_v44, %v2112_v6 }
 0x111   : > { %v960_v46 = vpop.f32.mrf.mxu2  ;;  %v784_v48 = vpop.f32.mrf.mxu0 }
 0x112   : > { %v1680_v47 = vpack.c.bf16 %v1089_v41, %v1088_v40  ;;  %v873_v49 = vpop.f32.mrf.mxu1  ;;  %v961_v51 = vadd.f32 %v960_v46, %v872_v43 }
 0x113   : > { %v874_v53 = vadd.f32 %v873_v49, %v784_v48 }
 0x114   : > { %1736 = vst [vmem:[%s2095_s7 + $0x28] sm:$0xff] %v1680_v47   ;;  %v1024_v52 = vmul.f32 %v2068_v12, %v961_v51 }
 0x116   : > { %v1058_v60 = vadd.f32 %v2082_v22, %v1024_v52 }
 0x117   : > { %v2163_v54 = vpop.f32.mrf.mxu3 }
 0x118   : > { %v1090_v62 = vmax.f32 %v1058_v60, 0.0 }
 0x119   : > { %v962_v56 = vpop.f32.mrf.mxu2  ;;  %v787_v58 = vpop.f32.mrf.mxu0 }
 0x11a   : > { %v963_v57 = vadd.f32 %v962_v56, %v874_v53  ;;  %v876_v59 = vpop.f32.mrf.mxu1 }
 0x11b   : > { %v877_v1 = vadd.f32 %v876_v59, %v787_v58 }
 0x11c   : > { %v1025_v6 = vmul.f32 %v2068_v12, %v963_v57 }
 0x11e   : > { %v1059_v61 = vadd.f32 %v2082_v22, %v1025_v6 }
 0x11f   : > { %v916_v2 = vpop.f32.mrf.mxu3 }
 0x120   : > { %v1091_v0 = vmax.f32 %v1059_v61, 0.0  ;;  %v2169_v3 = vadd.f32 %v916_v2, %v2129_v42 }
 0x121   : > { %v965_v4 = vpop.f32.mrf.mxu2  ;;  %v789_v8 = vpop.f32.mrf.mxu0 }
 0x122   : > { %v1685_v5 = vpack.c.bf16 %v1091_v0, %v1090_v62  ;;  %v878_v10 = vpop.f32.mrf.mxu1  ;;  %v966_v11 = vadd.f32 %v965_v4, %v877_v1  ;;  %v909_v4 = vadd.f32 %v2153_v32, %v2107_v55 }
 0x123   : > { %v879_v14 = vadd.f32 %v878_v10, %v789_v8 }
 0x124   : > { %1737 = vst [vmem:[%s2095_s7 + $0x30] sm:$0xff] %v1685_v5   ;;  %v1026_v13 = vmul.f32 %v2068_v12, %v966_v11 }
 0x126   : > { %v1060_v19 = vadd.f32 %v2082_v22, %v1026_v13 }
 0x127   : > { %v2173_v15 = vpop.f32.mrf.mxu3 }
 0x128   : > { %v1092_v24 = vmax.f32 %v1060_v19, 0.0 }
 0x129   : > { %v967_v7 = vpop.f32.mrf.mxu2  ;;  %v792_v17 = vpop.f32.mrf.mxu0 }
 0x12a   : > { %v968_v16 = vadd.f32 %v967_v7, %v879_v14  ;;  %v881_v18 = vpop.f32.mrf.mxu1 }
 0x12b   : > { %v882_v27 = vadd.f32 %v881_v18, %v792_v17 }
 0x12c   : > { %v1027_v42 = vmul.f32 %v2068_v12, %v968_v16 }
 0x12e   : > { %v1061_v20 = vadd.f32 %v2082_v22, %v1027_v42 }
 0x12f   : > { %v990_v28 = vpop.f32.mrf.mxu3 }
 0x130   : > { %v1093_v23 = vmax.f32 %v1061_v20, 0.0  ;;  %v991_v33 = vadd.f32 %v990_v28, %v2139_v63 }
 0x131   : > { %v970_v29 = vpop.f32.mrf.mxu2  ;;  %v794_v31 = vpop.f32.mrf.mxu0 }
 0x132   : > { %v1690_v30 = vpack.c.bf16 %v1093_v23, %v1092_v24  ;;  %v883_v34 = vpop.f32.mrf.mxu1  ;;  %v971_v35 = vadd.f32 %v970_v29, %v882_v27  ;;  %v1036_v37 = vmul.f32 %v2068_v12, %v991_v33 }
 0x133   : > { %v884_v38 = vadd.f32 %v883_v34, %v794_v31 }
 0x134   : > { %1738 = vst [vmem:[%s2095_s7 + $0x38] sm:$0xff] %v1690_v30   ;;  %v1028_v39 = vmul.f32 %v2068_v12, %v971_v35  ;;  %v1070_v47 = vadd.f32 %v2082_v22, %v1036_v37 }
 0x136   : > { %v1062_v49 = vadd.f32 %v2082_v22, %v1028_v39  ;;  %v1102_v52 = vmax.f32 %v1070_v47, 0.0  ;;  %v914_v39 = vadd.f32 %v2163_v54, %v2124_v26 }
 0x137   : > { %v992_v40 = vpop.f32.mrf.mxu3 }
 0x138   : > { %v993_v43 = vadd.f32 %v992_v40, %v904_v36  ;;  %v1094_v56 = vmax.f32 %v1062_v49, 0.0 }
 0x139   : > { %v972_v41 = vpop.f32.mrf.mxu2  ;;  %v797_v46 = vpop.f32.mrf.mxu0 }
 0x13a   : > { %v973_v44 = vadd.f32 %v972_v41, %v884_v38  ;;  %v1037_v63 = vmul.f32 %v2068_v12, %v993_v43  ;;  %v886_v48 = vpop.f32.mrf.mxu1 }
 0x13b   : > { %v887_v58 = vadd.f32 %v886_v48, %v797_v46 }
 0x13c   : > { %v1029_v25 = vmul.f32 %v2068_v12, %v973_v44  ;;  %v1071_v9 = vadd.f32 %v2082_v22, %v1037_v63 }
 0x13e   : > { %v1063_v51 = vadd.f32 %v2082_v22, %v1029_v25  ;;  %v1103_v53 = vmax.f32 %v1071_v9, 0.0 }
 0x13f   : > { %v995_v59 = vpop.f32.mrf.mxu3 }
 0x140   : > { %v1095_v57 = vmax.f32 %v1063_v51, 0.0  ;;  %v1715_v60 = vpack.c.bf16 %v1103_v53, %v1102_v52  ;;  %v996_v0 = vadd.f32 %v995_v59, %v2149_v21 }
 0x141   : > { %v975_v6 = vpop.f32.mrf.mxu2  ;;  %v799_v62 = vpop.f32.mrf.mxu0 }
 0x142   : > { %v1695_v61 = vpack.c.bf16 %v1095_v57, %v1094_v56  ;;  %1743 = vst [vmem:[%s2095_s7 + $0x60] sm:$0xff] %v1715_v60   ;;  %v888_v1 = vpop.f32.mrf.mxu1  ;;  %v976_v2 = vadd.f32 %v975_v6, %v887_v58  ;;  %v1038_v5 = vmul.f32 %v2068_v12, %v996_v0 }
 0x143   : > { %v889_v10 = vadd.f32 %v888_v1, %v799_v62 }
 0x144   : > { %1739 = vst [vmem:[%s2095_s7 + $0x40] sm:$0xff] %v1695_v61   ;;  %v1030_v8 = vmul.f32 %v2068_v12, %v976_v2  ;;  %v1072_v17 = vadd.f32 %v2082_v22, %v1038_v5  ;;  %v919_v2 = vadd.f32 %v2173_v15, %v2133_v50 }
 0x146   : > { %v1064_v19 = vadd.f32 %v2082_v22, %v1030_v8  ;;  %v1104_v20 = vmax.f32 %v1072_v17, 0.0 }
 0x147   : > { %v997_v11 = vpop.f32.mrf.mxu3 }
 0x148   : > { %v998_v14 = vadd.f32 %v997_v11, %v909_v4  ;;  %v1096_v23 = vmax.f32 %v1064_v19, 0.0 }
 0x149   : > { %v977_v13 = vpop.f32.mrf.mxu2  ;;  %v802_v16 = vpop.f32.mrf.mxu0 }
 0x14a   : > { %v978_v7 = vadd.f32 %v977_v13, %v889_v10  ;;  %v1039_v21 = vmul.f32 %v2068_v12, %v998_v14  ;;  %v891_v18 = vpop.f32.mrf.mxu1 }
 0x14b   : > { %v892_v28 = vadd.f32 %v891_v18, %v802_v16 }
 0x14c   : > { %v1031_v55 = vmul.f32 %v2068_v12, %v978_v7  ;;  %v1073_v32 = vadd.f32 %v2082_v22, %v1039_v21 }
 0x14e   : > { %v1065_v42 = vadd.f32 %v2082_v22, %v1031_v55  ;;  %v1105_v24 = vmax.f32 %v1073_v32, 0.0 }
 0x14f   : > { %v1000_v29 = vpop.f32.mrf.mxu3 }
 0x150   : > { %v1097_v27 = vmax.f32 %v1065_v42, 0.0  ;;  %v1720_v30 = vpack.c.bf16 %v1105_v24, %v1104_v20  ;;  %v1001_v35 = vadd.f32 %v1000_v29, %v2159_v45 }
 0x151   : > { %v980_v31 = vpop.f32.mrf.mxu2  ;;  %v804_v34 = vpop.f32.mrf.mxu0 }
 0x152   : > { %v1700_v33 = vpack.c.bf16 %v1097_v27, %v1096_v23  ;;  %1744 = vst [vmem:[%s2095_s7 + $0x68] sm:$0xff] %v1720_v30   ;;  %v893_v36 = vpop.f32.mrf.mxu1  ;;  %v981_v37 = vadd.f32 %v980_v31, %v892_v28  ;;  %v1040_v38 = vmul.f32 %v2068_v12, %v1001_v35 }
 0x153   : > { %v894_v41 = vadd.f32 %v893_v36, %v804_v34 }
 0x154   : > { %1740 = vst [vmem:[%s2095_s7 + $0x48] sm:$0xff] %v1700_v33   ;;  %v1032_v40 = vmul.f32 %v2068_v12, %v981_v37  ;;  %v1074_v63 = vadd.f32 %v2082_v22, %v1040_v38 }
 0x156   : > { %v1066_v25 = vadd.f32 %v2082_v22, %v1032_v40  ;;  %v1106_v51 = vmax.f32 %v1074_v63, 0.0 }
 0x157   : > { %v1002_v43 = vpop.f32.mrf.mxu3 }
 0x158   : > { %v1003_v46 = vadd.f32 %v1002_v43, %v914_v39  ;;  %v1098_v53 = vmax.f32 %v1066_v25, 0.0 }
 0x159   : > { %v982_v44 = vpop.f32.mrf.mxu2  ;;  %v807_v45 = vpop.f32.mrf.mxu0 }
 0x15a   : > { %v983_v47 = vadd.f32 %v982_v44, %v894_v41  ;;  %v1041_v48 = vmul.f32 %v2068_v12, %v1003_v46  ;;  %v896_v49 = vpop.f32.mrf.mxu1 }
 0x15b   : > { %v897_v57 = vadd.f32 %v896_v49, %v807_v45 }
 0x15c   : > { %v1033_v26 = vmul.f32 %v2068_v12, %v983_v47  ;;  %v1075_v54 = vadd.f32 %v2082_v22, %v1041_v48 }
 0x15e   : > { %v1067_v9 = vadd.f32 %v2082_v22, %v1033_v26  ;;  %v1107_v52 = vmax.f32 %v1075_v54, 0.0 }
 0x15f   : > { %v1005_v58 = vpop.f32.mrf.mxu3 }
 0x160   : > { %v1099_v56 = vmax.f32 %v1067_v9, 0.0  ;;  %v1725_v59 = vpack.c.bf16 %v1107_v52, %v1106_v51  ;;  %v1006_v61 = vadd.f32 %v1005_v58, %v2169_v3 }
 0x161   : > { %v985_v60 = vpop.f32.mrf.mxu2  ;;  %v809_v0 = vpop.f32.mrf.mxu0 }
 0x162   : > { %v1705_v6 = vpack.c.bf16 %v1099_v56, %v1098_v53  ;;  %1745 = vst [vmem:[%s2095_s7 + $0x70] sm:$0xff] %v1725_v59   ;;  %v986_v62 = vadd.f32 %v985_v60, %v897_v57  ;;  %v898_v1 = vpop.f32.mrf.mxu1  ;;  %v1042_v4 = vmul.f32 %v2068_v12, %v1006_v61 }
 0x163   : > { %v899_v8 = vadd.f32 %v898_v1, %v809_v0 }
 0x164   : > { %1741 = vst [vmem:[%s2095_s7 + $0x50] sm:$0xff] %v1705_v6   ;;  %v1034_v5 = vmul.f32 %v2068_v12, %v986_v62  ;;  %v1076_v3 = vadd.f32 %v2082_v22, %v1042_v4 }
 0x166   : > { %v1068_v16 = vadd.f32 %v2082_v22, %v1034_v5  ;;  %v1108_v21 = vmax.f32 %v1076_v3, 0.0 }
 0x167   : > { %v1007_v10 = vpop.f32.mrf.mxu3 }
 0x168   : > { %v1008_v13 = vadd.f32 %v1007_v10, %v919_v2  ;;  %v1100_v19 = vmax.f32 %v1068_v16, 0.0 }
 0x169   : > { %v987_v11 = vpop.f32.mrf.mxu2 }
 0x16a   : > { %v988_v14 = vadd.f32 %v987_v11, %v899_v8  ;;  %v1043_v7 = vmul.f32 %v2068_v12, %v1008_v13 }
 0x16c   : > { %v1035_v17 = vmul.f32 %v2068_v12, %v988_v14  ;;  %v1077_v50 = vadd.f32 %v2082_v22, %v1043_v7 }
 0x16e   : > { %v1069_v15 = vadd.f32 %v2082_v22, %v1035_v17  ;;  %v1109_v18 = vmax.f32 %v1077_v50, 0.0 }
 0x170   : > { %v1101_v55 = vmax.f32 %v1069_v15, 0.0  ;;  %v1730_v32 = vpack.c.bf16 %v1109_v18, %v1108_v21 }
 0x172   : > { %v1710_v42 = vpack.c.bf16 %v1101_v55, %v1100_v19  ;;  %1746 = vst [vmem:[%s2095_s7 + $0x78] sm:$0xff] %v1730_v32  }
 0x174   : > { %1742 = vst [vmem:[%s2095_s7 + $0x58] sm:$0xff] %v1710_v42  }
 0x175 PF: > { %s13_s14 = sadd.s32 1, %s1820_s14   ;;  %s2244_s12 = smov %s1816_s13 }
 0x176   : > { %p10_p5 = scmp.ge.s32.totalorder %s13_s14, 4   ;;  %s2245_s13 = smov %s2247_s15 }
 0x178   :  { %12 = sbr.rel (!%p10_p5) target bundleno = 2 (0x2), region = 68 }

// kernel: forward.11
= control target key start
LH: loop header
LB: loop body
LE: loop exit
PB: predicated region body
PF: predicated region fallthrough
CT: control target
= control target key end

     0   :  { %s377_s6 = smov 0   ;;  %s422_s0 = inlined_call_operand.vmem [shape: bf16[16,2,8,256], index: 0, kind: input, shape index: {}]   ;;  %s423_s1 = inlined_call_operand.vmem [shape: bf16[16,8,128], index: 1, kind: output, shape index: {}]  }
   0x1 LB: > { %s315_s7 = sadd.s32 4294967295, %s365_s6   ;;  %p319_p0 = scmp.ge.s32.totalorder %s365_s6, 1  ;;  %s365_s6 = sphi %s377_s6, %s11_s6  }
   0x2   : > { %p89_p1 = scmp.lt.s32.totalorder %s365_s6, 3 }
   0x4   : > { %p90_p2 = pnand %p319_p0, %p89_p1 }
   0x5   : > { %s320_s8 = sshll.u32 (!%p90_p2), %s315_s7, 3 }
   0x6   : > { %93 = sbr.rel (%p90_p2) target bundleno = 46 (0x2e), region = 24  ;;  %p111_p3 = scmp.lt.s32.totalorder (!%p90_p2), %s320_s8, 15 }
   0xb   : > { %s425_s8 = smov (!%p111_p3, %s320_s8), 15 }
   0xc   : > { %s327_s9 = sshll.u32 %s425_s8, 4  ;;  %s324_s13 = sshll.u32 %s425_s8, 2 }
   0xd   : > { %s391_s12 = scalar_lea.vmem %s422_s0, %s327_s9  ;;  %s411_s16 = scalar_lea.vmem %s423_s1, %s324_s13 }
   0xe   : > { %v123_v0 = vld [vmem:[%s391_s12] sm:$0xff]  ;;  %v124_v1 = vld [vmem:[%s391_s12 + $0x8] sm:$0xff]  ;;  %v125_v2 = vld [vmem:[%s391_s12 + $0x10] sm:$0xff] }
   0xf   : > { %v126_v3 = vld [vmem:[%s391_s12 + $0x18] sm:$0xff]  ;;  %v139_v4 = vunpack.c.l.bf16 %v123_v0  ;;  %v140_v5 = vunpack.c.h.bf16 %v123_v0  ;;  %v141_v6 = vunpack.c.l.bf16 %v125_v2  ;;  %v142_v7 = vunpack.c.h.bf16 %v125_v2  ;;  %v127_v8 = vld [vmem:[%s391_s12 + $0x20] sm:$0xff]  ;;  %v128_v13 = vld [vmem:[%s391_s12 + $0x28] sm:$0xff] }
  0x10   : > { %v155_v9 = vunpack.c.l.bf16 %v124_v1  ;;  %v156_v10 = vunpack.c.h.bf16 %v124_v1  ;;  %v157_v11 = vunpack.c.l.bf16 %v126_v3  ;;  %v158_v12 = vunpack.c.h.bf16 %v126_v3  ;;  %v129_v14 = vld [vmem:[%s391_s12 + $0x30] sm:$0xff]  ;;  %v130_v15 = vld [vmem:[%s391_s12 + $0x38] sm:$0xff]  ;;  %v131_v20 = vld [vmem:[%s391_s12 + $0x40] sm:$0xff] }
  0x11   : > { %v143_v16 = vunpack.c.l.bf16 %v127_v8  ;;  %v144_v17 = vunpack.c.h.bf16 %v127_v8  ;;  %v145_v18 = vunpack.c.l.bf16 %v129_v14  ;;  %v146_v19 = vunpack.c.h.bf16 %v129_v14  ;;  %v133_v29 = vld [vmem:[%s391_s12 + $0x50] sm:$0xff]  ;;  %v132_v32 = vld [vmem:[%s391_s12 + $0x48] sm:$0xff]  ;;  %v134_v39 = vld [vmem:[%s391_s12 + $0x58] sm:$0xff] }
  0x12   : > { %v171_v21 = vmax.f32 %v139_v4, %v155_v9  ;;  %v172_v22 = vmax.f32 %v140_v5, %v156_v10  ;;  %v173_v23 = vmax.f32 %v141_v6, %v157_v11  ;;  %v174_v24 = vmax.f32 %v142_v7, %v158_v12  ;;  %v135_v52 = vld [vmem:[%s391_s12 + $0x60] sm:$0xff]  ;;  %v137_v57 = vld [vmem:[%s391_s12 + $0x70] sm:$0xff]  ;;  %v136_v1 = vld [vmem:[%s391_s12 + $0x68] sm:$0xff] }
  0x13   : > { %v159_v25 = vunpack.c.l.bf16 %v128_v13  ;;  %v160_v26 = vunpack.c.h.bf16 %v128_v13  ;;  %v161_v27 = vunpack.c.l.bf16 %v130_v15  ;;  %v162_v28 = vunpack.c.h.bf16 %v130_v15  ;;  %v138_v2 = vld [vmem:[%s391_s12 + $0x78] sm:$0xff] }
  0x14   : > { %v187_v30 = vpack.c.bf16 %v172_v22, %v171_v21  ;;  %v188_v31 = vpack.c.bf16 %v174_v24, %v173_v23  ;;  %v147_v33 = vunpack.c.l.bf16 %v131_v20  ;;  %v148_v34 = vunpack.c.h.bf16 %v131_v20 }
  0x15   : > { %v175_v35 = vmax.f32 %v143_v16, %v159_v25  ;;  %v176_v36 = vmax.f32 %v144_v17, %v160_v26  ;;  %v177_v37 = vmax.f32 %v145_v18, %v161_v27  ;;  %v178_v38 = vmax.f32 %v146_v19, %v162_v28 }
  0x16   : > { %v211_v40 = vrot.slane %v187_v30, 4  ;;  %v212_v41 = vrot.slane %v188_v31, 4  ;;  %v149_v42 = vunpack.c.l.bf16 %v133_v29  ;;  %v150_v43 = vunpack.c.h.bf16 %v133_v29 }
  0x17   : > { %v189_v44 = vpack.c.bf16 %v176_v36, %v175_v35  ;;  %v190_v45 = vpack.c.bf16 %v178_v38, %v177_v37  ;;  %v163_v46 = vunpack.c.l.bf16 %v132_v32  ;;  %v164_v47 = vunpack.c.h.bf16 %v132_v32 }
  0x18   : > { %v227_v48 = vunpack.c.l.bf16 %v211_v40  ;;  %v228_v49 = vunpack.c.l.bf16 %v212_v41  ;;  %v165_v50 = vunpack.c.l.bf16 %v134_v39  ;;  %v166_v51 = vunpack.c.h.bf16 %v134_v39 }
  0x19   : > { %v213_v53 = vrot.slane %v189_v44, 4  ;;  %v214_v54 = vrot.slane %v190_v45, 4  ;;  %v179_v55 = vmax.f32 %v147_v33, %v163_v46  ;;  %v180_v56 = vmax.f32 %v148_v34, %v164_v47 }
  0x1a   : > { %v235_v58 = vmax.f32 %v171_v21, %v227_v48  ;;  %v236_v59 = vmax.f32 %v173_v23, %v228_v49  ;;  %v181_v60 = vmax.f32 %v149_v42, %v165_v50  ;;  %v182_v61 = vmax.f32 %v150_v43, %v166_v51 }
  0x1b   : > { %v229_v62 = vunpack.c.l.bf16 %v213_v53  ;;  %v230_v63 = vunpack.c.l.bf16 %v214_v54  ;;  %v191_v0 = vpack.c.bf16 %v180_v56, %v179_v55  ;;  %v151_v3 = vunpack.c.l.bf16 %v135_v52 }
  0x1c   : > { %v331_v4 = vpack.c.bf16 %v236_v59, %v235_v58  ;;  %v192_v5 = vpack.c.bf16 %v182_v61, %v181_v60  ;;  %v152_v6 = vunpack.c.h.bf16 %v135_v52  ;;  %v153_v7 = vunpack.c.l.bf16 %v137_v57 }
  0x1d   : > { %v237_v8 = vmax.f32 %v175_v35, %v229_v62  ;;  %v238_v9 = vmax.f32 %v177_v37, %v230_v63  ;;  %v215_v10 = vrot.slane %v191_v0, 4  ;;  %v154_v11 = vunpack.c.h.bf16 %v137_v57 }
  0x1e   : > { %332 = vst [vmem:[%s411_s16] sm:$0xff] %v331_v4   ;;  %v216_v12 = vrot.slane %v192_v5, 4  ;;  %v167_v13 = vunpack.c.l.bf16 %v136_v1  ;;  %v168_v14 = vunpack.c.h.bf16 %v136_v1  ;;  %v169_v15 = vunpack.c.l.bf16 %v138_v2 }
  0x1f   : > { %v336_v16 = vpack.c.bf16 %v238_v9, %v237_v8  ;;  %v231_v17 = vunpack.c.l.bf16 %v215_v10  ;;  %v170_v18 = vunpack.c.h.bf16 %v138_v2 }
  0x20   : > { %v232_v19 = vunpack.c.l.bf16 %v216_v12  ;;  %v183_v20 = vmax.f32 %v151_v3, %v167_v13  ;;  %v184_v21 = vmax.f32 %v152_v6, %v168_v14  ;;  %v185_v22 = vmax.f32 %v153_v7, %v169_v15 }
  0x21   : > { %348 = vst [vmem:[%s411_s16 + $0x8] sm:$0xff] %v336_v16   ;;  %v239_v23 = vmax.f32 %v179_v55, %v231_v17  ;;  %v186_v24 = vmax.f32 %v154_v11, %v170_v18 }
  0x22   : > { %v240_v25 = vmax.f32 %v181_v60, %v232_v19  ;;  %v193_v26 = vpack.c.bf16 %v184_v21, %v183_v20 }
  0x23   : > { %v194_v27 = vpack.c.bf16 %v186_v24, %v185_v22 }
  0x24   : > { %v341_v28 = vpack.c.bf16 %v240_v25, %v239_v23  ;;  %v217_v29 = vrot.slane %v193_v26, 4 }
  0x25   : > { %v218_v30 = vrot.slane %v194_v27, 4 }
  0x26   : > { %349 = vst [vmem:[%s411_s16 + $0x10] sm:$0xff] %v341_v28   ;;  %v233_v31 = vunpack.c.l.bf16 %v217_v29 }
  0x27   : > { %v234_v32 = vunpack.c.l.bf16 %v218_v30 }
  0x28   : > { %v241_v33 = vmax.f32 %v183_v20, %v233_v31 }
  0x29   : > { %v242_v34 = vmax.f32 %v185_v22, %v234_v32 }
  0x2b   : > { %v346_v35 = vpack.c.bf16 %v242_v34, %v241_v33 }
  0x2d   : > { %350 = vst [vmem:[%s411_s16 + $0x18] sm:$0xff] %v346_v35  }
  0x2e PF: > { %s11_s6 = sadd.s32 1, %s365_s6  }
  0x2f   : > { %p8_p4 = scmp.ge.s32.totalorder %s11_s6, 4  }
  0x31   :  { %10 = sbr.rel (!%p8_p4) target bundleno = 1 (0x1), region = 54 }

</bundles_post_ra>
